<compile_context>
chip_gen: v7x
topology: tpu7x:2x2x1
jax: 0.10.0
libtpu: 0.0.40
codegen_flags: <defaults>
</compile_context>

<pallas_src>
import jax
import jax.numpy as jnp
from jax import lax
from jax.experimental import pallas as pl
from jax.experimental.pallas import tpu as pltpu


_H_TILE_BUDGET_BYTES = 8 * 1024 * 1024     # per h tile (double-buffered)
_VMEM_LIMIT_BYTES = 40 * 1024 * 1024


# ---------------------------------------------------------------------------
# Kernel factory (static shapes / T baked in at trace time)
# ---------------------------------------------------------------------------
def _make_projection_kernel(n_t_tiles, t_len, t_tile,
                            bn_eps=1e-5, l2_eps=1e-12):
    inv_t = 1.0 / float(t_len)
    needs_mask = (t_len % t_tile) != 0     # last T tile is partial

    def kernel(h_ref, w1_ref, gamma_ref, beta_ref, w2_ref, z_ref, acc_ref):
        t = pl.program_id(0)

        @pl.when(t == 0)
        def _():
            acc_ref[...] = jnp.zeros_like(acc_ref)

        # Partial AdaptiveAvgPool1d: accumulate the sum over this T tile.
        # h tile is (B, C, tT) in the native PyTorch layout; the time axis
        # sits on lanes, the reduce lands the (B, C) result lane-dense in C.
        h = h_ref[...]
        if needs_mask:
            col = t * t_tile + lax.broadcasted_iota(
                jnp.int32, (1, 1, t_tile), 2)
            h = jnp.where(col < t_len, h, 0)
        acc_ref[...] += jnp.sum(h, axis=-1, dtype=jnp.float32)

        @pl.when(t == n_t_tiles - 1)
        def _():
            pooled = (acc_ref[...] * inv_t).astype(jnp.bfloat16)     # (B, C)

            # Linear1.  Bias omitted: exactly cancelled by the training-mode
            # BatchNorm mean subtraction below.
            x = jnp.dot(pooled, w1_ref[...],
                        preferred_element_type=jnp.float32)          # (B, H)

            # BatchNorm1d (training mode): batch statistics over this branch,
            # biased variance, eps = 1e-5; folded into one scale/bias.
            mu = jnp.mean(x, axis=0, keepdims=True)
            d = x - mu
            var = jnp.mean(d * d, axis=0, keepdims=True)
            scale = gamma_ref[...] * lax.rsqrt(var + bn_eps)
            bias = beta_ref[...] - mu * scale

            # Folded BN + ReLU
            x = jnp.maximum(x * scale + bias, 0.0)

            # Linear2 (no bias)
            z = jnp.dot(x.astype(jnp.bfloat16), w2_ref[...],
                        preferred_element_type=jnp.float32)          # (B, O)

            # F.normalize(dim=1): z / max(||z||_2, 1e-12) via rsqrt (EUP slot)
            ssq = jnp.sum(z * z, axis=1, keepdims=True)
            z_ref[...] = z * lax.rsqrt(jnp.maximum(ssq, l2_eps * l2_eps))

    return kernel


# ---------------------------------------------------------------------------
# Wrapper: projection head for ONE branch (no wrapper-side data copies)
# ---------------------------------------------------------------------------
def projection_head(h, params):
    """Shared projection head on one branch's (B, C, T) encoder feature map.

    The feature map is consumed in its native PyTorch (batch, channel, time)
    layout with no transpose / pad / cast in the wrapper.  Pass bf16 features
    (the encoder's last op can emit them) to halve the HBM read.
    Returns (B, 128), L2-normalized along dim=1, float32.
    """
    w1, _b1, gamma, beta, w2 = params     # b1 cancelled by train-mode BN
    B, C, T = h.shape
    H = w1.shape[1]
    O = w2.shape[1]

    # T tiling: whole T in one block when it fits the budget; otherwise
    # lane-aligned (multiple of 128) tiles, partial last tile masked in-kernel.
    itemsize = jnp.dtype(h.dtype).itemsize
    bytes_per_col = B * C * itemsize
    if T * bytes_per_col <= _H_TILE_BUDGET_BYTES:
        tT = T
    else:
        tT = max(128, (_H_TILE_BUDGET_BYTES // bytes_per_col) // 128 * 128)
    nT = pl.cdiv(T, tT)

    # Small resident weights (bf16 matmul path; BN math stays f32).
    w1b = w1.astype(jnp.bfloat16)
    w2b = w2.astype(jnp.bfloat16)
    gamma2 = gamma.reshape(1, H).astype(jnp.float32)
    beta2 = beta.reshape(1, H).astype(jnp.float32)

    kernel = _make_projection_kernel(nT, T, tT)

    flops = int(2 * B * C * H + 2 * B * H * O + 2 * B * C * T)
    bytes_accessed = int(h.size * itemsize + (w1b.size + w2b.size) * 2
                         + (gamma2.size + beta2.size) * 4 + B * O * 4)

    z = pl.pallas_call(
        kernel,
        out_shape=jax.ShapeDtypeStruct((B, O), jnp.float32),
        grid_spec=pltpu.PrefetchScalarGridSpec(
            num_scalar_prefetch=0,
            grid=(nT,),                                      # T-tile reduction
            in_specs=[
                pl.BlockSpec((B, C, tT), lambda t: (0, 0, t)),   # h tile
                pl.BlockSpec((C, H), lambda t: (0, 0)),          # w1 resident
                pl.BlockSpec((1, H), lambda t: (0, 0)),          # gamma
                pl.BlockSpec((1, H), lambda t: (0, 0)),          # beta
                pl.BlockSpec((H, O), lambda t: (0, 0)),          # w2 resident
            ],
            out_specs=pl.BlockSpec((B, O), lambda t: (0, 0)),
            scratch_shapes=[pltpu.VMEM((B, C), jnp.float32)],    # pooled sum
        ),
        compiler_params=pltpu.CompilerParams(
            dimension_semantics=("arbitrary",),
            vmem_limit_bytes=_VMEM_LIMIT_BYTES,
        ),
        cost_estimate=pl.CostEstimate(
            flops=flops,
            transcendentals=2 * H + B,
            bytes_accessed=bytes_accessed),
    )(h, w1b, gamma2, beta2, w2b)
    return z


def cl_model_forward(h_i, h_j, params):
    """CLModel.forward with pre-extracted encoder features (shared head).

    Branches may have different temporal lengths; each runs as its own
    pallas_call so no cross-branch zero padding is ever streamed.
    """
    z_i = projection_head(h_i, params)
    z_j = projection_head(h_j, params)
    return z_i, z_j


def init_projection_params(key, in_channels=512, hidden_dim=512,
                           out_channels=128):
    """PyTorch-Linear-style uniform init; BN gamma=1, beta=0.
    b1 is kept for parameter parity but is unused in the kernel (cancelled by
    training-mode BatchNorm)."""
    k1, k2, k3 = jax.random.split(key, 3)
    lim1 = 1.0 / jnp.sqrt(jnp.float32(in_channels))
    lim2 = 1.0 / jnp.sqrt(jnp.float32(hidden_dim))
    w1 = jax.random.uniform(k1, (in_channels, hidden_dim), jnp.float32,
                            -lim1, lim1)
    b1 = jax.random.uniform(k2, (hidden_dim,), jnp.float32, -lim1, lim1)
    gamma = jnp.ones((hidden_dim,), jnp.float32)
    beta = jnp.zeros((hidden_dim,), jnp.float32)
    w2 = jax.random.uniform(k3, (hidden_dim, out_channels), jnp.float32,
                            -lim2, lim2)
    return (w1, b1, gamma, beta, w2)


# ---------------------------------------------------------------------------
# Pure-JAX f32 reference of the projection head (for correctness check)
# ---------------------------------------------------------------------------
def _projection_ref(h, params):
    w1, b1, gamma, beta, w2 = params
    pooled = jnp.mean(h, axis=-1)                       # (B, C)
    x = pooled @ w1 + b1
    mu = jnp.mean(x, axis=0, keepdims=True)
    var = jnp.mean((x - mu) ** 2, axis=0, keepdims=True)
    x = (x - mu) * lax.rsqrt(var + 1e-5) * gamma + beta
    x = jnp.maximum(x, 0.0)
    z = x @ w2
    nrm = jnp.sqrt(jnp.sum(z * z, axis=1, keepdims=True))
    return z / jnp.maximum(nrm, 1e-12)


if __name__ == "__main__":
    key = jax.random.PRNGKey(0)
    kp, ki, kj = jax.random.split(key, 3)

    B, C = 4, 512                 # in_channels fixed at 512 by the module
    T_i, T_j = 16, 24             # ragged temporal lengths across branches
    params = init_projection_params(kp)

    # Encoder outputs (Conv160 / CNN6 definitions not provided -> synthetic),
    # native PyTorch (B, C, T) layout, bf16 as the encoders would emit them.
    h_i = jax.random.normal(ki, (B, C, T_i), jnp.float32).astype(jnp.bfloat16)
    h_j = jax.random.normal(kj, (B, C, T_j), jnp.float32).astype(jnp.bfloat16)

    z_i, z_j = cl_model_forward(h_i, h_j, params)
    jax.block_until_ready((z_i, z_j))

    assert z_i.shape == (B, 128) and z_j.shape == (B, 128)
    assert bool(jnp.all(jnp.isfinite(z_i))) and bool(jnp.all(jnp.isfinite(z_j)))
    # rows should be (approximately) unit-norm after F.normalize
    assert bool(jnp.allclose(jnp.linalg.norm(z_i, axis=1), 1.0, atol=1e-3))
    assert bool(jnp.allclose(jnp.linalg.norm(z_j, axis=1), 1.0, atol=1e-3))

    # check against the pure-JAX f32 reference (loose tol: bf16 data path)
    r_i = _projection_ref(h_i.astype(jnp.float32), params)
    r_j = _projection_ref(h_j.astype(jnp.float32), params)
    assert float(jnp.max(jnp.abs(z_i - r_i))) < 5e-2
    assert float(jnp.max(jnp.abs(z_j - r_j))) < 5e-2

    print("KERNEL_OK")
</pallas_src>

<mosaic_0001>
module attributes {stable_mosaic.version = 11 : i64} {
  func.func @kernel(%arg0: i32, %arg1: memref<4x512x16xbf16, #tpu.memory_space<vmem>>, %arg2: memref<512x512xbf16, #tpu.memory_space<vmem>>, %arg3: memref<1x512xf32, #tpu.memory_space<vmem>>, %arg4: memref<1x512xf32, #tpu.memory_space<vmem>>, %arg5: memref<512x128xbf16, #tpu.memory_space<vmem>>, %arg6: memref<4x128xf32, #tpu.memory_space<vmem>>, %arg7: memref<4x512xf32, #tpu.memory_space<vmem>>) attributes {dimension_semantics = [#tpu.dimension_semantics<arbitrary>], iteration_bounds = array<i64: 1>, scalar_prefetch = 0 : i64, scratch_operands = 1 : i64, tpu.core_type = #tpu.core_type<tc>, window_params = [{transform_indices = @transform_0, window_bounds = array<i64: 4, 512, 16>}, {pipeline_mode = #tpu.pipeline_mode<synchronous>, transform_indices = @transform_1, window_bounds = array<i64: 512, 512>}, {pipeline_mode = #tpu.pipeline_mode<synchronous>, transform_indices = @transform_2, window_bounds = array<i64: 1, 512>}, {pipeline_mode = #tpu.pipeline_mode<synchronous>, transform_indices = @transform_3, window_bounds = array<i64: 1, 512>}, {pipeline_mode = #tpu.pipeline_mode<synchronous>, transform_indices = @transform_4, window_bounds = array<i64: 512, 128>}, {pipeline_mode = #tpu.pipeline_mode<synchronous>, transform_indices = @transform_5, window_bounds = array<i64: 4, 128>}]} {
    %c0_i32 = arith.constant 0 : i32
    %0 = arith.cmpi eq, %arg0, %c0_i32 : i32
    %1 = arith.extui %0 : i1 to i32
    %c0_i32_0 = arith.constant 0 : i32
    %2 = arith.cmpi ne, %1, %c0_i32_0 : i32
    scf.if %2 {
      %cst_9 = arith.constant 0.000000e+00 : f32
      %12 = vector.broadcast %cst_9 : f32 to vector<4x512xf32>
      %c0_10 = arith.constant 0 : index
      %c0_11 = arith.constant 0 : index
      %13 = vector.load %arg7[%c0_10, %c0_11] : memref<4x512xf32, #tpu.memory_space<vmem>>, vector<4x512xf32>
      tpu.vector_store %arg7[%c0_10, %c0_11], %12 {strides = array<i32>} : memref<4x512xf32, #tpu.memory_space<vmem>>, vector<4x512xf32>,
    } else {
    }
    %c0 = arith.constant 0 : index
    %c0_1 = arith.constant 0 : index
    %c0_2 = arith.constant 0 : index
    %3 = vector.load %arg1[%c0, %c0_1, %c0_2] : memref<4x512x16xbf16, #tpu.memory_space<vmem>>, vector<4x512x16xbf16>
    %c0_3 = arith.constant 0 : index
    %c0_4 = arith.constant 0 : index
    %4 = vector.load %arg7[%c0_3, %c0_4] : memref<4x512xf32, #tpu.memory_space<vmem>>, vector<4x512xf32>
    %5 = arith.extf %3 : vector<4x512x16xbf16> to vector<4x512x16xf32>
    %cst = arith.constant dense<0.000000e+00> : vector<4x512xf32>
    %6 = vector.multi_reduction <add>, %5, %cst [2] : vector<4x512x16xf32> to vector<4x512xf32>
    %7 = arith.addf %4, %6 : vector<4x512xf32>
    %c0_5 = arith.constant 0 : index
    %c0_6 = arith.constant 0 : index
    %8 = vector.load %arg7[%c0_5, %c0_6] : memref<4x512xf32, #tpu.memory_space<vmem>>, vector<4x512xf32>
    tpu.vector_store %arg7[%c0_5, %c0_6], %7 {strides = array<i32>} : memref<4x512xf32, #tpu.memory_space<vmem>>, vector<4x512xf32>,
    %c0_i32_7 = arith.constant 0 : i32
    %9 = arith.cmpi eq, %arg0, %c0_i32_7 : i32
    %10 = arith.extui %9 : i1 to i32
    %c0_i32_8 = arith.constant 0 : i32
    %11 = arith.cmpi ne, %10, %c0_i32_8 : i32
    scf.if %11 {
      %c0_9 = arith.constant 0 : index
      %c0_10 = arith.constant 0 : index
      %12 = vector.load %arg7[%c0_9, %c0_10] : memref<4x512xf32, #tpu.memory_space<vmem>>, vector<4x512xf32>
      %cst_11 = arith.constant 6.250000e-02 : f32
      %13 = vector.broadcast %cst_11 : f32 to vector<4x512xf32>
      %14 = arith.mulf %12, %13 : vector<4x512xf32>
      %15 = arith.truncf %14 : vector<4x512xf32> to vector<4x512xbf16>
      %c0_12 = arith.constant 0 : index
      %c0_13 = arith.constant 0 : index
      %16 = vector.load %arg2[%c0_12, %c0_13] : memref<512x512xbf16, #tpu.memory_space<vmem>>, vector<512x512xbf16>
      %cst_14 = arith.constant dense<0.000000e+00> : vector<4x512xf32>
      %17 = tpu.matmul %15, %16, %cst_14 {dimension_numbers = #tpu.dot_dimension_numbers<[1], [0], [0], [1], [0, 0, 1, 1], [], []>} : vector<4x512xbf16>, vector<512x512xbf16>, vector<4x512xf32> -> vector<4x512xf32>
      %cst_15 = arith.constant dense<0.000000e+00> : vector<512xf32>
      %18 = vector.multi_reduction <add>, %17, %cst_15 [0] : vector<4x512xf32> to vector<512xf32>
      %19 = vector.shape_cast %18 : vector<512xf32> to vector<1x512xf32>
      %cst_16 = arith.constant 4.000000e+00 : f32
      %20 = vector.broadcast %cst_16 : f32 to vector<1x512xf32>
      %21 = arith.divf %19, %20 : vector<1x512xf32>
      %22 = vector.broadcast %21 : vector<1x512xf32> to vector<4x512xf32>
      %23 = arith.subf %17, %22 : vector<4x512xf32>
      %24 = arith.mulf %23, %23 : vector<4x512xf32>
      %cst_17 = arith.constant dense<0.000000e+00> : vector<512xf32>
      %25 = vector.multi_reduction <add>, %24, %cst_17 [0] : vector<4x512xf32> to vector<512xf32>
      %26 = vector.shape_cast %25 : vector<512xf32> to vector<1x512xf32>
      %cst_18 = arith.constant 4.000000e+00 : f32
      %27 = vector.broadcast %cst_18 : f32 to vector<1x512xf32>
      %28 = arith.divf %26, %27 : vector<1x512xf32>
      %c0_19 = arith.constant 0 : index
      %c0_20 = arith.constant 0 : index
      %29 = vector.load %arg3[%c0_19, %c0_20] : memref<1x512xf32, #tpu.memory_space<vmem>>, vector<1x512xf32>
      %cst_21 = arith.constant 9.99999974E-6 : f32
      %30 = vector.broadcast %cst_21 : f32 to vector<1x512xf32>
      %31 = arith.addf %28, %30 : vector<1x512xf32>
      %32 = math.rsqrt %31 : vector<1x512xf32>
      %33 = arith.mulf %29, %32 : vector<1x512xf32>
      %c0_22 = arith.constant 0 : index
      %c0_23 = arith.constant 0 : index
      %34 = vector.load %arg4[%c0_22, %c0_23] : memref<1x512xf32, #tpu.memory_space<vmem>>, vector<1x512xf32>
      %35 = arith.mulf %21, %33 : vector<1x512xf32>
      %36 = arith.subf %34, %35 : vector<1x512xf32>
      %37 = vector.broadcast %33 : vector<1x512xf32> to vector<4x512xf32>
      %38 = arith.mulf %17, %37 : vector<4x512xf32>
      %39 = vector.broadcast %36 : vector<1x512xf32> to vector<4x512xf32>
      %40 = arith.addf %38, %39 : vector<4x512xf32>
      %cst_24 = arith.constant 0.000000e+00 : f32
      %41 = vector.broadcast %cst_24 : f32 to vector<4x512xf32>
      %42 = arith.maximumf %40, %41 : vector<4x512xf32>
      %43 = arith.truncf %42 : vector<4x512xf32> to vector<4x512xbf16>
      %c0_25 = arith.constant 0 : index
      %c0_26 = arith.constant 0 : index
      %44 = vector.load %arg5[%c0_25, %c0_26] : memref<512x128xbf16, #tpu.memory_space<vmem>>, vector<512x128xbf16>
      %cst_27 = arith.constant dense<0.000000e+00> : vector<4x128xf32>
      %45 = tpu.matmul %43, %44, %cst_27 {dimension_numbers = #tpu.dot_dimension_numbers<[1], [0], [0], [1], [0, 0, 1, 1], [], []>} : vector<4x512xbf16>, vector<512x128xbf16>, vector<4x128xf32> -> vector<4x128xf32>
      %46 = arith.mulf %45, %45 : vector<4x128xf32>
      %cst_28 = arith.constant dense<0.000000e+00> : vector<4xf32>
      %47 = vector.multi_reduction <add>, %46, %cst_28 [1] : vector<4x128xf32> to vector<4xf32>
      %48 = vector.shape_cast %47 : vector<4xf32> to vector<4x1xf32>
      %cst_29 = arith.constant 1.000000e-24 : f32
      %49 = vector.broadcast %cst_29 : f32 to vector<4x1xf32>
      %50 = arith.maximumf %48, %49 : vector<4x1xf32>
      %51 = math.rsqrt %50 : vector<4x1xf32>
      %52 = vector.broadcast %51 : vector<4x1xf32> to vector<4x128xf32>
      %53 = arith.mulf %45, %52 : vector<4x128xf32>
      %c0_30 = arith.constant 0 : index
      %c0_31 = arith.constant 0 : index
      %54 = vector.load %arg6[%c0_30, %c0_31] : memref<4x128xf32, #tpu.memory_space<vmem>>, vector<4x128xf32>
      tpu.vector_store %arg6[%c0_30, %c0_31], %53 {strides = array<i32>} : memref<4x128xf32, #tpu.memory_space<vmem>>, vector<4x128xf32>,
    } else {
    }
    return
  }
  func.func @transform_0(%arg0: i32) -> (i32, i32, i32) {
    %c0_i32 = arith.constant 0 : i32
    %c0_i32_0 = arith.constant 0 : i32
    %c0_i32_1 = arith.constant 0 : i32
    return %c0_i32, %c0_i32_0, %arg0 : i32, i32, i32
  }
  func.func @transform_1(%arg0: i32) -> (i32, i32) {
    %c0_i32 = arith.constant 0 : i32
    %c0_i32_0 = arith.constant 0 : i32
    %c0_i32_1 = arith.constant 0 : i32
    return %c0_i32, %c0_i32_0 : i32, i32
  }
  func.func @transform_2(%arg0: i32) -> (i32, i32) {
    %c0_i32 = arith.constant 0 : i32
    %c0_i32_0 = arith.constant 0 : i32
    %c0_i32_1 = arith.constant 0 : i32
    return %c0_i32, %c0_i32_0 : i32, i32
  }
  func.func @transform_3(%arg0: i32) -> (i32, i32) {
    %c0_i32 = arith.constant 0 : i32
    %c0_i32_0 = arith.constant 0 : i32
    %c0_i32_1 = arith.constant 0 : i32
    return %c0_i32, %c0_i32_0 : i32, i32
  }
  func.func @transform_4(%arg0: i32) -> (i32, i32) {
    %c0_i32 = arith.constant 0 : i32
    %c0_i32_0 = arith.constant 0 : i32
    %c0_i32_1 = arith.constant 0 : i32
    return %c0_i32, %c0_i32_0 : i32, i32
  }
  func.func @transform_5(%arg0: i32) -> (i32, i32) {
    %c0_i32 = arith.constant 0 : i32
    %c0_i32_0 = arith.constant 0 : i32
    %c0_i32_1 = arith.constant 0 : i32
    return %c0_i32, %c0_i32_0 : i32, i32
  }
}

</mosaic_0001>

<bundles_post_ra>
// kernel: tpu_custom_call.1
= control target key start
LH: loop header
LB: loop body
LE: loop exit
PB: predicated region body
PF: predicated region fallthrough
CT: control target
= control target key end

     0   :  { %10 = vsyncpa [#allocation4], 0  ;;  %s14156_s0 = inlined_call_operand.vmem [shape: bf16[4,512,16], index: 0, kind: input, shape index: {}]   ;;  %s14157_s1 = inlined_call_operand.vmem [shape: bf16[512,512], index: 1, kind: input, shape index: {}]   ;;  %s14158_s2 = inlined_call_operand.vmem [shape: f32[1,512], index: 2, kind: input, shape index: {}]   ;;  %s14159_s3 = inlined_call_operand.vmem [shape: f32[1,512], index: 3, kind: input, shape index: {}]   ;;  %s14160_s4 = inlined_call_operand.hbm [shape: bf16[512,128], index: 4, kind: input, shape index: {}]   ;;  %s14161_s5 = inlined_call_operand.hbm [shape: f32[4,128], index: 5, kind: output, shape index: {}]  }
   0x1   :  { %11 = vsyncpa [#allocation5], 0  ;;  %s10165_s18 = smov [#allocation3]   ;;  %s10117_s22 = scalar_lea.hbm %s14160_s4, 4096 }
   0x2   :  { %s25_s19 = sshll.u32 %s10165_s18, 4  ;;  %p10118_p0 = scmp.ne.s32.totalorder %s14160_s4, %s10117_s22  ;;  %s26_s19 = int_to_ptr.vmem [resolvable:$true] %s25_s19 }
   0x3   :  { %p10121_p1 = scmp.lt.u32.totalorder %s10117_s22, %s14160_s4 }
   0x5   :  { %p10123_p2 = pnand %p10121_p1, %p10118_p0 }
   0x7   :  { %10126 = shalt.err (!%p10123_p2)
}
   0x8   :  { %s10127_s27 = scalar_lea.vmem %s26_s19, 4096  ;;  %p10132_p4 = scmp.lt.s32.totalorder %s26_s19, %s26_s19 }
   0x9   :  { %p10128_p3 = scmp.ne.s32.totalorder %s26_s19, %s10127_s27  ;;  %p10133_p5 = scmp.lt.s32.totalorder %s10127_s27, %s10127_s27 }
   0xb   :  { %p10134_p6 = por %p10133_p5, %p10132_p4 }
   0xd   :  { %p10135_p7 = pnand %p10134_p6, %p10128_p3 }
   0xf   :  { %10138 = shalt.err (!%p10135_p7)
}
  0x10   :  { %s10166_s28 = smov 64   ;;  %s10167_s29 = smov 4  }
  0x11   :  { %31 = dma.hbm_to_vmem [thread:$0]  %s14160_s4, 4096, %s26_s19, [#allocation4], %s10166_s28, %s10166_s28, %s10167_s29  }
  0x12   :  { %10161 = dma.done.wait [#allocation4], 4096  }
  0x13   :  { %10162 = vsyncadd [#allocation4], 4294963200  ;;  %v9694_v0 = vld [vmem:[%s14156_s0 + $0x8] sm:$0xff]   ;;  %vm556_vm0 = vcmask 130048   ;;  %v9183_v1 = vld [vmem:[%s14156_s0] sm:$0xff]   ;;  %vm6200_vm1 = vcmask 130112  }
  0x14   :  { %v9188_v2 = vunpack.c.l.bf16 %v9694_v0  ;;  %v9184_v3 = vunpack.c.l.bf16 %v9183_v1  ;;  %v9189_v4 = vunpack.c.h.bf16 %v9694_v0  ;;  %v9185_v5 = vunpack.c.h.bf16 %v9183_v1  ;;  %v9695_v6 = vld [vmem:[%s14156_s0 + $0x10] sm:$0xff]   ;;  %v9696_v13 = vld [vmem:[%s14156_s0 + $0x18] sm:$0xff]   ;;  %v9697_v18 = vld [vmem:[%s14156_s0 + $0x20] sm:$0xff]  }
  0x15   :  { %v9193_v11 = vunpack.c.h.bf16 %v9695_v6  ;;  %v9192_v12 = vunpack.c.l.bf16 %v9695_v6  ;;  %v9197_v16 = vunpack.c.h.bf16 %v9696_v13  ;;  %v9196_v17 = vunpack.c.l.bf16 %v9696_v13  ;;  %v9698_v23 = vld [vmem:[%s14156_s0 + $0x28] sm:$0xff]   ;;  %v9699_v24 = vld [vmem:[%s14156_s0 + $0x30] sm:$0xff]   ;;  %v9700_v29 = vld [vmem:[%s14156_s0 + $0x38] sm:$0xff]  }
  0x16   :  { %v563_v7 = vsel %vm556_vm0, %v9188_v2, 0.0  ;;  %v557_v8 = vsel %vm556_vm0, %v9184_v3, 0.0  ;;  %v566_v9 = vsel %vm556_vm0, %v9189_v4, 0.0  ;;  %v560_v10 = vsel %vm556_vm0, %v9185_v5, 0.0  ;;  %v9701_v34 = vld [vmem:[%s14156_s0 + $0x40] sm:$0xff]   ;;  %v9702_v39 = vld [vmem:[%s14156_s0 + $0x48] sm:$0xff]  }
  0x17   :  { %564 = vadd.xlane.f32.xlu1 %v563_v7  ;;  %558 = vadd.xlane.f32.xlu0 %v557_v8  ;;  %v572_v14 = vsel %vm556_vm0, %v9193_v11, 0.0  ;;  %v569_v15 = vsel %vm556_vm0, %v9192_v12, 0.0  ;;  %v578_v19 = vsel %vm556_vm0, %v9197_v16, 0.0  ;;  %v575_v20 = vsel %vm556_vm0, %v9196_v17, 0.0  ;;  %v9703_v44 = vld [vmem:[%s14156_s0 + $0x50] sm:$0xff]   ;;  %v9704_v53 = vld [vmem:[%s14156_s0 + $0x58] sm:$0xff]  }
  0x18   :  { %v9201_v21 = vunpack.c.h.bf16 %v9697_v18  ;;  %v9200_v22 = vunpack.c.l.bf16 %v9697_v18  ;;  %v9205_v27 = vunpack.c.h.bf16 %v9698_v23  ;;  %v9204_v28 = vunpack.c.l.bf16 %v9698_v23  ;;  %v9705_v54 = vld [vmem:[%s14156_s0 + $0x60] sm:$0xff]   ;;  %v9706_v59 = vld [vmem:[%s14156_s0 + $0x68] sm:$0xff]   ;;  %v9707_v0 = vld [vmem:[%s14156_s0 + $0x70] sm:$0xff]  }
  0x19   :  { %v9209_v32 = vunpack.c.h.bf16 %v9699_v24  ;;  %v9208_v33 = vunpack.c.l.bf16 %v9699_v24  ;;  %v9213_v37 = vunpack.c.h.bf16 %v9700_v29  ;;  %v9212_v38 = vunpack.c.l.bf16 %v9700_v29  ;;  %v9708_v5 = vld [vmem:[%s14156_s0 + $0x78] sm:$0xff]   ;;  %v9710_v16 = vld [vmem:[%s14156_s0 + $0x88] sm:$0xff]   ;;  %v9711_v23 = vld [vmem:[%s14156_s0 + $0x90] sm:$0xff]  }
  0x1a   :  { %v584_v25 = vsel %vm556_vm0, %v9201_v21, 0.0  ;;  %v581_v26 = vsel %vm556_vm0, %v9200_v22, 0.0  ;;  %v590_v30 = vsel %vm556_vm0, %v9205_v27, 0.0  ;;  %v587_v31 = vsel %vm556_vm0, %v9204_v28, 0.0 }
  0x1b   :  { %567 = vadd.xlane.f32.xlu1 %v566_v9  ;;  %561 = vadd.xlane.f32.xlu0 %v560_v10  ;;  %v596_v35 = vsel %vm556_vm0, %v9209_v32, 0.0  ;;  %v593_v36 = vsel %vm556_vm0, %v9208_v33, 0.0  ;;  %v602_v40 = vsel %vm556_vm0, %v9213_v37, 0.0  ;;  %v599_v41 = vsel %vm556_vm0, %v9212_v38, 0.0  ;;  %v9709_v10 = vld [vmem:[%s14156_s0 + $0x80] sm:$0xff]  }
  0x1c   :  { %v9217_v42 = vunpack.c.h.bf16 %v9701_v34  ;;  %v9216_v43 = vunpack.c.l.bf16 %v9701_v34  ;;  %v9221_v47 = vunpack.c.h.bf16 %v9702_v39  ;;  %v9220_v48 = vunpack.c.l.bf16 %v9702_v39 }
  0x1d   :  { %v9225_v51 = vunpack.c.h.bf16 %v9703_v44  ;;  %v9224_v52 = vunpack.c.l.bf16 %v9703_v44  ;;  %v9229_v57 = vunpack.c.h.bf16 %v9704_v53  ;;  %v9228_v58 = vunpack.c.l.bf16 %v9704_v53 }
  0x1e   :  { %v608_v45 = vsel %vm556_vm0, %v9217_v42, 0.0  ;;  %v605_v46 = vsel %vm556_vm0, %v9216_v43, 0.0  ;;  %v614_v49 = vsel %vm556_vm0, %v9221_v47, 0.0  ;;  %v611_v50 = vsel %vm556_vm0, %v9220_v48, 0.0 }
  0x1f   :  { %573 = vadd.xlane.f32.xlu1 %v572_v14  ;;  %570 = vadd.xlane.f32.xlu0 %v569_v15  ;;  %v620_v55 = vsel %vm556_vm0, %v9225_v51, 0.0  ;;  %v617_v56 = vsel %vm556_vm0, %v9224_v52, 0.0  ;;  %v626_v60 = vsel %vm556_vm0, %v9229_v57, 0.0  ;;  %v623_v61 = vsel %vm556_vm0, %v9228_v58, 0.0 }
  0x20   :  { %v9233_v62 = vunpack.c.h.bf16 %v9705_v54  ;;  %v9232_v63 = vunpack.c.l.bf16 %v9705_v54  ;;  %v9237_v3 = vunpack.c.h.bf16 %v9706_v59  ;;  %v9236_v4 = vunpack.c.l.bf16 %v9706_v59  ;;  %v9717_v54 = vld [vmem:[%s14156_s0 + $0xc0] sm:$0xff]   ;;  %v9718_v59 = vld [vmem:[%s14156_s0 + $0xc8] sm:$0xff]  }
  0x21   :  { %v9241_v8 = vunpack.c.h.bf16 %v9707_v0  ;;  %v9240_v9 = vunpack.c.l.bf16 %v9707_v0  ;;  %v9245_v13 = vunpack.c.h.bf16 %v9708_v5  ;;  %v9244_v14 = vunpack.c.l.bf16 %v9708_v5  ;;  %v9719_v0 = vld [vmem:[%s14156_s0 + $0xd0] sm:$0xff]   ;;  %v9720_v5 = vld [vmem:[%s14156_s0 + $0xd8] sm:$0xff]  }
  0x22   :  { %v632_v1 = vsel %vm556_vm0, %v9233_v62, 0.0  ;;  %v629_v2 = vsel %vm556_vm0, %v9232_v63, 0.0  ;;  %v638_v6 = vsel %vm556_vm0, %v9237_v3, 0.0  ;;  %v635_v7 = vsel %vm556_vm0, %v9236_v4, 0.0 }
  0x23   :  { %579 = vadd.xlane.f32.xlu1 %v578_v19  ;;  %576 = vadd.xlane.f32.xlu0 %v575_v20  ;;  %v644_v11 = vsel %vm556_vm0, %v9241_v8, 0.0  ;;  %v641_v12 = vsel %vm556_vm0, %v9240_v9, 0.0  ;;  %v9249_v15 = vunpack.c.h.bf16 %v9709_v10  ;;  %v650_v17 = vsel %vm556_vm0, %v9245_v13, 0.0 }
  0x24   :  { %v647_v18 = vsel %vm556_vm0, %v9244_v14, 0.0  ;;  %v9248_v19 = vunpack.c.l.bf16 %v9709_v10  ;;  %v9253_v21 = vunpack.c.h.bf16 %v9710_v16  ;;  %v9252_v22 = vunpack.c.l.bf16 %v9710_v16  ;;  %v9721_v10 = vld [vmem:[%s14156_s0 + $0xe0] sm:$0xff]  }
  0x25   :  { %v656_v20 = vsel %vm556_vm0, %v9249_v15, 0.0  ;;  %v9257_v28 = vunpack.c.h.bf16 %v9711_v23  ;;  %v9256_v29 = vunpack.c.l.bf16 %v9711_v23  ;;  %v9281_v57 = vunpack.c.h.bf16 %v9717_v54  ;;  %v9722_v15 = vld [vmem:[%s14156_s0 + $0xe8] sm:$0xff]  }
  0x26   :  { %v653_v24 = vsel %vm556_vm0, %v9248_v19, 0.0  ;;  %v659_v27 = vsel %vm556_vm0, %v9252_v22, 0.0  ;;  %v9280_v58 = vunpack.c.l.bf16 %v9717_v54  ;;  %v9285_v62 = vunpack.c.h.bf16 %v9718_v59 }
  0x27   :  { %585 = vadd.xlane.f32.xlu1 %v584_v25  ;;  %582 = vadd.xlane.f32.xlu0 %v581_v26  ;;  %v9712_v25 = vld [vmem:[%s14156_s0 + $0x98] sm:$0xff]   ;;  %v662_v26 = vsel %vm556_vm0, %v9253_v21, 0.0  ;;  %v665_v32 = vsel %vm556_vm0, %v9256_v29, 0.0  ;;  %v9284_v63 = vunpack.c.l.bf16 %v9718_v59  ;;  %v9289_v3 = vunpack.c.h.bf16 %v9719_v0 }
  0x28   :  { %v9261_v33 = vunpack.c.h.bf16 %v9712_v25  ;;  %v9260_v34 = vunpack.c.l.bf16 %v9712_v25  ;;  %v9288_v4 = vunpack.c.l.bf16 %v9719_v0  ;;  %v9293_v8 = vunpack.c.h.bf16 %v9720_v5  ;;  %v9724_v25 = vld [vmem:[%s14156_s0 + $0xf8] sm:$0xff]  }
  0x29   :  { %v9292_v9 = vunpack.c.l.bf16 %v9720_v5  ;;  %v9297_v13 = vunpack.c.h.bf16 %v9721_v10  ;;  %v9296_v14 = vunpack.c.l.bf16 %v9721_v10  ;;  %v9300_v19 = vunpack.c.l.bf16 %v9722_v15  ;;  %v9732_v5 = vld [vmem:[%s14156_s0 + $0x138] sm:$0xff]  }
  0x2a   :  { %v671_v37 = vsel %vm556_vm0, %v9260_v34, 0.0  ;;  %v9308_v29 = vunpack.c.l.bf16 %v9724_v25  ;;  %v9341_v10 = vunpack.c.h.bf16 %v9732_v5  ;;  %vm6207_vm2 = vcmask 195712  }
  0x2b   :  { %591 = vadd.xlane.f32.xlu1 %v590_v30  ;;  %588 = vadd.xlane.f32.xlu0 %v587_v31  ;;  %v9713_v30 = vld [vmem:[%s14156_s0 + $0xa0] sm:$0xff]   ;;  %v668_v31 = vsel %vm556_vm0, %v9257_v28, 0.0  ;;  %v728_v16 = vsel %vm556_vm0, %v9297_v13, 0.0  ;;  %v731_v22 = vsel %vm556_vm0, %v9300_v19, 0.0  ;;  %v9309_v28 = vunpack.c.h.bf16 %v9724_v25  ;;  %v9734_v19 = vld [vmem:[%s14156_s0 + $0x148] sm:$0xff]  }
  0x2c   :  { %v9265_v38 = vunpack.c.h.bf16 %v9713_v30  ;;  %v9264_v39 = vunpack.c.l.bf16 %v9713_v30  ;;  %v9725_v30 = vld [vmem:[%s14156_s0 + $0x100] sm:$0xff]   ;;  %v9348_v25 = vunpack.c.l.bf16 %v9734_v19  ;;  %vm6214_vm3 = vcmask 261312  }
  0x2d   :  { %v9312_v34 = vunpack.c.l.bf16 %v9725_v30  ;;  %vm6221_vm4 = vcmask 326912   ;;  %vm6228_vm5 = vcmask 392512   ;;  %vm6235_vm6 = vcmask 458112  }
  0x2e   :  { %v677_v42 = vsel %vm556_vm0, %v9264_v39, 0.0  ;;  %vm6242_vm7 = vcmask 523712   ;;  %vm14346_vm8 = vcmask 589312   ;;  %vm6256_vm9 = vcmask 654912  }
  0x2f   :  { %597 = vadd.xlane.f32.xlu1 %v596_v35  ;;  %594 = vadd.xlane.f32.xlu0 %v593_v36  ;;  %v9714_v35 = vld [vmem:[%s14156_s0 + $0xa8] sm:$0xff]   ;;  %v674_v36 = vsel %vm556_vm0, %v9261_v33, 0.0  ;;  %v9313_v33 = vunpack.c.h.bf16 %v9725_v30  ;;  %vm6263_vm10 = vcmask 720512   ;;  %vm14347_vm11 = vcmask 786112  }
  0x30   :  { %v9269_v43 = vunpack.c.h.bf16 %v9714_v35  ;;  %v9268_v44 = vunpack.c.l.bf16 %v9714_v35  ;;  %v9726_v35 = vld [vmem:[%s14156_s0 + $0x108] sm:$0xff]   ;;  %vm6277_vm12 = vcmask 851712   ;;  %vm6284_vm13 = vcmask 917312  }
  0x31   :  { %v9316_v39 = vunpack.c.l.bf16 %v9726_v35  ;;  %vm6291_vm14 = vcmask 982912   ;;  %vm6298_vm15 = vcmask 1048512  }
  0x33   :  { %603 = vadd.xlane.f32.xlu1 %v602_v40  ;;  %600 = vadd.xlane.f32.xlu0 %v599_v41  ;;  %v9715_v40 = vld [vmem:[%s14156_s0 + $0xb0] sm:$0xff]   ;;  %v680_v41 = vsel %vm556_vm0, %v9265_v38, 0.0  ;;  %v9317_v38 = vunpack.c.h.bf16 %v9726_v35 }
  0x34   :  { %v9273_v47 = vunpack.c.h.bf16 %v9715_v40  ;;  %v9272_v48 = vunpack.c.l.bf16 %v9715_v40  ;;  %v9727_v40 = vld [vmem:[%s14156_s0 + $0x110] sm:$0xff]  }
  0x36   :  { %v689_v51 = vsel %vm556_vm0, %v9272_v48, 0.0 }
  0x37   :  { %609 = vadd.xlane.f32.xlu1 %v608_v45  ;;  %606 = vadd.xlane.f32.xlu0 %v605_v46  ;;  %v686_v45 = vsel %vm556_vm0, %v9269_v43, 0.0  ;;  %v683_v46 = vsel %vm556_vm0, %v9268_v44, 0.0  ;;  %v9321_v43 = vunpack.c.h.bf16 %v9727_v40  ;;  %v9320_v44 = vunpack.c.l.bf16 %v9727_v40  ;;  %v9737_v40 = vld [vmem:[%s14156_s0 + $0x160] sm:$0xff]  }
  0x3b   :  { %615 = vadd.xlane.f32.xlu1 %v614_v49  ;;  %612 = vadd.xlane.f32.xlu0 %v611_v50  ;;  %v9716_v49 = vld [vmem:[%s14156_s0 + $0xb8] sm:$0xff]   ;;  %v692_v50 = vsel %vm556_vm0, %v9273_v47, 0.0  ;;  %v761_v47 = vsel %vm556_vm0, %v9320_v44, 0.0 }
  0x3c   :  { %v9277_v52 = vunpack.c.h.bf16 %v9716_v49  ;;  %v9276_v53 = vunpack.c.l.bf16 %v9716_v49 }
  0x3f   :  { %621 = vadd.xlane.f32.xlu1 %v620_v55  ;;  %618 = vadd.xlane.f32.xlu0 %v617_v56  ;;  %v698_v55 = vsel %vm556_vm0, %v9277_v52, 0.0  ;;  %v695_v56 = vsel %vm556_vm0, %v9276_v53, 0.0 }
  0x43   :  { %627 = vadd.xlane.f32.xlu1 %v626_v60  ;;  %624 = vadd.xlane.f32.xlu0 %v623_v61  ;;  %v704_v60 = vsel %vm556_vm0, %v9281_v57, 0.0  ;;  %v701_v61 = vsel %vm556_vm0, %v9280_v58, 0.0 }
  0x47   :  { %633 = vadd.xlane.f32.xlu1 %v632_v1  ;;  %630 = vadd.xlane.f32.xlu0 %v629_v2  ;;  %v710_v1 = vsel %vm556_vm0, %v9285_v62, 0.0  ;;  %v707_v2 = vsel %vm556_vm0, %v9284_v63, 0.0  ;;  %v9731_v62 = vld [vmem:[%s14156_s0 + $0x130] sm:$0xff]  }
  0x4b   :  { %639 = vadd.xlane.f32.xlu1 %v638_v6  ;;  %636 = vadd.xlane.f32.xlu0 %v635_v7  ;;  %v716_v6 = vsel %vm556_vm0, %v9289_v3, 0.0  ;;  %v713_v7 = vsel %vm556_vm0, %v9288_v4, 0.0  ;;  %v9337_v3 = vunpack.c.h.bf16 %v9731_v62  ;;  %v9336_v4 = vunpack.c.l.bf16 %v9731_v62 }
  0x4f   :  { %645 = vadd.xlane.f32.xlu1 %v644_v11  ;;  %642 = vadd.xlane.f32.xlu0 %v641_v12  ;;  %v722_v11 = vsel %vm556_vm0, %v9293_v8, 0.0  ;;  %v719_v12 = vsel %vm556_vm0, %v9292_v9, 0.0  ;;  %v785_v8 = vsel %vm556_vm0, %v9336_v4, 0.0 }
  0x53   :  { %651 = vadd.xlane.f32.xlu1 %v650_v17  ;;  %648 = vadd.xlane.f32.xlu0 %v647_v18  ;;  %v725_v17 = vsel %vm556_vm0, %v9296_v14, 0.0  ;;  %v9301_v18 = vunpack.c.h.bf16 %v9722_v15  ;;  %v794_v14 = vsel %vm556_vm0, %v9341_v10, 0.0  ;;  %v9741_v10 = vld [vmem:[%s14156_s0 + $0x180] sm:$0xff]  }
  0x55   :  { %v734_v21 = vsel %vm556_vm0, %v9301_v18, 0.0 }
  0x57   :  { %657 = vadd.xlane.f32.xlu1 %v656_v20  ;;  %654 = vadd.xlane.f32.xlu0 %v653_v24  ;;  %v9723_v20 = vld [vmem:[%s14156_s0 + $0xf0] sm:$0xff]  }
  0x58   :  { %v9305_v23 = vunpack.c.h.bf16 %v9723_v20  ;;  %v9304_v24 = vunpack.c.l.bf16 %v9723_v20 }
  0x5b   :  { %663 = vadd.xlane.f32.xlu1 %v662_v26  ;;  %660 = vadd.xlane.f32.xlu0 %v659_v27  ;;  %v740_v26 = vsel %vm556_vm0, %v9305_v23, 0.0  ;;  %v737_v27 = vsel %vm556_vm0, %v9304_v24, 0.0  ;;  %v9349_v24 = vunpack.c.h.bf16 %v9734_v19  ;;  %v9742_v19 = vld [vmem:[%s14156_s0 + $0x188] sm:$0xff]  }
  0x5f   :  { %669 = vadd.xlane.f32.xlu1 %v668_v31  ;;  %666 = vadd.xlane.f32.xlu0 %v665_v32  ;;  %v746_v31 = vsel %vm556_vm0, %v9309_v28, 0.0  ;;  %v743_v32 = vsel %vm556_vm0, %v9308_v29, 0.0  ;;  %v806_v28 = vsel %vm556_vm0, %v9349_v24, 0.0  ;;  %v803_v29 = vsel %vm556_vm0, %v9348_v25, 0.0 }
  0x63   :  { %675 = vadd.xlane.f32.xlu1 %v674_v36  ;;  %672 = vadd.xlane.f32.xlu0 %v671_v37  ;;  %v752_v36 = vsel %vm556_vm0, %v9313_v33, 0.0  ;;  %v749_v37 = vsel %vm556_vm0, %v9312_v34, 0.0  ;;  %v9736_v33 = vld [vmem:[%s14156_s0 + $0x158] sm:$0xff]  }
  0x67   :  { %681 = vadd.xlane.f32.xlu1 %v680_v41  ;;  %678 = vadd.xlane.f32.xlu0 %v677_v42  ;;  %v758_v41 = vsel %vm556_vm0, %v9317_v38, 0.0  ;;  %v755_v42 = vsel %vm556_vm0, %v9316_v39, 0.0  ;;  %v9357_v38 = vunpack.c.h.bf16 %v9736_v33  ;;  %v9356_v39 = vunpack.c.l.bf16 %v9736_v33 }
  0x6b   :  { %687 = vadd.xlane.f32.xlu1 %v686_v45  ;;  %684 = vadd.xlane.f32.xlu0 %v683_v46  ;;  %v9728_v45 = vld [vmem:[%s14156_s0 + $0x118] sm:$0xff]   ;;  %v764_v46 = vsel %vm556_vm0, %v9321_v43, 0.0  ;;  %v815_v43 = vsel %vm556_vm0, %v9356_v39, 0.0 }
  0x6c   :  { %v9325_v48 = vunpack.c.h.bf16 %v9728_v45  ;;  %v9324_v49 = vunpack.c.l.bf16 %v9728_v45  ;;  %v9361_v45 = vunpack.c.h.bf16 %v9737_v40  ;;  %v9744_v39 = vld [vmem:[%s14156_s0 + $0x198] sm:$0xff]  }
  0x6e   :  { %v767_v52 = vsel %vm556_vm0, %v9324_v49, 0.0  ;;  %v824_v49 = vsel %vm556_vm0, %v9361_v45, 0.0 }
  0x6f   :  { %693 = vadd.xlane.f32.xlu1 %v692_v50  ;;  %690 = vadd.xlane.f32.xlu0 %v689_v51  ;;  %v9729_v50 = vld [vmem:[%s14156_s0 + $0x120] sm:$0xff]   ;;  %v770_v51 = vsel %vm556_vm0, %v9325_v48, 0.0 }
  0x70   :  { %v9329_v53 = vunpack.c.h.bf16 %v9729_v50  ;;  %v9328_v54 = vunpack.c.l.bf16 %v9729_v50 }
  0x72   :  { %v776_v57 = vsel %vm556_vm0, %v9329_v53, 0.0  ;;  %v773_v58 = vsel %vm556_vm0, %v9328_v54, 0.0  ;;  %v9739_v54 = vld [vmem:[%s14156_s0 + $0x170] sm:$0xff]  }
  0x73   :  { %699 = vadd.xlane.f32.xlu1 %v698_v55  ;;  %696 = vadd.xlane.f32.xlu0 %v695_v56  ;;  %v9730_v55 = vld [vmem:[%s14156_s0 + $0x128] sm:$0xff]   ;;  %v9368_v62 = vunpack.c.l.bf16 %v9739_v54 }
  0x75   :  { %v833_v4 = vsel %vm556_vm0, %v9368_v62, 0.0 }
  0x77   :  { %705 = vadd.xlane.f32.xlu1 %v704_v60  ;;  %702 = vadd.xlane.f32.xlu0 %v701_v61  ;;  %v9333_v60 = vunpack.c.h.bf16 %v9730_v55  ;;  %v9332_v61 = vunpack.c.l.bf16 %v9730_v55 }
  0x79   :  { %v782_v0 = vsel %vm556_vm0, %v9333_v60, 0.0 }
  0x7b   :  { %711 = vadd.xlane.f32.xlu1 %v710_v1  ;;  %708 = vadd.xlane.f32.xlu0 %v707_v2  ;;  %v779_v1 = vsel %vm556_vm0, %v9332_v61, 0.0  ;;  %v9369_v61 = vunpack.c.h.bf16 %v9739_v54 }
  0x7f   :  { %717 = vadd.xlane.f32.xlu1 %v716_v6  ;;  %714 = vadd.xlane.f32.xlu0 %v713_v7  ;;  %v788_v7 = vsel %vm556_vm0, %v9337_v3, 0.0  ;;  %v836_v3 = vsel %vm556_vm0, %v9369_v61, 0.0  ;;  %v9746_v61 = vld [vmem:[%s14156_s0 + $0x1a8] sm:$0xff]  }
  0x83   :  { %723 = vadd.xlane.f32.xlu1 %v722_v11  ;;  %720 = vadd.xlane.f32.xlu0 %v719_v12  ;;  %v9340_v11 = vunpack.c.l.bf16 %v9732_v5  ;;  %v9733_v12 = vld [vmem:[%s14156_s0 + $0x140] sm:$0xff]  }
  0x84   :  { %v9344_v18 = vunpack.c.l.bf16 %v9733_v12 }
  0x85   :  { %v791_v15 = vsel %vm556_vm0, %v9340_v11, 0.0 }
  0x87   :  { %729 = vadd.xlane.f32.xlu1 %v728_v16  ;;  %726 = vadd.xlane.f32.xlu0 %v725_v17  ;;  %v9345_v17 = vunpack.c.h.bf16 %v9733_v12 }
  0x8b   :  { %735 = vadd.xlane.f32.xlu1 %v734_v21  ;;  %732 = vadd.xlane.f32.xlu0 %v731_v22  ;;  %v800_v21 = vsel %vm556_vm0, %v9345_v17, 0.0  ;;  %v797_v22 = vsel %vm556_vm0, %v9344_v18, 0.0  ;;  %v9377_v17 = vunpack.c.h.bf16 %v9741_v10  ;;  %v9376_v18 = vunpack.c.l.bf16 %v9741_v10  ;;  %v9747_v10 = vld [vmem:[%s14156_s0 + $0x1b0] sm:$0xff]  }
  0x8d   :  { %v845_v24 = vsel %vm556_vm0, %v9376_v18, 0.0 }
  0x8f   :  { %741 = vadd.xlane.f32.xlu1 %v740_v26  ;;  %738 = vadd.xlane.f32.xlu0 %v737_v27  ;;  %v9735_v26 = vld [vmem:[%s14156_s0 + $0x150] sm:$0xff]  }
  0x93   :  { %747 = vadd.xlane.f32.xlu1 %v746_v31  ;;  %744 = vadd.xlane.f32.xlu0 %v743_v32  ;;  %v9353_v31 = vunpack.c.h.bf16 %v9735_v26  ;;  %v9352_v32 = vunpack.c.l.bf16 %v9735_v26  ;;  %v9381_v26 = vunpack.c.h.bf16 %v9742_v19 }
  0x95   :  { %v812_v35 = vsel %vm556_vm0, %v9353_v31, 0.0 }
  0x97   :  { %753 = vadd.xlane.f32.xlu1 %v752_v36  ;;  %750 = vadd.xlane.f32.xlu0 %v749_v37  ;;  %v809_v36 = vsel %vm556_vm0, %v9352_v32, 0.0  ;;  %v854_v32 = vsel %vm556_vm0, %v9381_v26, 0.0 }
  0x9b   :  { %759 = vadd.xlane.f32.xlu1 %v758_v41  ;;  %756 = vadd.xlane.f32.xlu0 %v755_v42  ;;  %v818_v42 = vsel %vm556_vm0, %v9357_v38, 0.0 }
  0x9f   :  { %765 = vadd.xlane.f32.xlu1 %v764_v46  ;;  %762 = vadd.xlane.f32.xlu0 %v761_v47  ;;  %v9360_v46 = vunpack.c.l.bf16 %v9737_v40  ;;  %v9738_v47 = vld [vmem:[%s14156_s0 + $0x168] sm:$0xff]  }
  0xa0   :  { %v9364_v53 = vunpack.c.l.bf16 %v9738_v47 }
  0xa1   :  { %v821_v50 = vsel %vm556_vm0, %v9360_v46, 0.0  ;;  %v9389_v46 = vunpack.c.h.bf16 %v9744_v39 }
  0xa3   :  { %771 = vadd.xlane.f32.xlu1 %v770_v51  ;;  %768 = vadd.xlane.f32.xlu0 %v767_v52  ;;  %v9365_v52 = vunpack.c.h.bf16 %v9738_v47  ;;  %v9388_v47 = vunpack.c.l.bf16 %v9744_v39 }
  0xa4   :  { %v10401_v56 = vpop.xlane.xlu1 %564  ;;  %v10405_v59 = vpop.xlane.xlu0 %558 }
  0xa7   :  { %777 = vadd.xlane.f32.xlu1 %v776_v57  ;;  %774 = vadd.xlane.f32.xlu0 %v773_v58  ;;  %v830_v57 = vsel %vm556_vm0, %v9365_v52, 0.0  ;;  %v827_v58 = vsel %vm556_vm0, %v9364_v53, 0.0  ;;  %v866_v52 = vsel %vm556_vm0, %v9389_v46, 0.0  ;;  %v863_v53 = vsel %vm556_vm0, %v9388_v47, 0.0 }
  0xa8   :  { %v10410_v63 = vpop.xlane.xlu1 %567  ;;  %v10414_v2 = vpop.xlane.xlu0 %561 }
  0xab   :  { %783 = vadd.xlane.f32.xlu1 %v782_v0  ;;  %780 = vadd.xlane.f32.xlu0 %v779_v1  ;;  %v9740_v0 = vld [vmem:[%s14156_s0 + $0x178] sm:$0xff]  }
  0xac   :  { %v10419_v6 = vpop.xlane.xlu1 %573  ;;  %v10423_v9 = vpop.xlane.xlu0 %570 }
  0xaf   :  { %789 = vadd.xlane.f32.xlu1 %v788_v7  ;;  %786 = vadd.xlane.f32.xlu0 %v785_v8  ;;  %v9373_v7 = vunpack.c.h.bf16 %v9740_v0  ;;  %v9372_v8 = vunpack.c.l.bf16 %v9740_v0 }
  0xb0   :  { %v10428_v13 = vpop.xlane.xlu1 %579  ;;  %v10432_v16 = vpop.xlane.xlu0 %576 }
  0xb1   :  { %v842_v12 = vsel %vm556_vm0, %v9373_v7, 0.0  ;;  %v9397_v7 = vunpack.c.h.bf16 %v9746_v61 }
  0xb3   :  { %795 = vadd.xlane.f32.xlu1 %v794_v14  ;;  %792 = vadd.xlane.f32.xlu0 %v791_v15  ;;  %v839_v14 = vsel %vm556_vm0, %v9372_v8, 0.0  ;;  %v9396_v8 = vunpack.c.l.bf16 %v9746_v61 }
  0xb4   :  { %v10437_v20 = vpop.xlane.xlu1 %585  ;;  %v10441_v23 = vpop.xlane.xlu0 %582 }
  0xb7   :  { %801 = vadd.xlane.f32.xlu1 %v800_v21  ;;  %798 = vadd.xlane.f32.xlu0 %v797_v22  ;;  %v848_v22 = vsel %vm556_vm0, %v9377_v17, 0.0  ;;  %v875_v17 = vsel %vm556_vm0, %v9396_v8, 0.0 }
  0xb8   :  { %v10446_v27 = vpop.xlane.xlu1 %591  ;;  %v10450_v30 = vpop.xlane.xlu0 %588 }
  0xbb   :  { %807 = vadd.xlane.f32.xlu1 %v806_v28  ;;  %804 = vadd.xlane.f32.xlu0 %v803_v29  ;;  %v9380_v28 = vunpack.c.l.bf16 %v9742_v19  ;;  %v9743_v29 = vld [vmem:[%s14156_s0 + $0x190] sm:$0xff]   ;;  %v9401_v19 = vunpack.c.h.bf16 %v9747_v10 }
  0xbc   :  { %v10455_v34 = vpop.xlane.xlu1 %597  ;;  %v10459_v37 = vpop.xlane.xlu0 %594  ;;  %v9384_v38 = vunpack.c.l.bf16 %v9743_v29 }
  0xbd   :  { %v851_v33 = vsel %vm556_vm0, %v9380_v28, 0.0  ;;  %v884_v28 = vsel %vm556_vm0, %v9401_v19, 0.0 }
  0xbf   :  { %813 = vadd.xlane.f32.xlu1 %v812_v35  ;;  %810 = vadd.xlane.f32.xlu0 %v809_v36  ;;  %v9385_v36 = vunpack.c.h.bf16 %v9743_v29 }
  0xc0   :  { %v10464_v41 = vpop.xlane.xlu1 %603  ;;  %v10468_v44 = vpop.xlane.xlu0 %600 }
  0xc3   :  { %819 = vadd.xlane.f32.xlu1 %v818_v42  ;;  %816 = vadd.xlane.f32.xlu0 %v815_v43  ;;  %v860_v42 = vsel %vm556_vm0, %v9385_v36, 0.0  ;;  %v857_v43 = vsel %vm556_vm0, %v9384_v38, 0.0  ;;  %v9749_v38 = vld [vmem:[%s14156_s0 + $0x1c0] sm:$0xff]  }
  0xc4   :  { %v10473_v48 = vpop.xlane.xlu1 %609  ;;  %v10477_v51 = vpop.xlane.xlu0 %606  ;;  %v9409_v47 = vunpack.c.h.bf16 %v9749_v38 }
  0xc7   :  { %825 = vadd.xlane.f32.xlu1 %v824_v49  ;;  %822 = vadd.xlane.f32.xlu0 %v821_v50  ;;  %v9745_v49 = vld [vmem:[%s14156_s0 + $0x1a0] sm:$0xff]  }
  0xc8   :  { %v10482_v55 = vpop.xlane.xlu1 %615  ;;  %v10486_v60 = vpop.xlane.xlu0 %612 }
  0xcb   :  { %831 = vadd.xlane.f32.xlu1 %v830_v57  ;;  %828 = vadd.xlane.f32.xlu0 %v827_v58  ;;  %v9393_v57 = vunpack.c.h.bf16 %v9745_v49  ;;  %v9392_v58 = vunpack.c.l.bf16 %v9745_v49  ;;  %v9408_v49 = vunpack.c.l.bf16 %v9749_v38 }
  0xcc   :  { %v10491_v1 = vpop.xlane.xlu1 %621  ;;  %v10495_v5 = vpop.xlane.xlu0 %618 }
  0xcd   :  { %v872_v0 = vsel %vm556_vm0, %v9393_v57, 0.0  ;;  %v896_v57 = vsel %vm556_vm0, %v9409_v47, 0.0 }
  0xcf   :  { %837 = vadd.xlane.f32.xlu1 %v836_v3  ;;  %834 = vadd.xlane.f32.xlu0 %v833_v4  ;;  %v869_v3 = vsel %vm556_vm0, %v9392_v58, 0.0  ;;  %v893_v58 = vsel %vm556_vm0, %v9408_v49, 0.0 }
  0xd0   :  { %v10500_v11 = vpop.xlane.xlu1 %627  ;;  %v10504_v15 = vpop.xlane.xlu0 %624 }
  0xd3   :  { %843 = vadd.xlane.f32.xlu1 %v842_v12  ;;  %840 = vadd.xlane.f32.xlu0 %v839_v14  ;;  %v878_v14 = vsel %vm556_vm0, %v9397_v7, 0.0  ;;  %v9751_v7 = vld [vmem:[%s14156_s0 + $0x1d0] sm:$0xff]  }
  0xd4   :  { %v10509_v21 = vpop.xlane.xlu1 %633  ;;  %v10513_v25 = vpop.xlane.xlu0 %630  ;;  %v9417_v19 = vunpack.c.h.bf16 %v9751_v7 }
  0xd7   :  { %849 = vadd.xlane.f32.xlu1 %v848_v22  ;;  %846 = vadd.xlane.f32.xlu0 %v845_v24  ;;  %v9400_v22 = vunpack.c.l.bf16 %v9747_v10  ;;  %v9748_v24 = vld [vmem:[%s14156_s0 + $0x1b8] sm:$0xff]  }
  0xd8   :  { %v10518_v31 = vpop.xlane.xlu1 %639  ;;  %v10522_v35 = vpop.xlane.xlu0 %636  ;;  %v9404_v36 = vunpack.c.l.bf16 %v9748_v24 }
  0xd9   :  { %v881_v29 = vsel %vm556_vm0, %v9400_v22, 0.0  ;;  %v9416_v22 = vunpack.c.l.bf16 %v9751_v7 }
  0xdb   :  { %855 = vadd.xlane.f32.xlu1 %v854_v32  ;;  %852 = vadd.xlane.f32.xlu0 %v851_v33  ;;  %v9405_v33 = vunpack.c.h.bf16 %v9748_v24  ;;  %v9752_v24 = vld [vmem:[%s14156_s0 + $0x1d8] sm:$0xff]  }
  0xdc   :  { %v10527_v40 = vpop.xlane.xlu1 %645  ;;  %v10531_v45 = vpop.xlane.xlu0 %642  ;;  %v9421_v38 = vunpack.c.h.bf16 %v9752_v24 }
  0xde   :  { %v914_v49 = vsel %vm556_vm0, %v9421_v38, 0.0 }
  0xdf   :  { %861 = vadd.xlane.f32.xlu1 %v860_v42  ;;  %858 = vadd.xlane.f32.xlu0 %v857_v43  ;;  %v890_v42 = vsel %vm556_vm0, %v9405_v33, 0.0  ;;  %v887_v43 = vsel %vm556_vm0, %v9404_v36, 0.0  ;;  %v905_v33 = vsel %vm556_vm0, %v9416_v22, 0.0 }
  0xe0   :  { %v10536_v50 = vpop.xlane.xlu1 %651  ;;  %v10540_v54 = vpop.xlane.xlu0 %648 }
  0xe3   :  { %867 = vadd.xlane.f32.xlu1 %v866_v52  ;;  %864 = vadd.xlane.f32.xlu0 %v863_v53  ;;  %v9750_v52 = vld [vmem:[%s14156_s0 + $0x1c8] sm:$0xff]  }
  0xe4   :  { %v10545_v62 = vpop.xlane.xlu1 %657  ;;  %v10549_v4 = vpop.xlane.xlu0 %654 }
  0xe7   :  { %873 = vadd.xlane.f32.xlu1 %v872_v0  ;;  %870 = vadd.xlane.f32.xlu0 %v869_v3  ;;  %v9413_v0 = vunpack.c.h.bf16 %v9750_v52  ;;  %v9412_v3 = vunpack.c.l.bf16 %v9750_v52 }
  0xe8   :  { %v10554_v12 = vpop.xlane.xlu1 %663  ;;  %v10558_v18 = vpop.xlane.xlu0 %660 }
  0xe9   :  { %v902_v10 = vsel %vm556_vm0, %v9413_v0, 0.0 }
  0xeb   :  { %879 = vadd.xlane.f32.xlu1 %v878_v14  ;;  %876 = vadd.xlane.f32.xlu0 %v875_v17  ;;  %v899_v14 = vsel %vm556_vm0, %v9412_v3, 0.0  ;;  %v9754_v3 = vld [vmem:[%s14156_s0 + $0x1e8] sm:$0xff]  }
  0xec   :  { %v10563_v26 = vpop.xlane.xlu1 %669  ;;  %v10567_v32 = vpop.xlane.xlu0 %666  ;;  %v9429_v22 = vunpack.c.h.bf16 %v9754_v3 }
  0xee   :  { %v926_v38 = vsel %vm556_vm0, %v9429_v22, 0.0 }
  0xef   :  { %885 = vadd.xlane.f32.xlu1 %v884_v28  ;;  %882 = vadd.xlane.f32.xlu0 %v881_v29  ;;  %v908_v29 = vsel %vm556_vm0, %v9417_v19, 0.0 }
  0xf0   :  { %v10572_v39 = vpop.xlane.xlu1 %675  ;;  %v10576_v46 = vpop.xlane.xlu0 %672 }
  0xf3   :  { %891 = vadd.xlane.f32.xlu1 %v890_v42  ;;  %888 = vadd.xlane.f32.xlu0 %v887_v43  ;;  %v9420_v42 = vunpack.c.l.bf16 %v9752_v24  ;;  %v9753_v43 = vld [vmem:[%s14156_s0 + $0x1e0] sm:$0xff]   ;;  %v9428_v24 = vunpack.c.l.bf16 %v9754_v3 }
  0xf4   :  { %v10581_v53 = vpop.xlane.xlu1 %681  ;;  %v10585_v61 = vpop.xlane.xlu0 %678  ;;  %v9424_v0 = vunpack.c.l.bf16 %v9753_v43 }
  0xf5   :  { %v911_v52 = vsel %vm556_vm0, %v9420_v42, 0.0  ;;  %v923_v42 = vsel %vm556_vm0, %v9428_v24, 0.0 }
  0xf7   :  { %897 = vadd.xlane.f32.xlu1 %v896_v57  ;;  %894 = vadd.xlane.f32.xlu0 %v893_v58  ;;  %v9425_v58 = vunpack.c.h.bf16 %v9753_v43 }
  0xf8   :  { %v10590_v8 = vpop.xlane.xlu1 %687  ;;  %v10594_v17 = vpop.xlane.xlu0 %684 }
  0xfb   :  { %903 = vadd.xlane.f32.xlu1 %v902_v10  ;;  %900 = vadd.xlane.f32.xlu0 %v899_v14  ;;  %v920_v10 = vsel %vm556_vm0, %v9425_v58, 0.0  ;;  %v917_v14 = vsel %vm556_vm0, %v9424_v0, 0.0  ;;  %v9756_v58 = vld [vmem:[%s14156_s0 + $0x1f8] sm:$0xff]  }
  0xfc   :  { %v10599_v28 = vpop.xlane.xlu1 %693  ;;  %v10603_v36 = vpop.xlane.xlu0 %690  ;;  %v9437_v22 = vunpack.c.h.bf16 %v9756_v58  ;;  %v9436_v24 = vunpack.c.l.bf16 %v9756_v58  ;;  %v9758_v58 = vld [vmem:[%s14156_s0 + $0x208] sm:$0xff]  }
  0xfd   :  { %14350 = vst [vmem:[#allocation9_spill] sm:$0xff] %v10603_v36 }
  0xff   :  { %909 = vadd.xlane.f32.xlu1 %v908_v29  ;;  %906 = vadd.xlane.f32.xlu0 %v905_v33  ;;  %v9755_v29 = vld [vmem:[%s14156_s0 + $0x1f0] sm:$0xff]  }
 0x100   :  { %v10608_v47 = vpop.xlane.xlu1 %699  ;;  %v10612_v57 = vpop.xlane.xlu0 %696 }
 0x101   :  { %14351 = vst [vmem:[#allocation10_spill] sm:$0xff] %v10612_v57 }
 0x103   :  { %915 = vadd.xlane.f32.xlu1 %v914_v49  ;;  %912 = vadd.xlane.f32.xlu0 %v911_v52  ;;  %v9433_v49 = vunpack.c.h.bf16 %v9755_v29  ;;  %v9432_v52 = vunpack.c.l.bf16 %v9755_v29  ;;  %v9757_v29 = vld [vmem:[%s14156_s0 + $0x200] sm:$0xff]  }
 0x104   :  { %v10617_v7 = vpop.xlane.xlu1 %705  ;;  %v10621_v19 = vpop.xlane.xlu0 %702 }
 0x105   :  { %14352 = vst [vmem:[#allocation11_spill] sm:$0xff] %v10621_v19  ;;  %v932_v3 = vsel %vm556_vm0, %v9433_v49, 0.0  ;;  %v9441_v49 = vunpack.c.h.bf16 %v9757_v29 }
 0x107   :  { %921 = vadd.xlane.f32.xlu1 %v920_v10  ;;  %918 = vadd.xlane.f32.xlu0 %v917_v14  ;;  %v929_v10 = vsel %vm556_vm0, %v9432_v52, 0.0  ;;  %v9440_v52 = vunpack.c.l.bf16 %v9757_v29  ;;  %v9759_v29 = vld [vmem:[%s14156_s0 + $0x210] sm:$0xff]  }
 0x108   :  { %v10626_v33 = vpop.xlane.xlu1 %711  ;;  %v10630_v43 = vpop.xlane.xlu0 %708 }
 0x109   :  { %14353 = vst [vmem:[#allocation12_spill] sm:$0xff] %v10630_v43 }
 0x10b   :  { %927 = vadd.xlane.f32.xlu1 %v926_v38  ;;  %924 = vadd.xlane.f32.xlu0 %v923_v42  ;;  %v938_v38 = vsel %vm556_vm0, %v9437_v22, 0.0  ;;  %v935_v42 = vsel %vm556_vm0, %v9436_v24, 0.0  ;;  %v9445_v22 = vunpack.c.h.bf16 %v9758_v58  ;;  %v9444_v24 = vunpack.c.l.bf16 %v9758_v58  ;;  %v9760_v58 = vld [vmem:[%s14156_s0 + $0x218] sm:$0xff]  }
 0x10c   :  { %v10635_v0 = vpop.xlane.xlu1 %717  ;;  %v10639_v14 = vpop.xlane.xlu0 %714 }
 0x10d   :  { %14354 = vst [vmem:[#allocation13_spill] sm:$0xff] %v10639_v14 }
 0x10f   :  { %933 = vadd.xlane.f32.xlu1 %v932_v3  ;;  %930 = vadd.xlane.f32.xlu0 %v929_v10  ;;  %v944_v3 = vsel %vm556_vm0, %v9441_v49, 0.0  ;;  %v941_v10 = vsel %vm556_vm0, %v9440_v52, 0.0  ;;  %v9449_v49 = vunpack.c.h.bf16 %v9759_v29  ;;  %v9448_v52 = vunpack.c.l.bf16 %v9759_v29  ;;  %v9761_v29 = vld [vmem:[%s14156_s0 + $0x220] sm:$0xff]  }
 0x110   :  { %v10644_v43 = vpop.xlane.xlu1 %723  ;;  %v10648_v19 = vpop.xlane.xlu0 %720 }
 0x111   :  { %14355 = vst [vmem:[#allocation14_spill] sm:$0xff] %v10644_v43  ;;  %14356 = vst [vmem:[#allocation15_spill] sm:$0xff] %v10648_v19  ;;  %v10168_v43 = vmov 0  }
 0x112   :  { %9882 = vset.pattern.permute.xlu1 %v10168_v43  ;;  %9881 = vset.pattern.permute.xlu0 %v10168_v43  ;;  %v9796_v43 = vld [vmem:[%s14156_s0 + $0x338] sm:$0xff]  }
 0x113   :  { %939 = vadd.xlane.f32.xlu1 %v938_v38  ;;  %936 = vadd.xlane.f32.xlu0 %v935_v42  ;;  %v950_v38 = vsel %vm556_vm0, %v9445_v22, 0.0  ;;  %v947_v42 = vsel %vm556_vm0, %v9444_v24, 0.0  ;;  %v9453_v22 = vunpack.c.h.bf16 %v9760_v58  ;;  %v9452_v24 = vunpack.c.l.bf16 %v9760_v58  ;;  %v9762_v58 = vld [vmem:[%s14156_s0 + $0x228] sm:$0xff]  }
 0x114   :  { %v10653_v14 = vpop.xlane.xlu1 %729  ;;  %v10657_v57 = vpop.xlane.xlu0 %726 }
 0x115   :  { %14357 = vst [vmem:[#allocation16_spill] sm:$0xff] %v10653_v14  ;;  %14358 = vst [vmem:[#allocation17_spill] sm:$0xff] %v10657_v57 }
 0x117   :  { %945 = vadd.xlane.f32.xlu1 %v944_v3  ;;  %942 = vadd.xlane.f32.xlu0 %v941_v10  ;;  %v956_v3 = vsel %vm556_vm0, %v9449_v49, 0.0  ;;  %v953_v10 = vsel %vm556_vm0, %v9448_v52, 0.0  ;;  %v9457_v49 = vunpack.c.h.bf16 %v9761_v29  ;;  %v9456_v52 = vunpack.c.l.bf16 %v9761_v29  ;;  %v9763_v29 = vld [vmem:[%s14156_s0 + $0x230] sm:$0xff]  }
 0x118   :  { %v10662_v19 = vpop.xlane.xlu1 %735  ;;  %v10666_v14 = vpop.xlane.xlu0 %732 }
 0x119   :  { %14359 = vst [vmem:[#allocation18_spill] sm:$0xff] %v10662_v19  ;;  %14360 = vst [vmem:[#allocation19_spill] sm:$0xff] %v10666_v14 }
 0x11b   :  { %951 = vadd.xlane.f32.xlu1 %v950_v38  ;;  %948 = vadd.xlane.f32.xlu0 %v947_v42  ;;  %v962_v38 = vsel %vm556_vm0, %v9453_v22, 0.0  ;;  %v959_v42 = vsel %vm556_vm0, %v9452_v24, 0.0  ;;  %v9461_v22 = vunpack.c.h.bf16 %v9762_v58  ;;  %v9460_v24 = vunpack.c.l.bf16 %v9762_v58  ;;  %v9764_v58 = vld [vmem:[%s14156_s0 + $0x238] sm:$0xff]  }
 0x11c   :  { %v10671_v57 = vpop.xlane.xlu1 %741  ;;  %v10675_v19 = vpop.xlane.xlu0 %738 }
 0x11d   :  { %14361 = vst [vmem:[#allocation20_spill] sm:$0xff] %v10671_v57  ;;  %14362 = vst [vmem:[#allocation21_spill] sm:$0xff] %v10675_v19 }
 0x11f   :  { %957 = vadd.xlane.f32.xlu1 %v956_v3  ;;  %954 = vadd.xlane.f32.xlu0 %v953_v10  ;;  %v968_v3 = vsel %vm556_vm0, %v9457_v49, 0.0  ;;  %v965_v10 = vsel %vm556_vm0, %v9456_v52, 0.0  ;;  %v9465_v49 = vunpack.c.h.bf16 %v9763_v29  ;;  %v9464_v52 = vunpack.c.l.bf16 %v9763_v29  ;;  %v9765_v29 = vld [vmem:[%s14156_s0 + $0x240] sm:$0xff]  }
 0x120   :  { %v10680_v14 = vpop.xlane.xlu1 %747  ;;  %v10684_v57 = vpop.xlane.xlu0 %744 }
 0x121   :  { %14363 = vst [vmem:[#allocation22_spill] sm:$0xff] %v10680_v14  ;;  %14364 = vst [vmem:[#allocation23_spill] sm:$0xff] %v10684_v57 }
 0x123   :  { %963 = vadd.xlane.f32.xlu1 %v962_v38  ;;  %960 = vadd.xlane.f32.xlu0 %v959_v42  ;;  %v974_v38 = vsel %vm556_vm0, %v9461_v22, 0.0  ;;  %v971_v42 = vsel %vm556_vm0, %v9460_v24, 0.0  ;;  %v9469_v22 = vunpack.c.h.bf16 %v9764_v58  ;;  %v9468_v24 = vunpack.c.l.bf16 %v9764_v58  ;;  %v9766_v58 = vld [vmem:[%s14156_s0 + $0x248] sm:$0xff]  }
 0x124   :  { %v10689_v19 = vpop.xlane.xlu1 %753  ;;  %v10693_v14 = vpop.xlane.xlu0 %750 }
 0x125   :  { %14365 = vst [vmem:[#allocation24_spill] sm:$0xff] %v10689_v19  ;;  %14366 = vst [vmem:[#allocation25_spill] sm:$0xff] %v10693_v14 }
 0x127   :  { %969 = vadd.xlane.f32.xlu1 %v968_v3  ;;  %966 = vadd.xlane.f32.xlu0 %v965_v10  ;;  %v980_v3 = vsel %vm556_vm0, %v9465_v49, 0.0  ;;  %v977_v10 = vsel %vm556_vm0, %v9464_v52, 0.0  ;;  %v9473_v49 = vunpack.c.h.bf16 %v9765_v29  ;;  %v9472_v52 = vunpack.c.l.bf16 %v9765_v29  ;;  %v9767_v29 = vld [vmem:[%s14156_s0 + $0x250] sm:$0xff]  }
 0x128   :  { %v10698_v57 = vpop.xlane.xlu1 %759  ;;  %v10702_v19 = vpop.xlane.xlu0 %756 }
 0x129   :  { %14367 = vst [vmem:[#allocation26_spill] sm:$0xff] %v10698_v57  ;;  %14368 = vst [vmem:[#allocation27_spill] sm:$0xff] %v10702_v19 }
 0x12b   :  { %975 = vadd.xlane.f32.xlu1 %v974_v38  ;;  %972 = vadd.xlane.f32.xlu0 %v971_v42  ;;  %v986_v38 = vsel %vm556_vm0, %v9469_v22, 0.0  ;;  %v983_v42 = vsel %vm556_vm0, %v9468_v24, 0.0  ;;  %v9477_v22 = vunpack.c.h.bf16 %v9766_v58  ;;  %v9476_v24 = vunpack.c.l.bf16 %v9766_v58  ;;  %v9768_v58 = vld [vmem:[%s14156_s0 + $0x258] sm:$0xff]  }
 0x12c   :  { %v10707_v14 = vpop.xlane.xlu1 %765  ;;  %v10711_v57 = vpop.xlane.xlu0 %762 }
 0x12d   :  { %14369 = vst [vmem:[#allocation28_spill] sm:$0xff] %v10707_v14  ;;  %14370 = vst [vmem:[#allocation29_spill] sm:$0xff] %v10711_v57 }
 0x12f   :  { %981 = vadd.xlane.f32.xlu1 %v980_v3  ;;  %978 = vadd.xlane.f32.xlu0 %v977_v10  ;;  %v992_v3 = vsel %vm556_vm0, %v9473_v49, 0.0  ;;  %v989_v10 = vsel %vm556_vm0, %v9472_v52, 0.0  ;;  %v9481_v49 = vunpack.c.h.bf16 %v9767_v29  ;;  %v9480_v52 = vunpack.c.l.bf16 %v9767_v29  ;;  %v9769_v29 = vld [vmem:[%s14156_s0 + $0x260] sm:$0xff]  }
 0x130   :  { %v10716_v19 = vpop.xlane.xlu1 %771  ;;  %v10720_v14 = vpop.xlane.xlu0 %768 }
 0x131   :  { %14371 = vst [vmem:[#allocation30_spill] sm:$0xff] %v10716_v19  ;;  %14372 = vst [vmem:[#allocation31_spill] sm:$0xff] %v10720_v14 }
 0x133   :  { %987 = vadd.xlane.f32.xlu1 %v986_v38  ;;  %984 = vadd.xlane.f32.xlu0 %v983_v42  ;;  %v998_v38 = vsel %vm556_vm0, %v9477_v22, 0.0  ;;  %v995_v42 = vsel %vm556_vm0, %v9476_v24, 0.0  ;;  %v9485_v22 = vunpack.c.h.bf16 %v9768_v58  ;;  %v9484_v24 = vunpack.c.l.bf16 %v9768_v58  ;;  %v9770_v58 = vld [vmem:[%s14156_s0 + $0x268] sm:$0xff]  }
 0x134   :  { %v10725_v57 = vpop.xlane.xlu1 %777  ;;  %v10729_v19 = vpop.xlane.xlu0 %774 }
 0x135   :  { %14373 = vst [vmem:[#allocation32_spill] sm:$0xff] %v10725_v57  ;;  %14374 = vst [vmem:[#allocation33_spill] sm:$0xff] %v10729_v19 }
 0x137   :  { %993 = vadd.xlane.f32.xlu1 %v992_v3  ;;  %990 = vadd.xlane.f32.xlu0 %v989_v10  ;;  %v1004_v3 = vsel %vm556_vm0, %v9481_v49, 0.0  ;;  %v1001_v10 = vsel %vm556_vm0, %v9480_v52, 0.0  ;;  %v9489_v49 = vunpack.c.h.bf16 %v9769_v29  ;;  %v9488_v52 = vunpack.c.l.bf16 %v9769_v29  ;;  %v9771_v29 = vld [vmem:[%s14156_s0 + $0x270] sm:$0xff]  }
 0x138   :  { %v10734_v14 = vpop.xlane.xlu1 %783  ;;  %v10738_v57 = vpop.xlane.xlu0 %780 }
 0x139   :  { %14375 = vst [vmem:[#allocation34_spill] sm:$0xff] %v10734_v14  ;;  %14376 = vst [vmem:[#allocation35_spill] sm:$0xff] %v10738_v57 }
 0x13b   :  { %999 = vadd.xlane.f32.xlu1 %v998_v38  ;;  %996 = vadd.xlane.f32.xlu0 %v995_v42  ;;  %v1010_v38 = vsel %vm556_vm0, %v9485_v22, 0.0  ;;  %v1007_v42 = vsel %vm556_vm0, %v9484_v24, 0.0  ;;  %v9493_v22 = vunpack.c.h.bf16 %v9770_v58  ;;  %v9492_v24 = vunpack.c.l.bf16 %v9770_v58  ;;  %v9772_v58 = vld [vmem:[%s14156_s0 + $0x278] sm:$0xff]  }
 0x13c   :  { %v10743_v19 = vpop.xlane.xlu1 %789  ;;  %v10747_v14 = vpop.xlane.xlu0 %786 }
 0x13d   :  { %14377 = vst [vmem:[#allocation36_spill] sm:$0xff] %v10743_v19  ;;  %14378 = vst [vmem:[#allocation37_spill] sm:$0xff] %v10747_v14 }
 0x13f   :  { %1005 = vadd.xlane.f32.xlu1 %v1004_v3  ;;  %1002 = vadd.xlane.f32.xlu0 %v1001_v10  ;;  %v1016_v3 = vsel %vm556_vm0, %v9489_v49, 0.0  ;;  %v1013_v10 = vsel %vm556_vm0, %v9488_v52, 0.0  ;;  %v9497_v49 = vunpack.c.h.bf16 %v9771_v29  ;;  %v9496_v52 = vunpack.c.l.bf16 %v9771_v29  ;;  %v9773_v29 = vld [vmem:[%s14156_s0 + $0x280] sm:$0xff]  }
 0x140   :  { %v10752_v57 = vpop.xlane.xlu1 %795  ;;  %v10756_v19 = vpop.xlane.xlu0 %792 }
 0x141   :  { %14379 = vst [vmem:[#allocation38_spill] sm:$0xff] %v10752_v57  ;;  %14380 = vst [vmem:[#allocation39_spill] sm:$0xff] %v10756_v19 }
 0x143   :  { %1011 = vadd.xlane.f32.xlu1 %v1010_v38  ;;  %1008 = vadd.xlane.f32.xlu0 %v1007_v42  ;;  %v1022_v38 = vsel %vm556_vm0, %v9493_v22, 0.0  ;;  %v1019_v42 = vsel %vm556_vm0, %v9492_v24, 0.0  ;;  %v9501_v22 = vunpack.c.h.bf16 %v9772_v58  ;;  %v9500_v24 = vunpack.c.l.bf16 %v9772_v58  ;;  %v9774_v58 = vld [vmem:[%s14156_s0 + $0x288] sm:$0xff]  }
 0x144   :  { %v10761_v14 = vpop.xlane.xlu1 %801  ;;  %v10765_v57 = vpop.xlane.xlu0 %798 }
 0x145   :  { %14381 = vst [vmem:[#allocation40_spill] sm:$0xff] %v10761_v14  ;;  %14382 = vst [vmem:[#allocation41_spill] sm:$0xff] %v10765_v57 }
 0x147   :  { %1017 = vadd.xlane.f32.xlu1 %v1016_v3  ;;  %1014 = vadd.xlane.f32.xlu0 %v1013_v10  ;;  %v1028_v3 = vsel %vm556_vm0, %v9497_v49, 0.0  ;;  %v1025_v10 = vsel %vm556_vm0, %v9496_v52, 0.0  ;;  %v9505_v49 = vunpack.c.h.bf16 %v9773_v29  ;;  %v9504_v52 = vunpack.c.l.bf16 %v9773_v29  ;;  %v9775_v29 = vld [vmem:[%s14156_s0 + $0x290] sm:$0xff]  }
 0x148   :  { %v10770_v19 = vpop.xlane.xlu1 %807  ;;  %v10774_v14 = vpop.xlane.xlu0 %804 }
 0x149   :  { %14383 = vst [vmem:[#allocation42_spill] sm:$0xff] %v10770_v19  ;;  %14384 = vst [vmem:[#allocation43_spill] sm:$0xff] %v10774_v14 }
 0x14b   :  { %1023 = vadd.xlane.f32.xlu1 %v1022_v38  ;;  %1020 = vadd.xlane.f32.xlu0 %v1019_v42  ;;  %v1034_v38 = vsel %vm556_vm0, %v9501_v22, 0.0  ;;  %v1031_v42 = vsel %vm556_vm0, %v9500_v24, 0.0  ;;  %v9509_v22 = vunpack.c.h.bf16 %v9774_v58  ;;  %v9508_v24 = vunpack.c.l.bf16 %v9774_v58  ;;  %v9776_v58 = vld [vmem:[%s14156_s0 + $0x298] sm:$0xff]  }
 0x14c   :  { %v10779_v57 = vpop.xlane.xlu1 %813  ;;  %v10783_v19 = vpop.xlane.xlu0 %810 }
 0x14d   :  { %14385 = vst [vmem:[#allocation44_spill] sm:$0xff] %v10779_v57  ;;  %14386 = vst [vmem:[#allocation45_spill] sm:$0xff] %v10783_v19 }
 0x14f   :  { %1029 = vadd.xlane.f32.xlu1 %v1028_v3  ;;  %1026 = vadd.xlane.f32.xlu0 %v1025_v10  ;;  %v1040_v3 = vsel %vm556_vm0, %v9505_v49, 0.0  ;;  %v1037_v10 = vsel %vm556_vm0, %v9504_v52, 0.0  ;;  %v9513_v49 = vunpack.c.h.bf16 %v9775_v29  ;;  %v9512_v52 = vunpack.c.l.bf16 %v9775_v29  ;;  %v9777_v29 = vld [vmem:[%s14156_s0 + $0x2a0] sm:$0xff]  }
 0x150   :  { %v10788_v14 = vpop.xlane.xlu1 %819  ;;  %v10792_v57 = vpop.xlane.xlu0 %816 }
 0x151   :  { %14387 = vst [vmem:[#allocation46_spill] sm:$0xff] %v10788_v14  ;;  %14388 = vst [vmem:[#allocation47_spill] sm:$0xff] %v10792_v57 }
 0x153   :  { %1035 = vadd.xlane.f32.xlu1 %v1034_v38  ;;  %1032 = vadd.xlane.f32.xlu0 %v1031_v42  ;;  %v1046_v38 = vsel %vm556_vm0, %v9509_v22, 0.0  ;;  %v1043_v42 = vsel %vm556_vm0, %v9508_v24, 0.0  ;;  %v9517_v22 = vunpack.c.h.bf16 %v9776_v58  ;;  %v9516_v24 = vunpack.c.l.bf16 %v9776_v58  ;;  %v9778_v58 = vld [vmem:[%s14156_s0 + $0x2a8] sm:$0xff]  }
 0x154   :  { %v10797_v19 = vpop.xlane.xlu1 %825  ;;  %v10801_v14 = vpop.xlane.xlu0 %822 }
 0x155   :  { %14389 = vst [vmem:[#allocation48_spill] sm:$0xff] %v10797_v19  ;;  %14390 = vst [vmem:[#allocation49_spill] sm:$0xff] %v10801_v14 }
 0x157   :  { %1041 = vadd.xlane.f32.xlu1 %v1040_v3  ;;  %1038 = vadd.xlane.f32.xlu0 %v1037_v10  ;;  %v1052_v3 = vsel %vm556_vm0, %v9513_v49, 0.0  ;;  %v1049_v10 = vsel %vm556_vm0, %v9512_v52, 0.0  ;;  %v9521_v49 = vunpack.c.h.bf16 %v9777_v29  ;;  %v9520_v52 = vunpack.c.l.bf16 %v9777_v29  ;;  %v9779_v29 = vld [vmem:[%s14156_s0 + $0x2b0] sm:$0xff]  }
 0x158   :  { %v10806_v57 = vpop.xlane.xlu1 %831  ;;  %v10810_v19 = vpop.xlane.xlu0 %828 }
 0x159   :  { %14391 = vst [vmem:[#allocation50_spill] sm:$0xff] %v10806_v57  ;;  %14392 = vst [vmem:[#allocation51_spill] sm:$0xff] %v10810_v19 }
 0x15b   :  { %1047 = vadd.xlane.f32.xlu1 %v1046_v38  ;;  %1044 = vadd.xlane.f32.xlu0 %v1043_v42  ;;  %v1058_v38 = vsel %vm556_vm0, %v9517_v22, 0.0  ;;  %v1055_v42 = vsel %vm556_vm0, %v9516_v24, 0.0  ;;  %v9525_v22 = vunpack.c.h.bf16 %v9778_v58  ;;  %v9524_v24 = vunpack.c.l.bf16 %v9778_v58  ;;  %v9780_v58 = vld [vmem:[%s14156_s0 + $0x2b8] sm:$0xff]  }
 0x15c   :  { %v10815_v14 = vpop.xlane.xlu1 %837  ;;  %v10819_v57 = vpop.xlane.xlu0 %834 }
 0x15d   :  { %14393 = vst [vmem:[#allocation52_spill] sm:$0xff] %v10815_v14  ;;  %14394 = vst [vmem:[#allocation53_spill] sm:$0xff] %v10819_v57 }
 0x15f   :  { %1053 = vadd.xlane.f32.xlu1 %v1052_v3  ;;  %1050 = vadd.xlane.f32.xlu0 %v1049_v10  ;;  %v1064_v3 = vsel %vm556_vm0, %v9521_v49, 0.0  ;;  %v1061_v10 = vsel %vm556_vm0, %v9520_v52, 0.0  ;;  %v9529_v49 = vunpack.c.h.bf16 %v9779_v29  ;;  %v9528_v52 = vunpack.c.l.bf16 %v9779_v29  ;;  %v9781_v29 = vld [vmem:[%s14156_s0 + $0x2c0] sm:$0xff]  }
 0x160   :  { %v10824_v19 = vpop.xlane.xlu1 %843  ;;  %v10828_v14 = vpop.xlane.xlu0 %840 }
 0x161   :  { %14395 = vst [vmem:[#allocation54_spill] sm:$0xff] %v10824_v19  ;;  %14396 = vst [vmem:[#allocation55_spill] sm:$0xff] %v10828_v14 }
 0x163   :  { %1059 = vadd.xlane.f32.xlu1 %v1058_v38  ;;  %1056 = vadd.xlane.f32.xlu0 %v1055_v42  ;;  %v1070_v38 = vsel %vm556_vm0, %v9525_v22, 0.0  ;;  %v1067_v42 = vsel %vm556_vm0, %v9524_v24, 0.0  ;;  %v9533_v22 = vunpack.c.h.bf16 %v9780_v58  ;;  %v9532_v24 = vunpack.c.l.bf16 %v9780_v58  ;;  %v9782_v58 = vld [vmem:[%s14156_s0 + $0x2c8] sm:$0xff]  }
 0x164   :  { %v10833_v57 = vpop.xlane.xlu1 %849  ;;  %v10837_v19 = vpop.xlane.xlu0 %846 }
 0x165   :  { %14397 = vst [vmem:[#allocation56_spill] sm:$0xff] %v10833_v57  ;;  %14398 = vst [vmem:[#allocation57_spill] sm:$0xff] %v10837_v19 }
 0x167   :  { %1065 = vadd.xlane.f32.xlu1 %v1064_v3  ;;  %1062 = vadd.xlane.f32.xlu0 %v1061_v10  ;;  %v1076_v3 = vsel %vm556_vm0, %v9529_v49, 0.0  ;;  %v1073_v10 = vsel %vm556_vm0, %v9528_v52, 0.0  ;;  %v9537_v49 = vunpack.c.h.bf16 %v9781_v29  ;;  %v9536_v52 = vunpack.c.l.bf16 %v9781_v29  ;;  %v9783_v29 = vld [vmem:[%s14156_s0 + $0x2d0] sm:$0xff]  }
 0x168   :  { %v10842_v14 = vpop.xlane.xlu1 %855  ;;  %v10846_v57 = vpop.xlane.xlu0 %852 }
 0x169   :  { %14399 = vst [vmem:[#allocation58_spill] sm:$0xff] %v10842_v14  ;;  %14400 = vst [vmem:[#allocation59_spill] sm:$0xff] %v10846_v57 }
 0x16b   :  { %1071 = vadd.xlane.f32.xlu1 %v1070_v38  ;;  %1068 = vadd.xlane.f32.xlu0 %v1067_v42  ;;  %v1082_v38 = vsel %vm556_vm0, %v9533_v22, 0.0  ;;  %v1079_v42 = vsel %vm556_vm0, %v9532_v24, 0.0  ;;  %v9541_v22 = vunpack.c.h.bf16 %v9782_v58  ;;  %v9540_v24 = vunpack.c.l.bf16 %v9782_v58  ;;  %v9784_v58 = vld [vmem:[%s14156_s0 + $0x2d8] sm:$0xff]  }
 0x16c   :  { %v10851_v19 = vpop.xlane.xlu1 %861  ;;  %v10855_v14 = vpop.xlane.xlu0 %858 }
 0x16d   :  { %14401 = vst [vmem:[#allocation60_spill] sm:$0xff] %v10851_v19  ;;  %14402 = vst [vmem:[#allocation61_spill] sm:$0xff] %v10855_v14 }
 0x16f   :  { %1077 = vadd.xlane.f32.xlu1 %v1076_v3  ;;  %1074 = vadd.xlane.f32.xlu0 %v1073_v10  ;;  %v1088_v3 = vsel %vm556_vm0, %v9537_v49, 0.0  ;;  %v1085_v10 = vsel %vm556_vm0, %v9536_v52, 0.0  ;;  %v9545_v49 = vunpack.c.h.bf16 %v9783_v29  ;;  %v9544_v52 = vunpack.c.l.bf16 %v9783_v29  ;;  %v9785_v29 = vld [vmem:[%s14156_s0 + $0x2e0] sm:$0xff]  }
 0x170   :  { %v10860_v57 = vpop.xlane.xlu1 %867  ;;  %v10864_v19 = vpop.xlane.xlu0 %864 }
 0x171   :  { %14403 = vst [vmem:[#allocation62_spill] sm:$0xff] %v10860_v57  ;;  %14404 = vst [vmem:[#allocation63_spill] sm:$0xff] %v10864_v19 }
 0x173   :  { %1083 = vadd.xlane.f32.xlu1 %v1082_v38  ;;  %1080 = vadd.xlane.f32.xlu0 %v1079_v42  ;;  %v1094_v38 = vsel %vm556_vm0, %v9541_v22, 0.0  ;;  %v1091_v42 = vsel %vm556_vm0, %v9540_v24, 0.0  ;;  %v9549_v22 = vunpack.c.h.bf16 %v9784_v58  ;;  %v9548_v24 = vunpack.c.l.bf16 %v9784_v58  ;;  %v9786_v58 = vld [vmem:[%s14156_s0 + $0x2e8] sm:$0xff]  }
 0x174   :  { %v10869_v14 = vpop.xlane.xlu1 %873  ;;  %v10873_v57 = vpop.xlane.xlu0 %870 }
 0x175   :  { %14405 = vst [vmem:[#allocation64_spill] sm:$0xff] %v10869_v14  ;;  %14406 = vst [vmem:[#allocation65_spill] sm:$0xff] %v10873_v57 }
 0x177   :  { %1089 = vadd.xlane.f32.xlu1 %v1088_v3  ;;  %1086 = vadd.xlane.f32.xlu0 %v1085_v10  ;;  %v1100_v3 = vsel %vm556_vm0, %v9545_v49, 0.0  ;;  %v1097_v10 = vsel %vm556_vm0, %v9544_v52, 0.0  ;;  %v9553_v49 = vunpack.c.h.bf16 %v9785_v29  ;;  %v9552_v52 = vunpack.c.l.bf16 %v9785_v29  ;;  %v9787_v29 = vld [vmem:[%s14156_s0 + $0x2f0] sm:$0xff]  }
 0x178   :  { %v10878_v19 = vpop.xlane.xlu1 %879  ;;  %v10882_v14 = vpop.xlane.xlu0 %876 }
 0x179   :  { %14407 = vst [vmem:[#allocation66_spill] sm:$0xff] %v10878_v19  ;;  %14408 = vst [vmem:[#allocation67_spill] sm:$0xff] %v10882_v14 }
 0x17b   :  { %1095 = vadd.xlane.f32.xlu1 %v1094_v38  ;;  %1092 = vadd.xlane.f32.xlu0 %v1091_v42  ;;  %v1106_v38 = vsel %vm556_vm0, %v9549_v22, 0.0  ;;  %v1103_v42 = vsel %vm556_vm0, %v9548_v24, 0.0  ;;  %v9557_v22 = vunpack.c.h.bf16 %v9786_v58  ;;  %v9556_v24 = vunpack.c.l.bf16 %v9786_v58  ;;  %v9788_v58 = vld [vmem:[%s14156_s0 + $0x2f8] sm:$0xff]  }
 0x17c   :  { %v10887_v57 = vpop.xlane.xlu1 %885  ;;  %v10891_v19 = vpop.xlane.xlu0 %882 }
 0x17d   :  { %14409 = vst [vmem:[#allocation68_spill] sm:$0xff] %v10887_v57  ;;  %14410 = vst [vmem:[#allocation69_spill] sm:$0xff] %v10891_v19 }
 0x17f   :  { %1101 = vadd.xlane.f32.xlu1 %v1100_v3  ;;  %1098 = vadd.xlane.f32.xlu0 %v1097_v10  ;;  %v1112_v3 = vsel %vm556_vm0, %v9553_v49, 0.0  ;;  %v1109_v10 = vsel %vm556_vm0, %v9552_v52, 0.0  ;;  %v9561_v49 = vunpack.c.h.bf16 %v9787_v29  ;;  %v9560_v52 = vunpack.c.l.bf16 %v9787_v29  ;;  %v9789_v29 = vld [vmem:[%s14156_s0 + $0x300] sm:$0xff]  }
 0x180   :  { %v10896_v14 = vpop.xlane.xlu1 %891  ;;  %v10900_v57 = vpop.xlane.xlu0 %888 }
 0x181   :  { %14411 = vst [vmem:[#allocation70_spill] sm:$0xff] %v10896_v14  ;;  %14412 = vst [vmem:[#allocation71_spill] sm:$0xff] %v10900_v57 }
 0x183   :  { %1107 = vadd.xlane.f32.xlu1 %v1106_v38  ;;  %1104 = vadd.xlane.f32.xlu0 %v1103_v42  ;;  %v1118_v38 = vsel %vm556_vm0, %v9557_v22, 0.0  ;;  %v1115_v42 = vsel %vm556_vm0, %v9556_v24, 0.0  ;;  %v9565_v22 = vunpack.c.h.bf16 %v9788_v58  ;;  %v9564_v24 = vunpack.c.l.bf16 %v9788_v58  ;;  %v9790_v58 = vld [vmem:[%s14156_s0 + $0x308] sm:$0xff]  }
 0x184   :  { %v10905_v19 = vpop.xlane.xlu1 %897  ;;  %v10909_v14 = vpop.xlane.xlu0 %894 }
 0x185   :  { %14413 = vst [vmem:[#allocation72_spill] sm:$0xff] %v10905_v19  ;;  %14414 = vst [vmem:[#allocation73_spill] sm:$0xff] %v10909_v14 }
 0x187   :  { %1113 = vadd.xlane.f32.xlu1 %v1112_v3  ;;  %1110 = vadd.xlane.f32.xlu0 %v1109_v10  ;;  %v1124_v3 = vsel %vm556_vm0, %v9561_v49, 0.0  ;;  %v1121_v10 = vsel %vm556_vm0, %v9560_v52, 0.0  ;;  %v9569_v49 = vunpack.c.h.bf16 %v9789_v29  ;;  %v9568_v52 = vunpack.c.l.bf16 %v9789_v29  ;;  %v9791_v29 = vld [vmem:[%s14156_s0 + $0x310] sm:$0xff]  }
 0x188   :  { %v10914_v57 = vpop.xlane.xlu1 %903  ;;  %v10918_v19 = vpop.xlane.xlu0 %900 }
 0x189   :  { %14415 = vst [vmem:[#allocation74_spill] sm:$0xff] %v10914_v57  ;;  %14416 = vst [vmem:[#allocation75_spill] sm:$0xff] %v10918_v19 }
 0x18b   :  { %1119 = vadd.xlane.f32.xlu1 %v1118_v38  ;;  %1116 = vadd.xlane.f32.xlu0 %v1115_v42  ;;  %v1130_v38 = vsel %vm556_vm0, %v9565_v22, 0.0  ;;  %v1127_v42 = vsel %vm556_vm0, %v9564_v24, 0.0  ;;  %v9573_v22 = vunpack.c.h.bf16 %v9790_v58  ;;  %v9572_v24 = vunpack.c.l.bf16 %v9790_v58  ;;  %v9792_v58 = vld [vmem:[%s14156_s0 + $0x318] sm:$0xff]  }
 0x18c   :  { %v10923_v14 = vpop.xlane.xlu1 %909  ;;  %v10927_v57 = vpop.xlane.xlu0 %906 }
 0x18d   :  { %14417 = vst [vmem:[#allocation76_spill] sm:$0xff] %v10923_v14  ;;  %14418 = vst [vmem:[#allocation77_spill] sm:$0xff] %v10927_v57 }
 0x18f   :  { %1125 = vadd.xlane.f32.xlu1 %v1124_v3  ;;  %1122 = vadd.xlane.f32.xlu0 %v1121_v10  ;;  %v1136_v3 = vsel %vm556_vm0, %v9569_v49, 0.0  ;;  %v1133_v10 = vsel %vm556_vm0, %v9568_v52, 0.0  ;;  %v9577_v49 = vunpack.c.h.bf16 %v9791_v29  ;;  %v9576_v52 = vunpack.c.l.bf16 %v9791_v29  ;;  %v9793_v29 = vld [vmem:[%s14156_s0 + $0x320] sm:$0xff]  }
 0x190   :  { %v10932_v19 = vpop.xlane.xlu1 %915  ;;  %v10936_v14 = vpop.xlane.xlu0 %912 }
 0x191   :  { %14419 = vst [vmem:[#allocation78_spill] sm:$0xff] %v10932_v19  ;;  %14420 = vst [vmem:[#allocation79_spill] sm:$0xff] %v10936_v14 }
 0x193   :  { %1131 = vadd.xlane.f32.xlu1 %v1130_v38  ;;  %1128 = vadd.xlane.f32.xlu0 %v1127_v42  ;;  %v1142_v38 = vsel %vm556_vm0, %v9573_v22, 0.0  ;;  %v1139_v42 = vsel %vm556_vm0, %v9572_v24, 0.0  ;;  %v9581_v22 = vunpack.c.h.bf16 %v9792_v58  ;;  %v9580_v24 = vunpack.c.l.bf16 %v9792_v58  ;;  %v9794_v58 = vld [vmem:[%s14156_s0 + $0x328] sm:$0xff]  }
 0x194   :  { %v10941_v57 = vpop.xlane.xlu1 %921  ;;  %v10945_v19 = vpop.xlane.xlu0 %918 }
 0x195   :  { %14421 = vst [vmem:[#allocation80_spill] sm:$0xff] %v10941_v57  ;;  %14422 = vst [vmem:[#allocation81_spill] sm:$0xff] %v10945_v19 }
 0x197   :  { %1137 = vadd.xlane.f32.xlu1 %v1136_v3  ;;  %1134 = vadd.xlane.f32.xlu0 %v1133_v10  ;;  %v1148_v3 = vsel %vm556_vm0, %v9577_v49, 0.0  ;;  %v1145_v10 = vsel %vm556_vm0, %v9576_v52, 0.0  ;;  %v9585_v49 = vunpack.c.h.bf16 %v9793_v29  ;;  %v9584_v52 = vunpack.c.l.bf16 %v9793_v29  ;;  %v9795_v29 = vld [vmem:[%s14156_s0 + $0x330] sm:$0xff]  }
 0x198   :  { %v10950_v14 = vpop.xlane.xlu1 %927  ;;  %v10954_v57 = vpop.xlane.xlu0 %924 }
 0x199   :  { %14423 = vst [vmem:[#allocation82_spill] sm:$0xff] %v10950_v14  ;;  %14424 = vst [vmem:[#allocation83_spill] sm:$0xff] %v10954_v57 }
 0x19b   :  { %1143 = vadd.xlane.f32.xlu1 %v1142_v38  ;;  %1140 = vadd.xlane.f32.xlu0 %v1139_v42  ;;  %v1154_v38 = vsel %vm556_vm0, %v9581_v22, 0.0  ;;  %v1151_v42 = vsel %vm556_vm0, %v9580_v24, 0.0  ;;  %v9589_v22 = vunpack.c.h.bf16 %v9794_v58  ;;  %v9588_v24 = vunpack.c.l.bf16 %v9794_v58 }
 0x19c   :  { %v10959_v19 = vpop.xlane.xlu1 %933  ;;  %v10963_v14 = vpop.xlane.xlu0 %930 }
 0x19d   :  { %14425 = vst [vmem:[#allocation84_spill] sm:$0xff] %v10959_v19  ;;  %14426 = vst [vmem:[#allocation85_spill] sm:$0xff] %v10963_v14 }
 0x19f   :  { %1149 = vadd.xlane.f32.xlu1 %v1148_v3  ;;  %1146 = vadd.xlane.f32.xlu0 %v1145_v10  ;;  %v1160_v3 = vsel %vm556_vm0, %v9585_v49, 0.0  ;;  %v1157_v10 = vsel %vm556_vm0, %v9584_v52, 0.0  ;;  %v1163_v49 = vsel %vm556_vm0, %v9588_v24, 0.0  ;;  %v9596_v24 = vunpack.c.l.bf16 %v9796_v43 }
 0x1a0   :  { %v10968_v57 = vpop.xlane.xlu1 %939  ;;  %v10972_v19 = vpop.xlane.xlu0 %936 }
 0x1a1   :  { %14427 = vst [vmem:[#allocation86_spill] sm:$0xff] %v10968_v57  ;;  %14428 = vst [vmem:[#allocation87_spill] sm:$0xff] %v10972_v19  ;;  %v9593_v19 = vunpack.c.h.bf16 %v9795_v29 }
 0x1a3   :  { %1155 = vadd.xlane.f32.xlu1 %v1154_v38  ;;  %1152 = vadd.xlane.f32.xlu0 %v1151_v42  ;;  %v1166_v42 = vsel %vm556_vm0, %v9589_v22, 0.0  ;;  %v9597_v22 = vunpack.c.h.bf16 %v9796_v43  ;;  %v9798_v43 = vld [vmem:[%s14156_s0 + $0x348] sm:$0xff]  }
 0x1a4   :  { %v10977_v14 = vpop.xlane.xlu1 %945  ;;  %v10981_v57 = vpop.xlane.xlu0 %942 }
 0x1a5   :  { %14429 = vst [vmem:[#allocation88_spill] sm:$0xff] %v10977_v14  ;;  %14430 = vst [vmem:[#allocation89_spill] sm:$0xff] %v10981_v57  ;;  %v9592_v57 = vunpack.c.l.bf16 %v9795_v29  ;;  %v9797_v29 = vld [vmem:[%s14156_s0 + $0x340] sm:$0xff]  }
 0x1a7   :  { %1161 = vadd.xlane.f32.xlu1 %v1160_v3  ;;  %1158 = vadd.xlane.f32.xlu0 %v1157_v10  ;;  %v1172_v3 = vsel %vm556_vm0, %v9593_v19, 0.0  ;;  %v1169_v10 = vsel %vm556_vm0, %v9592_v57, 0.0  ;;  %v9601_v19 = vunpack.c.h.bf16 %v9797_v29  ;;  %v9600_v57 = vunpack.c.l.bf16 %v9797_v29  ;;  %v9799_v29 = vld [vmem:[%s14156_s0 + $0x350] sm:$0xff]  }
 0x1a8   :  { %v10986_v38 = vpop.xlane.xlu1 %951  ;;  %v10990_v52 = vpop.xlane.xlu0 %948 }
 0x1a9   :  { %14431 = vst [vmem:[#allocation90_spill] sm:$0xff] %v10986_v38  ;;  %14432 = vst [vmem:[#allocation91_spill] sm:$0xff] %v10990_v52 }
 0x1ab   :  { %1167 = vadd.xlane.f32.xlu1 %v1166_v42  ;;  %1164 = vadd.xlane.f32.xlu0 %v1163_v49  ;;  %v1178_v42 = vsel %vm556_vm0, %v9597_v22, 0.0  ;;  %v1175_v49 = vsel %vm556_vm0, %v9596_v24, 0.0  ;;  %v9605_v22 = vunpack.c.h.bf16 %v9798_v43  ;;  %v9604_v24 = vunpack.c.l.bf16 %v9798_v43  ;;  %v9800_v43 = vld [vmem:[%s14156_s0 + $0x358] sm:$0xff]  }
 0x1ac   :  { %v10995_v58 = vpop.xlane.xlu1 %957  ;;  %v10999_v38 = vpop.xlane.xlu0 %954 }
 0x1ad   :  { %14433 = vst [vmem:[#allocation92_spill] sm:$0xff] %v10995_v58  ;;  %14434 = vst [vmem:[#allocation93_spill] sm:$0xff] %v10999_v38 }
 0x1af   :  { %1173 = vadd.xlane.f32.xlu1 %v1172_v3  ;;  %1170 = vadd.xlane.f32.xlu0 %v1169_v10  ;;  %v1184_v3 = vsel %vm556_vm0, %v9601_v19, 0.0  ;;  %v1181_v10 = vsel %vm556_vm0, %v9600_v57, 0.0  ;;  %v9609_v19 = vunpack.c.h.bf16 %v9799_v29  ;;  %v9608_v57 = vunpack.c.l.bf16 %v9799_v29  ;;  %v9801_v29 = vld [vmem:[%s14156_s0 + $0x360] sm:$0xff]  }
 0x1b0   :  { %v11004_v52 = vpop.xlane.xlu1 %963  ;;  %v11008_v58 = vpop.xlane.xlu0 %960 }
 0x1b1   :  { %14435 = vst [vmem:[#allocation94_spill] sm:$0xff] %v11004_v52  ;;  %14436 = vst [vmem:[#allocation95_spill] sm:$0xff] %v11008_v58 }
 0x1b3   :  { %1179 = vadd.xlane.f32.xlu1 %v1178_v42  ;;  %1176 = vadd.xlane.f32.xlu0 %v1175_v49  ;;  %v1190_v42 = vsel %vm556_vm0, %v9605_v22, 0.0  ;;  %v1187_v49 = vsel %vm556_vm0, %v9604_v24, 0.0  ;;  %v9613_v22 = vunpack.c.h.bf16 %v9800_v43  ;;  %v9612_v24 = vunpack.c.l.bf16 %v9800_v43  ;;  %v9802_v43 = vld [vmem:[%s14156_s0 + $0x368] sm:$0xff]  }
 0x1b4   :  { %v11013_v38 = vpop.xlane.xlu1 %969  ;;  %v11017_v52 = vpop.xlane.xlu0 %966 }
 0x1b5   :  { %14437 = vst [vmem:[#allocation96_spill] sm:$0xff] %v11013_v38  ;;  %14438 = vst [vmem:[#allocation97_spill] sm:$0xff] %v11017_v52 }
 0x1b7   :  { %1185 = vadd.xlane.f32.xlu1 %v1184_v3  ;;  %1182 = vadd.xlane.f32.xlu0 %v1181_v10  ;;  %v1196_v3 = vsel %vm556_vm0, %v9609_v19, 0.0  ;;  %v1193_v10 = vsel %vm556_vm0, %v9608_v57, 0.0  ;;  %v9617_v19 = vunpack.c.h.bf16 %v9801_v29  ;;  %v9616_v57 = vunpack.c.l.bf16 %v9801_v29  ;;  %v9803_v29 = vld [vmem:[%s14156_s0 + $0x370] sm:$0xff]  }
 0x1b8   :  { %v11022_v58 = vpop.xlane.xlu1 %975  ;;  %v11026_v38 = vpop.xlane.xlu0 %972 }
 0x1b9   :  { %14439 = vst [vmem:[#allocation98_spill] sm:$0xff] %v11022_v58  ;;  %14440 = vst [vmem:[#allocation99_spill] sm:$0xff] %v11026_v38 }
 0x1bb   :  { %1191 = vadd.xlane.f32.xlu1 %v1190_v42  ;;  %1188 = vadd.xlane.f32.xlu0 %v1187_v49  ;;  %v1202_v42 = vsel %vm556_vm0, %v9613_v22, 0.0  ;;  %v1199_v49 = vsel %vm556_vm0, %v9612_v24, 0.0  ;;  %v9621_v22 = vunpack.c.h.bf16 %v9802_v43  ;;  %v9620_v24 = vunpack.c.l.bf16 %v9802_v43  ;;  %v9804_v43 = vld [vmem:[%s14156_s0 + $0x378] sm:$0xff]  }
 0x1bc   :  { %v11031_v52 = vpop.xlane.xlu1 %981  ;;  %v11035_v58 = vpop.xlane.xlu0 %978 }
 0x1bd   :  { %14441 = vst [vmem:[#allocation100_spill] sm:$0xff] %v11031_v52  ;;  %14442 = vst [vmem:[#allocation101_spill] sm:$0xff] %v11035_v58 }
 0x1bf   :  { %1197 = vadd.xlane.f32.xlu1 %v1196_v3  ;;  %1194 = vadd.xlane.f32.xlu0 %v1193_v10  ;;  %v1208_v3 = vsel %vm556_vm0, %v9617_v19, 0.0  ;;  %v1205_v10 = vsel %vm556_vm0, %v9616_v57, 0.0  ;;  %v9625_v19 = vunpack.c.h.bf16 %v9803_v29  ;;  %v9624_v57 = vunpack.c.l.bf16 %v9803_v29  ;;  %v9805_v29 = vld [vmem:[%s14156_s0 + $0x380] sm:$0xff]  }
 0x1c0   :  { %v11040_v38 = vpop.xlane.xlu1 %987  ;;  %v11044_v52 = vpop.xlane.xlu0 %984 }
 0x1c1   :  { %14443 = vst [vmem:[#allocation102_spill] sm:$0xff] %v11040_v38  ;;  %14444 = vst [vmem:[#allocation103_spill] sm:$0xff] %v11044_v52 }
 0x1c3   :  { %1203 = vadd.xlane.f32.xlu1 %v1202_v42  ;;  %1200 = vadd.xlane.f32.xlu0 %v1199_v49  ;;  %v1214_v42 = vsel %vm556_vm0, %v9621_v22, 0.0  ;;  %v1211_v49 = vsel %vm556_vm0, %v9620_v24, 0.0  ;;  %v9629_v22 = vunpack.c.h.bf16 %v9804_v43  ;;  %v9628_v24 = vunpack.c.l.bf16 %v9804_v43  ;;  %v9806_v43 = vld [vmem:[%s14156_s0 + $0x388] sm:$0xff]  }
 0x1c4   :  { %v11049_v58 = vpop.xlane.xlu1 %993  ;;  %v11053_v38 = vpop.xlane.xlu0 %990 }
 0x1c5   :  { %14445 = vst [vmem:[#allocation104_spill] sm:$0xff] %v11049_v58  ;;  %14446 = vst [vmem:[#allocation105_spill] sm:$0xff] %v11053_v38 }
 0x1c7   :  { %1209 = vadd.xlane.f32.xlu1 %v1208_v3  ;;  %1206 = vadd.xlane.f32.xlu0 %v1205_v10  ;;  %v1220_v3 = vsel %vm556_vm0, %v9625_v19, 0.0  ;;  %v1217_v10 = vsel %vm556_vm0, %v9624_v57, 0.0  ;;  %v9633_v19 = vunpack.c.h.bf16 %v9805_v29  ;;  %v9632_v57 = vunpack.c.l.bf16 %v9805_v29  ;;  %v9807_v29 = vld [vmem:[%s14156_s0 + $0x390] sm:$0xff]  }
 0x1c8   :  { %v11058_v52 = vpop.xlane.xlu1 %999  ;;  %v11062_v58 = vpop.xlane.xlu0 %996 }
 0x1c9   :  { %14447 = vst [vmem:[#allocation106_spill] sm:$0xff] %v11058_v52  ;;  %14448 = vst [vmem:[#allocation107_spill] sm:$0xff] %v11062_v58 }
 0x1cb   :  { %1215 = vadd.xlane.f32.xlu1 %v1214_v42  ;;  %1212 = vadd.xlane.f32.xlu0 %v1211_v49  ;;  %v1226_v42 = vsel %vm556_vm0, %v9629_v22, 0.0  ;;  %v1223_v49 = vsel %vm556_vm0, %v9628_v24, 0.0  ;;  %v9637_v22 = vunpack.c.h.bf16 %v9806_v43  ;;  %v9636_v24 = vunpack.c.l.bf16 %v9806_v43  ;;  %v9808_v43 = vld [vmem:[%s14156_s0 + $0x398] sm:$0xff]  }
 0x1cc   :  { %v11067_v38 = vpop.xlane.xlu1 %1005  ;;  %v11071_v52 = vpop.xlane.xlu0 %1002 }
 0x1cd   :  { %14449 = vst [vmem:[#allocation108_spill] sm:$0xff] %v11067_v38  ;;  %14450 = vst [vmem:[#allocation109_spill] sm:$0xff] %v11071_v52 }
 0x1cf   :  { %1221 = vadd.xlane.f32.xlu1 %v1220_v3  ;;  %1218 = vadd.xlane.f32.xlu0 %v1217_v10  ;;  %v1232_v3 = vsel %vm556_vm0, %v9633_v19, 0.0  ;;  %v1229_v10 = vsel %vm556_vm0, %v9632_v57, 0.0  ;;  %v9641_v19 = vunpack.c.h.bf16 %v9807_v29  ;;  %v9640_v57 = vunpack.c.l.bf16 %v9807_v29  ;;  %v9809_v29 = vld [vmem:[%s14156_s0 + $0x3a0] sm:$0xff]  }
 0x1d0   :  { %v11076_v58 = vpop.xlane.xlu1 %1011  ;;  %v11080_v38 = vpop.xlane.xlu0 %1008 }
 0x1d1   :  { %14451 = vst [vmem:[#allocation110_spill] sm:$0xff] %v11076_v58  ;;  %14452 = vst [vmem:[#allocation111_spill] sm:$0xff] %v11080_v38 }
 0x1d3   :  { %1227 = vadd.xlane.f32.xlu1 %v1226_v42  ;;  %1224 = vadd.xlane.f32.xlu0 %v1223_v49  ;;  %v1238_v42 = vsel %vm556_vm0, %v9637_v22, 0.0  ;;  %v1235_v49 = vsel %vm556_vm0, %v9636_v24, 0.0  ;;  %v9645_v22 = vunpack.c.h.bf16 %v9808_v43  ;;  %v9644_v24 = vunpack.c.l.bf16 %v9808_v43  ;;  %v9810_v43 = vld [vmem:[%s14156_s0 + $0x3a8] sm:$0xff]  }
 0x1d4   :  { %v11085_v52 = vpop.xlane.xlu1 %1017  ;;  %v11089_v58 = vpop.xlane.xlu0 %1014 }
 0x1d5   :  { %14453 = vst [vmem:[#allocation112_spill] sm:$0xff] %v11085_v52  ;;  %14454 = vst [vmem:[#allocation113_spill] sm:$0xff] %v11089_v58 }
 0x1d7   :  { %1233 = vadd.xlane.f32.xlu1 %v1232_v3  ;;  %1230 = vadd.xlane.f32.xlu0 %v1229_v10  ;;  %v1244_v3 = vsel %vm556_vm0, %v9641_v19, 0.0  ;;  %v1241_v10 = vsel %vm556_vm0, %v9640_v57, 0.0  ;;  %v9649_v19 = vunpack.c.h.bf16 %v9809_v29  ;;  %v9648_v57 = vunpack.c.l.bf16 %v9809_v29  ;;  %v9811_v29 = vld [vmem:[%s14156_s0 + $0x3b0] sm:$0xff]  }
 0x1d8   :  { %v11094_v38 = vpop.xlane.xlu1 %1023  ;;  %v11098_v52 = vpop.xlane.xlu0 %1020 }
 0x1d9   :  { %14455 = vst [vmem:[#allocation114_spill] sm:$0xff] %v11094_v38  ;;  %14456 = vst [vmem:[#allocation115_spill] sm:$0xff] %v11098_v52 }
 0x1db   :  { %1239 = vadd.xlane.f32.xlu1 %v1238_v42  ;;  %1236 = vadd.xlane.f32.xlu0 %v1235_v49  ;;  %v1250_v42 = vsel %vm556_vm0, %v9645_v22, 0.0  ;;  %v1247_v49 = vsel %vm556_vm0, %v9644_v24, 0.0  ;;  %v9653_v22 = vunpack.c.h.bf16 %v9810_v43  ;;  %v9652_v24 = vunpack.c.l.bf16 %v9810_v43  ;;  %v9812_v43 = vld [vmem:[%s14156_s0 + $0x3b8] sm:$0xff]  }
 0x1dc   :  { %v11103_v58 = vpop.xlane.xlu1 %1029  ;;  %v11107_v38 = vpop.xlane.xlu0 %1026 }
 0x1dd   :  { %14457 = vst [vmem:[#allocation116_spill] sm:$0xff] %v11103_v58  ;;  %14458 = vst [vmem:[#allocation117_spill] sm:$0xff] %v11107_v38 }
 0x1df   :  { %1245 = vadd.xlane.f32.xlu1 %v1244_v3  ;;  %1242 = vadd.xlane.f32.xlu0 %v1241_v10  ;;  %v1256_v3 = vsel %vm556_vm0, %v9649_v19, 0.0  ;;  %v1253_v10 = vsel %vm556_vm0, %v9648_v57, 0.0  ;;  %v9657_v19 = vunpack.c.h.bf16 %v9811_v29  ;;  %v9656_v57 = vunpack.c.l.bf16 %v9811_v29  ;;  %v9813_v29 = vld [vmem:[%s14156_s0 + $0x3c0] sm:$0xff]  }
 0x1e0   :  { %v11112_v52 = vpop.xlane.xlu1 %1035  ;;  %v11116_v58 = vpop.xlane.xlu0 %1032 }
 0x1e1   :  { %14459 = vst [vmem:[#allocation118_spill] sm:$0xff] %v11112_v52  ;;  %14460 = vst [vmem:[#allocation119_spill] sm:$0xff] %v11116_v58 }
 0x1e3   :  { %1251 = vadd.xlane.f32.xlu1 %v1250_v42  ;;  %1248 = vadd.xlane.f32.xlu0 %v1247_v49  ;;  %v1262_v42 = vsel %vm556_vm0, %v9653_v22, 0.0  ;;  %v1259_v49 = vsel %vm556_vm0, %v9652_v24, 0.0  ;;  %v9661_v22 = vunpack.c.h.bf16 %v9812_v43  ;;  %v9660_v24 = vunpack.c.l.bf16 %v9812_v43  ;;  %v9814_v43 = vld [vmem:[%s14156_s0 + $0x3c8] sm:$0xff]  }
 0x1e4   :  { %v11121_v38 = vpop.xlane.xlu1 %1041  ;;  %v11125_v52 = vpop.xlane.xlu0 %1038 }
 0x1e5   :  { %14461 = vst [vmem:[#allocation120_spill] sm:$0xff] %v11121_v38  ;;  %14462 = vst [vmem:[#allocation121_spill] sm:$0xff] %v11125_v52 }
 0x1e7   :  { %1257 = vadd.xlane.f32.xlu1 %v1256_v3  ;;  %1254 = vadd.xlane.f32.xlu0 %v1253_v10  ;;  %v1268_v3 = vsel %vm556_vm0, %v9657_v19, 0.0  ;;  %v1265_v10 = vsel %vm556_vm0, %v9656_v57, 0.0  ;;  %v9665_v19 = vunpack.c.h.bf16 %v9813_v29  ;;  %v9664_v57 = vunpack.c.l.bf16 %v9813_v29  ;;  %v9815_v29 = vld [vmem:[%s14156_s0 + $0x3d0] sm:$0xff]  }
 0x1e8   :  { %v11130_v58 = vpop.xlane.xlu1 %1047  ;;  %v11134_v38 = vpop.xlane.xlu0 %1044 }
 0x1e9   :  { %14463 = vst [vmem:[#allocation122_spill] sm:$0xff] %v11130_v58  ;;  %14464 = vst [vmem:[#allocation123_spill] sm:$0xff] %v11134_v38 }
 0x1eb   :  { %1263 = vadd.xlane.f32.xlu1 %v1262_v42  ;;  %1260 = vadd.xlane.f32.xlu0 %v1259_v49  ;;  %v1274_v42 = vsel %vm556_vm0, %v9661_v22, 0.0  ;;  %v1271_v49 = vsel %vm556_vm0, %v9660_v24, 0.0  ;;  %v9669_v22 = vunpack.c.h.bf16 %v9814_v43  ;;  %v9668_v24 = vunpack.c.l.bf16 %v9814_v43  ;;  %v9816_v43 = vld [vmem:[%s14156_s0 + $0x3d8] sm:$0xff]  }
 0x1ec   :  { %v11139_v52 = vpop.xlane.xlu1 %1053  ;;  %v11143_v58 = vpop.xlane.xlu0 %1050 }
 0x1ed   :  { %14465 = vst [vmem:[#allocation124_spill] sm:$0xff] %v11139_v52  ;;  %14466 = vst [vmem:[#allocation125_spill] sm:$0xff] %v11143_v58 }
 0x1ef   :  { %1269 = vadd.xlane.f32.xlu1 %v1268_v3  ;;  %1266 = vadd.xlane.f32.xlu0 %v1265_v10  ;;  %v1280_v3 = vsel %vm556_vm0, %v9665_v19, 0.0  ;;  %v1277_v10 = vsel %vm556_vm0, %v9664_v57, 0.0  ;;  %v9673_v19 = vunpack.c.h.bf16 %v9815_v29  ;;  %v9672_v57 = vunpack.c.l.bf16 %v9815_v29  ;;  %v9817_v29 = vld [vmem:[%s14156_s0 + $0x3e0] sm:$0xff]  }
 0x1f0   :  { %v11148_v38 = vpop.xlane.xlu1 %1059  ;;  %v11152_v52 = vpop.xlane.xlu0 %1056 }
 0x1f1   :  { %14467 = vst [vmem:[#allocation126_spill] sm:$0xff] %v11148_v38  ;;  %14468 = vst [vmem:[#allocation127_spill] sm:$0xff] %v11152_v52 }
 0x1f3   :  { %1275 = vadd.xlane.f32.xlu1 %v1274_v42  ;;  %1272 = vadd.xlane.f32.xlu0 %v1271_v49  ;;  %v1286_v42 = vsel %vm556_vm0, %v9669_v22, 0.0  ;;  %v1283_v49 = vsel %vm556_vm0, %v9668_v24, 0.0  ;;  %v9677_v22 = vunpack.c.h.bf16 %v9816_v43  ;;  %v9676_v24 = vunpack.c.l.bf16 %v9816_v43  ;;  %v9818_v43 = vld [vmem:[%s14156_s0 + $0x3e8] sm:$0xff]  }
 0x1f4   :  { %v11157_v58 = vpop.xlane.xlu1 %1065  ;;  %v11161_v38 = vpop.xlane.xlu0 %1062 }
 0x1f5   :  { %14469 = vst [vmem:[#allocation128_spill] sm:$0xff] %v11157_v58  ;;  %14470 = vst [vmem:[#allocation129_spill] sm:$0xff] %v11161_v38 }
 0x1f7   :  { %1281 = vadd.xlane.f32.xlu1 %v1280_v3  ;;  %1278 = vadd.xlane.f32.xlu0 %v1277_v10  ;;  %v1292_v3 = vsel %vm556_vm0, %v9673_v19, 0.0  ;;  %v1289_v10 = vsel %vm556_vm0, %v9672_v57, 0.0  ;;  %v9681_v19 = vunpack.c.h.bf16 %v9817_v29  ;;  %v9680_v57 = vunpack.c.l.bf16 %v9817_v29  ;;  %v9819_v29 = vld [vmem:[%s14156_s0 + $0x3f0] sm:$0xff]  }
 0x1f8   :  { %v11166_v52 = vpop.xlane.xlu1 %1071  ;;  %v11170_v58 = vpop.xlane.xlu0 %1068 }
 0x1f9   :  { %14471 = vst [vmem:[#allocation130_spill] sm:$0xff] %v11166_v52  ;;  %14472 = vst [vmem:[#allocation131_spill] sm:$0xff] %v11170_v58 }
 0x1fb   :  { %1287 = vadd.xlane.f32.xlu1 %v1286_v42  ;;  %1284 = vadd.xlane.f32.xlu0 %v1283_v49  ;;  %v1298_v42 = vsel %vm556_vm0, %v9677_v22, 0.0  ;;  %v1295_v49 = vsel %vm556_vm0, %v9676_v24, 0.0  ;;  %v9685_v22 = vunpack.c.h.bf16 %v9818_v43  ;;  %v9684_v24 = vunpack.c.l.bf16 %v9818_v43  ;;  %v9820_v43 = vld [vmem:[%s14156_s0 + $0x3f8] sm:$0xff]  }
 0x1fc   :  { %v11175_v38 = vpop.xlane.xlu1 %1077  ;;  %v11179_v52 = vpop.xlane.xlu0 %1074 }
 0x1fd   :  { %14473 = vst [vmem:[#allocation132_spill] sm:$0xff] %v11175_v38  ;;  %14474 = vst [vmem:[#allocation133_spill] sm:$0xff] %v11179_v52 }
 0x1ff   :  { %1293 = vadd.xlane.f32.xlu1 %v1292_v3  ;;  %1290 = vadd.xlane.f32.xlu0 %v1289_v10  ;;  %v1304_v3 = vsel %vm556_vm0, %v9681_v19, 0.0  ;;  %v1301_v10 = vsel %vm556_vm0, %v9680_v57, 0.0  ;;  %v9689_v19 = vunpack.c.h.bf16 %v9819_v29  ;;  %v9688_v57 = vunpack.c.l.bf16 %v9819_v29 }
 0x200   :  { %v11184_v58 = vpop.xlane.xlu1 %1083  ;;  %v11188_v38 = vpop.xlane.xlu0 %1080 }
 0x201   :  { %14475 = vst [vmem:[#allocation134_spill] sm:$0xff] %v11184_v58  ;;  %14476 = vst [vmem:[#allocation135_spill] sm:$0xff] %v11188_v38 }
 0x203   :  { %1299 = vadd.xlane.f32.xlu1 %v1298_v42  ;;  %1296 = vadd.xlane.f32.xlu0 %v1295_v49  ;;  %v1310_v42 = vsel %vm556_vm0, %v9685_v22, 0.0  ;;  %v1307_v49 = vsel %vm556_vm0, %v9684_v24, 0.0  ;;  %v9693_v22 = vunpack.c.h.bf16 %v9820_v43  ;;  %v9692_v24 = vunpack.c.l.bf16 %v9820_v43 }
 0x204   :  { %v11193_v52 = vpop.xlane.xlu1 %1089  ;;  %v11197_v58 = vpop.xlane.xlu0 %1086 }
 0x205   :  { %14477 = vst [vmem:[#allocation136_spill] sm:$0xff] %v11193_v52  ;;  %14478 = vst [vmem:[#allocation137_spill] sm:$0xff] %v11197_v58  ;;  %v1322_v29 = vsel %vm556_vm0, %v9693_v22, 0.0  ;;  %v1319_v14 = vsel %vm556_vm0, %v9692_v24, 0.0 }
 0x207   :  { %1305 = vadd.xlane.f32.xlu1 %v1304_v3  ;;  %1302 = vadd.xlane.f32.xlu0 %v1301_v10  ;;  %v1316_v3 = vsel %vm556_vm0, %v9689_v19, 0.0  ;;  %v1313_v10 = vsel %vm556_vm0, %v9688_v57, 0.0  ;;  %v10170_v57 = vmov 1985246804   ;;  %vm7485_vm0 = vcmask 1041409  }
 0x208   :  { %v11202_v38 = vpop.xlane.xlu1 %1095  ;;  %v11206_v52 = vpop.xlane.xlu0 %1092  ;;  %v1589_v36 = vunpack.c.l.s4 %v10170_v57 }
 0x209   :  { %14479 = vst [vmem:[#allocation138_spill] sm:$0xff] %v11202_v38  ;;  %14480 = vst [vmem:[#allocation139_spill] sm:$0xff] %v11206_v52 }
 0x20a   :  { %v1590_v22 = vunpack.c.0.s8 %v1589_v36 }
 0x20b   :  { %1311 = vadd.xlane.f32.xlu1 %v1310_v42  ;;  %1308 = vadd.xlane.f32.xlu0 %v1307_v49  ;;  %v10169_v49 = vmov 839922192  }
 0x20c   :  { %v11211_v58 = vpop.xlane.xlu1 %1101  ;;  %v11215_v38 = vpop.xlane.xlu0 %1098  ;;  %v1582_v19 = vunpack.c.l.s4 %v10169_v49 }
 0x20d   :  { %14481 = vst [vmem:[#allocation140_spill] sm:$0xff] %v11211_v58  ;;  %14482 = vst [vmem:[#allocation141_spill] sm:$0xff] %v11215_v38  ;;  %v14296_v58 = vlaneseq }
 0x20f   :  { %1317 = vadd.xlane.f32.xlu1 %v1316_v3  ;;  %1314 = vadd.xlane.f32.xlu0 %v1313_v10  ;;  %v1583_v3 = vunpack.c.0.s8 %v1582_v19  ;;  %v11228_v10 = vshrl.u32 %v14296_v58, 7 }
 0x210   :  { %v11217_v52 = vpop.xlane.xlu1 %1107  ;;  %v11221_v42 = vpop.xlane.xlu0 %1104 }
 0x211   :  { %14483 = vst [vmem:[#allocation142_spill] sm:$0xff] %v11217_v52  ;;  %14484 = vst [vmem:[#allocation143_spill] sm:$0xff] %v11221_v42 }
 0x212   :  { %14487 = vst [vmem:[#allocation146_spill] sm:$0xff] %v11228_v10 }
 0x213   :  { %1323 = vadd.xlane.f32.xlu1 %v1322_v29  ;;  %1320 = vadd.xlane.f32.xlu0 %v1319_v14  ;;  %v11235_v14 = vsub.s32 %v1583_v3, %v11228_v10  ;;  %v11238_v29 = vsub.s32 %v1590_v22, %v11228_v10 }
 0x214   :  { %v11223_v38 = vpop.xlane.xlu1 %1113  ;;  %v11225_v43 = vpop.xlane.xlu0 %1110 }
 0x215   :  { %14485 = vst [vmem:[#allocation144_spill] sm:$0xff] %v11223_v38  ;;  %14486 = vst [vmem:[#allocation145_spill] sm:$0xff] %v11225_v43  ;;  %v1601_v19 = vrot.slane %v10414_v2, %v11235_v14  ;;  %v1608_v36 = vrot.slane %v10414_v2, %v11238_v29  ;;  %v1615_v3 = vrot.slane %v10401_v56, %v11235_v14 }
 0x216   :  { %14490 = vst [vmem:[#allocation149_spill] sm:$0xff] %v11235_v14  ;;  %14491 = vst [vmem:[#allocation150_spill] sm:$0xff] %v11238_v29  ;;  %v1622_v22 = vrot.slane %v10401_v56, %v11238_v29  ;;  %v1671_v38 = vrot.slane %v10432_v16, %v11235_v14 }
 0x217   :  { %v5166_v10 = vcombine.low %v1601_v19, %v1608_v36  ;;  %v1713_v19 = vrot.slane %v10437_v20, %v11235_v14  ;;  %v1720_v36 = vrot.slane %v10437_v20, %v11238_v29  ;;  %v1748_v20 = vrot.slane %v10446_v27, %v11238_v29 }
 0x218   :  { %v11230_v52 = vpop.xlane.xlu1 %1119  ;;  %v11232_v24 = vpop.xlane.xlu0 %1116 }
 0x219   :  { %14488 = vst [vmem:[#allocation147_spill] sm:$0xff] %v11230_v52  ;;  %14489 = vst [vmem:[#allocation148_spill] sm:$0xff] %v11232_v24  ;;  %v1636_v52 = vrot.slane %v10410_v63, %v11238_v29 }
 0x21c   :  { %v11240_v49 = vpop.xlane.xlu1 %1125  ;;  %v11242_v57 = vpop.xlane.xlu0 %1122 }
 0x21d   :  { %14492 = vst [vmem:[#allocation151_spill] sm:$0xff] %v11240_v49  ;;  %14493 = vst [vmem:[#allocation152_spill] sm:$0xff] %v11242_v57  ;;  %v1587_v49 = vrot.slane %v10405_v59, %v11235_v14  ;;  %v1594_v57 = vrot.slane %v10405_v59, %v11238_v29 }
 0x21f   :  { %v5165_v56 = vcombine.low %v1587_v49, %v1594_v57  ;;  %v5174_v49 = vcombine.low %v1713_v19, %v1720_v36  ;;  %v1741_v57 = vrot.slane %v10446_v27, %v11235_v14  ;;  %v1769_v19 = vrot.slane %v10455_v34, %v11235_v14 }
 0x220   :  { %v11248_v58 = vpop.xlane.xlu1 %1131  ;;  %v11250_v43 = vpop.xlane.xlu0 %1128  ;;  %v1776_v27 = vrot.slane %v10455_v34, %v11238_v29  ;;  %v1804_v34 = vrot.slane %v10464_v41, %v11238_v29 }
 0x221   :  { %14494 = vst [vmem:[#allocation153_spill] sm:$0xff] %v11248_v58  ;;  %14495 = vst [vmem:[#allocation154_spill] sm:$0xff] %v11250_v43  ;;  %v5167_v58 = vcombine.low %v1615_v3, %v1622_v22  ;;  %v1629_v43 = vrot.slane %v10410_v63, %v11235_v14  ;;  %v1643_v22 = vrot.slane %v10423_v9, %v11235_v14 }
 0x222   :  { %v1650_v63 = vrot.slane %v10423_v9, %v11238_v29 }
 0x223   :  { %v5168_v3 = vcombine.low %v1629_v43, %v1636_v52  ;;  %v1657_v52 = vrot.slane %v10419_v6, %v11235_v14  ;;  %v1664_v43 = vrot.slane %v10419_v6, %v11238_v29  ;;  %v1678_v6 = vrot.slane %v10432_v16, %v11238_v29 }
 0x224   :  { %v11260_v24 = vpop.xlane.xlu1 %1137  ;;  %5425 = vperm.xlu1 %9882, %v5166_v10   ;;  %v11262_v2 = vpop.xlane.xlu0 %1134  ;;  %v5169_v9 = vcombine.low %v1643_v22, %v1650_v63  ;;  %v5178_v22 = vcombine.low %v1769_v19, %v1776_v27  ;;  %v1797_v63 = vrot.slane %v10464_v41, %v11235_v14  ;;  %v1832_v41 = vrot.slane %v10473_v48, %v11238_v29 }
 0x225   :  { %v5171_v16 = vcombine.low %v1671_v38, %v1678_v6  ;;  %v1853_v6 = vrot.slane %v10482_v55, %v11235_v14 }
 0x228   :  { %v11272_v59 = vpop.xlane.xlu1 %1143  ;;  %5428 = vperm.xlu1 %9882, %v5167_v58   ;;  %v11274_v10 = vpop.xlane.xlu0 %1140 }
 0x229   :  { %5422 = vperm.xlu0 %9881, %v5165_v56   ;;  %v5176_v56 = vcombine.low %v1741_v57, %v1748_v20 }
 0x22c   :  { %v11284_v42 = vpop.xlane.xlu1 %1149  ;;  %5431 = vperm.xlu1 %9882, %v5168_v3   ;;  %v11286_v58 = vpop.xlane.xlu0 %1146 }
 0x22d   :  { %5449 = vperm.xlu0 %9881, %v5174_v49   ;;  %v5170_v49 = vcombine.low %v1657_v52, %v1664_v43  ;;  %v1685_v52 = vrot.slane %v10428_v13, %v11235_v14  ;;  %v1692_v43 = vrot.slane %v10428_v13, %v11238_v29  ;;  %v1706_v13 = vrot.slane %v10441_v23, %v11238_v29 }
 0x230   :  { %v11296_v36 = vpop.xlane.xlu1 %1155  ;;  %5434 = vperm.xlu1 %9882, %v5169_v9   ;;  %v11298_v3 = vpop.xlane.xlu0 %1152  ;;  %v5180_v9 = vcombine.low %v1797_v63, %v1804_v34 }
 0x231   :  { %5455 = vperm.xlu0 %9881, %v5176_v56   ;;  %v1825_v56 = vrot.slane %v10473_v48, %v11235_v14  ;;  %v1860_v48 = vrot.slane %v10482_v55, %v11238_v29  ;;  %v1888_v55 = vrot.slane %v10491_v1, %v11238_v29 }
 0x233   :  { %v5182_v38 = vcombine.low %v1825_v56, %v1832_v41 }
 0x234   :  { %v11308_v57 = vpop.xlane.xlu1 %1161  ;;  %5437 = vperm.xlu1 %9882, %v5170_v49   ;;  %v11310_v20 = vpop.xlane.xlu0 %1158  ;;  %v5172_v49 = vcombine.low %v1685_v52, %v1692_v43  ;;  %v1727_v43 = vrot.slane %v10450_v30, %v11235_v14 }
 0x235   :  { %5461 = vperm.xlu0 %9881, %v5178_v22   ;;  %v1699_v22 = vrot.slane %v10441_v23, %v11235_v14  ;;  %v1734_v23 = vrot.slane %v10450_v30, %v11238_v29  ;;  %v1762_v30 = vrot.slane %v10459_v37, %v11238_v29 }
 0x237   :  { %v5173_v52 = vcombine.low %v1699_v22, %v1706_v13  ;;  %v1755_v22 = vrot.slane %v10459_v37, %v11235_v14  ;;  %v1790_v37 = vrot.slane %v10468_v44, %v11238_v29 }
 0x238   :  { %v11320_v19 = vpop.xlane.xlu1 %1167  ;;  %5440 = vperm.xlu1 %9882, %v5171_v16   ;;  %v11322_v27 = vpop.xlane.xlu0 %1164  ;;  %v5184_v16 = vcombine.low %v1853_v6, %v1860_v48 }
 0x239   :  { %5467 = vperm.xlu0 %9881, %v5180_v9   ;;  %v1881_v9 = vrot.slane %v10491_v1, %v11235_v14  ;;  %v1916_v1 = vrot.slane %v10500_v11, %v11238_v29 }
 0x23b   :  { %v5186_v13 = vcombine.low %v1881_v9, %v1888_v55 }
 0x23c   :  { %v11332_v63 = vpop.xlane.xlu1 %1173  ;;  %5443 = vperm.xlu1 %9882, %v5172_v49   ;;  %v11334_v34 = vpop.xlane.xlu0 %1170  ;;  %v5175_v49 = vcombine.low %v1727_v43, %v1734_v23  ;;  %v1783_v43 = vrot.slane %v10468_v44, %v11235_v14  ;;  %v1818_v44 = vrot.slane %v10477_v51, %v11238_v29 }
 0x23d   :  { %5473 = vperm.xlu0 %9881, %v5182_v38   ;;  %v1909_v38 = vrot.slane %v10500_v11, %v11235_v14  ;;  %v1944_v11 = vrot.slane %v10509_v21, %v11238_v29 }
 0x23f   :  { %v5188_v23 = vcombine.low %v1909_v38, %v1916_v1 }
 0x240   :  { %v11344_v56 = vpop.xlane.xlu1 %1179  ;;  %5446 = vperm.xlu1 %9882, %v5173_v52   ;;  %v11346_v41 = vpop.xlane.xlu0 %1176  ;;  %v5177_v52 = vcombine.low %v1755_v22, %v1762_v30  ;;  %v1811_v22 = vrot.slane %v10477_v51, %v11235_v14  ;;  %v1846_v51 = vrot.slane %v10486_v60, %v11238_v29 }
 0x241   :  { %5479 = vperm.xlu0 %9881, %v5184_v16   ;;  %v1937_v16 = vrot.slane %v10509_v21, %v11235_v14  ;;  %v1972_v21 = vrot.slane %v10518_v31, %v11238_v29 }
 0x243   :  { %v5190_v30 = vcombine.low %v1937_v16, %v1944_v11 }
 0x244   :  { %v11356_v6 = vpop.xlane.xlu1 %1185  ;;  %5452 = vperm.xlu1 %9882, %v5175_v49   ;;  %v11358_v48 = vpop.xlane.xlu0 %1182  ;;  %v5179_v49 = vcombine.low %v1783_v43, %v1790_v37  ;;  %v1839_v43 = vrot.slane %v10486_v60, %v11235_v14  ;;  %v1874_v60 = vrot.slane %v10495_v5, %v11238_v29 }
 0x245   :  { %5485 = vperm.xlu0 %9881, %v5186_v13   ;;  %v1965_v13 = vrot.slane %v10518_v31, %v11235_v14  ;;  %v2000_v31 = vrot.slane %v10527_v40, %v11238_v29 }
 0x247   :  { %v5192_v37 = vcombine.low %v1965_v13, %v1972_v21 }
 0x248   :  { %v11368_v9 = vpop.xlane.xlu1 %1191  ;;  %5458 = vperm.xlu1 %9882, %v5177_v52   ;;  %v11370_v55 = vpop.xlane.xlu0 %1188  ;;  %v5181_v52 = vcombine.low %v1811_v22, %v1818_v44  ;;  %v1867_v22 = vrot.slane %v10495_v5, %v11235_v14  ;;  %v1902_v5 = vrot.slane %v10504_v15, %v11238_v29 }
 0x249   :  { %5491 = vperm.xlu0 %9881, %v5188_v23   ;;  %v1993_v23 = vrot.slane %v10527_v40, %v11235_v14  ;;  %v2028_v40 = vrot.slane %v10536_v50, %v11238_v29 }
 0x24b   :  { %v5194_v44 = vcombine.low %v1993_v23, %v2000_v31 }
 0x24c   :  { %v11380_v38 = vpop.xlane.xlu1 %1197  ;;  %5464 = vperm.xlu1 %9882, %v5179_v49   ;;  %v11382_v1 = vpop.xlane.xlu0 %1194  ;;  %v5183_v49 = vcombine.low %v1839_v43, %v1846_v51  ;;  %v1895_v43 = vrot.slane %v10504_v15, %v11235_v14  ;;  %v1930_v15 = vrot.slane %v10513_v25, %v11238_v29 }
 0x24d   :  { %5497 = vperm.xlu0 %9881, %v5190_v30   ;;  %v2021_v30 = vrot.slane %v10536_v50, %v11235_v14  ;;  %v2056_v50 = vrot.slane %v10545_v62, %v11238_v29 }
 0x24f   :  { %v5196_v51 = vcombine.low %v2021_v30, %v2028_v40 }
 0x250   :  { %v11392_v16 = vpop.xlane.xlu1 %1203  ;;  %5470 = vperm.xlu1 %9882, %v5181_v52   ;;  %v11394_v11 = vpop.xlane.xlu0 %1200  ;;  %v5185_v52 = vcombine.low %v1867_v22, %v1874_v60  ;;  %v1923_v22 = vrot.slane %v10513_v25, %v11235_v14  ;;  %v1958_v25 = vrot.slane %v10522_v35, %v11238_v29 }
 0x251   :  { %5503 = vperm.xlu0 %9881, %v5192_v37   ;;  %v2049_v37 = vrot.slane %v10545_v62, %v11235_v14  ;;  %v2084_v62 = vrot.slane %v10554_v12, %v11238_v29 }
 0x253   :  { %v5198_v60 = vcombine.low %v2049_v37, %v2056_v50 }
 0x254   :  { %v11404_v13 = vpop.xlane.xlu1 %1209  ;;  %5476 = vperm.xlu1 %9882, %v5183_v49   ;;  %v11406_v21 = vpop.xlane.xlu0 %1206  ;;  %v5187_v49 = vcombine.low %v1895_v43, %v1902_v5  ;;  %v1951_v43 = vrot.slane %v10522_v35, %v11235_v14  ;;  %v1986_v35 = vrot.slane %v10531_v45, %v11238_v29 }
 0x255   :  { %5509 = vperm.xlu0 %9881, %v5194_v44   ;;  %v2077_v44 = vrot.slane %v10554_v12, %v11235_v14  ;;  %v2112_v12 = vrot.slane %v10563_v26, %v11238_v29 }
 0x257   :  { %v5200_v5 = vcombine.low %v2077_v44, %v2084_v62 }
 0x258   :  { %v11416_v23 = vpop.xlane.xlu1 %1215  ;;  %5482 = vperm.xlu1 %9882, %v5185_v52   ;;  %v11418_v31 = vpop.xlane.xlu0 %1212  ;;  %v5189_v52 = vcombine.low %v1923_v22, %v1930_v15  ;;  %v1979_v22 = vrot.slane %v10531_v45, %v11235_v14  ;;  %v2014_v45 = vrot.slane %v10540_v54, %v11238_v29 }
 0x259   :  { %5515 = vperm.xlu0 %9881, %v5196_v51   ;;  %v2105_v51 = vrot.slane %v10563_v26, %v11235_v14  ;;  %v2140_v26 = vrot.slane %v10572_v39, %v11238_v29 }
 0x25b   :  { %v5202_v15 = vcombine.low %v2105_v51, %v2112_v12 }
 0x25c   :  { %v11428_v30 = vpop.xlane.xlu1 %1221  ;;  %5488 = vperm.xlu1 %9882, %v5187_v49   ;;  %v11430_v40 = vpop.xlane.xlu0 %1218  ;;  %v5191_v49 = vcombine.low %v1951_v43, %v1958_v25  ;;  %v2007_v43 = vrot.slane %v10540_v54, %v11235_v14  ;;  %v2042_v54 = vrot.slane %v10549_v4, %v11238_v29 }
 0x25d   :  { %5521 = vperm.xlu0 %9881, %v5198_v60   ;;  %v2133_v60 = vrot.slane %v10572_v39, %v11235_v14  ;;  %v2168_v39 = vrot.slane %v10581_v53, %v11238_v29 }
 0x25f   :  { %v5204_v25 = vcombine.low %v2133_v60, %v2140_v26 }
 0x260   :  { %v11440_v37 = vpop.xlane.xlu1 %1227  ;;  %5494 = vperm.xlu1 %9882, %v5189_v52   ;;  %v11442_v50 = vpop.xlane.xlu0 %1224  ;;  %v5193_v52 = vcombine.low %v1979_v22, %v1986_v35  ;;  %v2035_v22 = vrot.slane %v10549_v4, %v11235_v14  ;;  %v2070_v4 = vrot.slane %v10558_v18, %v11238_v29 }
 0x261   :  { %5527 = vperm.xlu0 %9881, %v5200_v5   ;;  %v2161_v5 = vrot.slane %v10581_v53, %v11235_v14  ;;  %v2196_v53 = vrot.slane %v10590_v8, %v11238_v29 }
 0x263   :  { %v5206_v35 = vcombine.low %v2161_v5, %v2168_v39 }
 0x264   :  { %v11452_v44 = vpop.xlane.xlu1 %1233  ;;  %5500 = vperm.xlu1 %9882, %v5191_v49   ;;  %v11454_v62 = vpop.xlane.xlu0 %1230  ;;  %v5195_v49 = vcombine.low %v2007_v43, %v2014_v45  ;;  %v2063_v43 = vrot.slane %v10558_v18, %v11235_v14  ;;  %v2098_v18 = vrot.slane %v10567_v32, %v11238_v29 }
 0x265   :  { %5533 = vperm.xlu0 %9881, %v5202_v15   ;;  %v2189_v15 = vrot.slane %v10590_v8, %v11235_v14  ;;  %v2224_v8 = vrot.slane %v10599_v28, %v11238_v29 }
 0x267   :  { %v5208_v45 = vcombine.low %v2189_v15, %v2196_v53 }
 0x268   :  { %v11464_v51 = vpop.xlane.xlu1 %1239  ;;  %5506 = vperm.xlu1 %9882, %v5193_v52   ;;  %v11466_v12 = vpop.xlane.xlu0 %1236  ;;  %v5197_v52 = vcombine.low %v2035_v22, %v2042_v54  ;;  %v2091_v22 = vrot.slane %v10567_v32, %v11235_v14  ;;  %v2126_v32 = vrot.slane %v10576_v46, %v11238_v29 }
 0x269   :  { %5539 = vperm.xlu0 %9881, %v5204_v25   ;;  %v2217_v25 = vrot.slane %v10599_v28, %v11235_v14  ;;  %v2252_v28 = vrot.slane %v10608_v47, %v11238_v29 }
 0x26b   :  { %v5210_v54 = vcombine.low %v2217_v25, %v2224_v8 }
 0x26c   :  { %v11476_v60 = vpop.xlane.xlu1 %1245  ;;  %5512 = vperm.xlu1 %9882, %v5195_v49   ;;  %v11478_v26 = vpop.xlane.xlu0 %1242  ;;  %v5199_v49 = vcombine.low %v2063_v43, %v2070_v4  ;;  %v2119_v43 = vrot.slane %v10576_v46, %v11235_v14  ;;  %v2154_v46 = vrot.slane %v10585_v61, %v11238_v29 }
 0x26d   :  { %14496 = vst [vmem:[#allocation155_spill] sm:$0xff] %v11476_v60  ;;  %14497 = vst [vmem:[#allocation156_spill] sm:$0xff] %v11478_v26  ;;  %5545 = vperm.xlu0 %9881, %v5206_v35   ;;  %v2245_v35 = vrot.slane %v10608_v47, %v11235_v14  ;;  %v2280_v47 = vrot.slane %v10617_v7, %v11238_v29 }
 0x26f   :  { %v5212_v4 = vcombine.low %v2245_v35, %v2252_v28 }
 0x270   :  { %v11488_v5 = vpop.xlane.xlu1 %1251  ;;  %5518 = vperm.xlu1 %9882, %v5197_v52   ;;  %v11490_v39 = vpop.xlane.xlu0 %1248  ;;  %v5201_v52 = vcombine.low %v2091_v22, %v2098_v18  ;;  %v2147_v22 = vrot.slane %v10585_v61, %v11235_v14  ;;  %v2182_v61 = vrot.slane %v10594_v17, %v11238_v29 }
 0x271   :  { %14498 = vst [vmem:[#allocation157_spill] sm:$0xff] %v11488_v5  ;;  %14499 = vst [vmem:[#allocation158_spill] sm:$0xff] %v11490_v39  ;;  %5551 = vperm.xlu0 %9881, %v5208_v45   ;;  %v2273_v45 = vrot.slane %v10617_v7, %v11235_v14  ;;  %v2308_v7 = vrot.slane %v10626_v33, %v11238_v29 }
 0x273   :  { %v5214_v18 = vcombine.low %v2273_v45, %v2280_v47 }
 0x274   :  { %v11500_v15 = vpop.xlane.xlu1 %1257  ;;  %5524 = vperm.xlu1 %9882, %v5199_v49   ;;  %v11502_v53 = vpop.xlane.xlu0 %1254  ;;  %v5203_v49 = vcombine.low %v2119_v43, %v2126_v32  ;;  %v2175_v43 = vrot.slane %v10594_v17, %v11235_v14 }
 0x275   :  { %14500 = vst [vmem:[#allocation159_spill] sm:$0xff] %v11500_v15  ;;  %14501 = vst [vmem:[#allocation160_spill] sm:$0xff] %v11502_v53  ;;  %5557 = vperm.xlu0 %9881, %v5210_v54   ;;  %v2301_v54 = vrot.slane %v10626_v33, %v11235_v14  ;;  %v2336_v33 = vrot.slane %v10635_v0, %v11238_v29 }
 0x277   :  { %v5216_v32 = vcombine.low %v2301_v54, %v2308_v7  ;;  %v14509_v54 = vld [vmem:[#allocation14_spill] sm:$0xff] }
 0x278   :  { %v11512_v25 = vpop.xlane.xlu1 %1263  ;;  %5530 = vperm.xlu1 %9882, %v5201_v52   ;;  %v11514_v8 = vpop.xlane.xlu0 %1260  ;;  %v5205_v52 = vcombine.low %v2147_v22, %v2154_v46  ;;  %v14508_v22 = vld [vmem:[#allocation9_spill] sm:$0xff]  ;;  %v2357_v7 = vrot.slane %v14509_v54, %v11235_v14 }
 0x279   :  { %14502 = vst [vmem:[#allocation161_spill] sm:$0xff] %v11512_v25  ;;  %14503 = vst [vmem:[#allocation162_spill] sm:$0xff] %v11514_v8  ;;  %5563 = vperm.xlu0 %9881, %v5212_v4   ;;  %v2329_v4 = vrot.slane %v10635_v0, %v11235_v14  ;;  %v2203_v46 = vrot.slane %v14508_v22, %v11235_v14  ;;  %v2210_v17 = vrot.slane %v14508_v22, %v11238_v29 }
 0x27a   :  { %v2364_v0 = vrot.slane %v14509_v54, %v11238_v29 }
 0x27c   :  { %v11524_v35 = vpop.xlane.xlu1 %1269  ;;  %5536 = vperm.xlu1 %9882, %v5203_v49   ;;  %v11526_v28 = vpop.xlane.xlu0 %1266  ;;  %v5207_v49 = vcombine.low %v2175_v43, %v2182_v61  ;;  %v5209_v43 = vcombine.low %v2203_v46, %v2210_v17  ;;  %v14510_v61 = vld [vmem:[#allocation10_spill] sm:$0xff]  ;;  %v14512_v17 = vld [vmem:[#allocation11_spill] sm:$0xff] }
 0x27d   :  { %14504 = vst [vmem:[#allocation163_spill] sm:$0xff] %v11524_v35  ;;  %14505 = vst [vmem:[#allocation164_spill] sm:$0xff] %v11526_v28  ;;  %5569 = vperm.xlu0 %9881, %v5214_v18   ;;  %v5218_v18 = vcombine.low %v2329_v4, %v2336_v33  ;;  %v2238_v22 = vrot.slane %v14510_v61, %v11238_v29  ;;  %v5220_v4 = vcombine.low %v2357_v7, %v2364_v0  ;;  %v14511_v33 = vld [vmem:[#allocation16_spill] sm:$0xff]  ;;  %v14513_v0 = vld [vmem:[#allocation18_spill] sm:$0xff] }
 0x27e   :  { %v2392_v54 = vrot.slane %v14511_v33, %v11238_v29  ;;  %v2413_v28 = vrot.slane %v14513_v0, %v11235_v14 }
 0x280   :  { %v11536_v45 = vpop.xlane.xlu1 %1275  ;;  %5542 = vperm.xlu1 %9882, %v5205_v52   ;;  %v11538_v47 = vpop.xlane.xlu0 %1272 }
 0x281   :  { %14506 = vst [vmem:[#allocation165_spill] sm:$0xff] %v11536_v45  ;;  %14507 = vst [vmem:[#allocation166_spill] sm:$0xff] %v11538_v47  ;;  %5575 = vperm.xlu0 %9881, %v5216_v32   ;;  %v2231_v32 = vrot.slane %v14510_v61, %v11235_v14  ;;  %v2385_v45 = vrot.slane %v14511_v33, %v11235_v14  ;;  %v2266_v61 = vrot.slane %v14512_v17, %v11238_v29 }
 0x282   :  { %v2420_v33 = vrot.slane %v14513_v0, %v11238_v29 }
 0x283   :  { %v5211_v46 = vcombine.low %v2231_v32, %v2238_v22  ;;  %v5222_v7 = vcombine.low %v2385_v45, %v2392_v54  ;;  %v14514_v22 = vld [vmem:[#allocation12_spill] sm:$0xff] }
 0x284   :  { %v11548_v35 = vpop.xlane.xlu1 %1281  ;;  %5548 = vperm.xlu1 %9882, %v5207_v49   ;;  %v11550_v52 = vpop.xlane.xlu0 %1278  ;;  %v5224_v45 = vcombine.low %v2413_v28, %v2420_v33  ;;  %v14515_v54 = vld [vmem:[#allocation20_spill] sm:$0xff]  ;;  %v14519_v33 = vld [vmem:[#allocation22_spill] sm:$0xff] }
 0x285   :  { %5581 = vperm.xlu0 %9881, %v5218_v18   ;;  %v2259_v18 = vrot.slane %v14512_v17, %v11235_v14  ;;  %v2294_v17 = vrot.slane %v14514_v22, %v11238_v29  ;;  %v2441_v8 = vrot.slane %v14515_v54, %v11235_v14  ;;  %v2448_v0 = vrot.slane %v14515_v54, %v11238_v29 }
 0x286   :  { %v2469_v39 = vrot.slane %v14519_v33, %v11235_v14  ;;  %v2476_v54 = vrot.slane %v14519_v33, %v11238_v29 }
 0x287   :  { %v5213_v32 = vcombine.low %v2259_v18, %v2266_v61  ;;  %v14518_v61 = vld [vmem:[#allocation13_spill] sm:$0xff]  ;;  %v5226_v28 = vcombine.low %v2441_v8, %v2448_v0  ;;  %v14523_v0 = vld [vmem:[#allocation24_spill] sm:$0xff] }
 0x288   :  { %v11560_v47 = vpop.xlane.xlu1 %1287  ;;  %5554 = vperm.xlu1 %9882, %v5209_v43   ;;  %v11562_v49 = vpop.xlane.xlu0 %1284  ;;  %v5228_v8 = vcombine.low %v2469_v39, %v2476_v54  ;;  %v2504_v33 = vrot.slane %v14523_v0, %v11238_v29  ;;  %v14527_v54 = vld [vmem:[#allocation26_spill] sm:$0xff] }
 0x289   :  { %5587 = vperm.xlu0 %9881, %v5220_v4   ;;  %v2287_v4 = vrot.slane %v14514_v22, %v11235_v14  ;;  %v2322_v22 = vrot.slane %v14518_v61, %v11238_v29 }
 0x28b   :  { %v5215_v18 = vcombine.low %v2287_v4, %v2294_v17  ;;  %v14522_v17 = vld [vmem:[#allocation15_spill] sm:$0xff] }
 0x28c   :  { %v11572_v25 = vpop.xlane.xlu1 %1293  ;;  %5560 = vperm.xlu1 %9882, %v5211_v46   ;;  %v11574_v43 = vpop.xlane.xlu0 %1290 }
 0x28d   :  { %5593 = vperm.xlu0 %9881, %v5222_v7   ;;  %v2315_v7 = vrot.slane %v14518_v61, %v11235_v14  ;;  %v2350_v61 = vrot.slane %v14522_v17, %v11238_v29 }
 0x28f   :  { %v5217_v4 = vcombine.low %v2315_v7, %v2322_v22  ;;  %v14526_v22 = vld [vmem:[#allocation17_spill] sm:$0xff] }
 0x290   :  { %v11584_v53 = vpop.xlane.xlu1 %1299  ;;  %5566 = vperm.xlu1 %9882, %v5213_v32   ;;  %v11586_v46 = vpop.xlane.xlu0 %1296 }
 0x291   :  { %14516 = vst [vmem:[#allocation9_spill] sm:$0xff] %v11584_v53  ;;  %14517 = vst [vmem:[#allocation14_spill] sm:$0xff] %v11586_v46  ;;  %5599 = vperm.xlu0 %9881, %v5224_v45   ;;  %v2343_v45 = vrot.slane %v14522_v17, %v11235_v14  ;;  %v2497_v53 = vrot.slane %v14523_v0, %v11235_v14  ;;  %v2378_v17 = vrot.slane %v14526_v22, %v11238_v29 }
 0x292   :  { %v2532_v0 = vrot.slane %v14527_v54, %v11238_v29 }
 0x293   :  { %v5219_v7 = vcombine.low %v2343_v45, %v2350_v61  ;;  %v5230_v39 = vcombine.low %v2497_v53, %v2504_v33  ;;  %v14530_v61 = vld [vmem:[#allocation19_spill] sm:$0xff]  ;;  %v14531_v33 = vld [vmem:[#allocation28_spill] sm:$0xff] }
 0x294   :  { %v11596_v15 = vpop.xlane.xlu1 %1305  ;;  %5572 = vperm.xlu1 %9882, %v5215_v18   ;;  %v11598_v32 = vpop.xlane.xlu0 %1302 }
 0x295   :  { %14520 = vst [vmem:[#allocation10_spill] sm:$0xff] %v11596_v15  ;;  %14521 = vst [vmem:[#allocation16_spill] sm:$0xff] %v11598_v32  ;;  %5605 = vperm.xlu0 %9881, %v5226_v28   ;;  %v2371_v28 = vrot.slane %v14526_v22, %v11235_v14  ;;  %v2525_v32 = vrot.slane %v14527_v54, %v11235_v14  ;;  %v2406_v22 = vrot.slane %v14530_v61, %v11238_v29 }
 0x296   :  { %v2560_v54 = vrot.slane %v14531_v33, %v11238_v29 }
 0x297   :  { %v5221_v45 = vcombine.low %v2371_v28, %v2378_v17  ;;  %v5232_v53 = vcombine.low %v2525_v32, %v2532_v0  ;;  %v14533_v28 = vld [vmem:[#allocation21_spill] sm:$0xff] }
 0x298   :  { %v11608_v46 = vpop.xlane.xlu1 %1311  ;;  %5578 = vperm.xlu1 %9882, %v5217_v4   ;;  %v11610_v18 = vpop.xlane.xlu0 %1308  ;;  %v2427_v17 = vrot.slane %v14533_v28, %v11235_v14  ;;  %v14535_v0 = vld [vmem:[#allocation41_spill] sm:$0xff] }
 0x299   :  { %14524 = vst [vmem:[#allocation11_spill] sm:$0xff] %v11608_v46  ;;  %14525 = vst [vmem:[#allocation18_spill] sm:$0xff] %v11610_v18  ;;  %5611 = vperm.xlu0 %9881, %v5228_v8   ;;  %v2399_v8 = vrot.slane %v14530_v61, %v11235_v14  ;;  %v2553_v46 = vrot.slane %v14531_v33, %v11235_v14  ;;  %v2707_v61 = vrot.slane %v14535_v0, %v11235_v14 }
 0x29a   :  { %v2714_v33 = vrot.slane %v14535_v0, %v11238_v29 }
 0x29b   :  { %v5234_v32 = vcombine.low %v2553_v46, %v2560_v54  ;;  %v14537_v46 = vld [vmem:[#allocation43_spill] sm:$0xff] }
 0x29c   :  { %v11620_v15 = vpop.xlane.xlu1 %1317  ;;  %5584 = vperm.xlu1 %9882, %v5219_v7   ;;  %v11622_v4 = vpop.xlane.xlu0 %1314  ;;  %v5223_v7 = vcombine.low %v2399_v8, %v2406_v22  ;;  %v14536_v8 = vld [vmem:[#allocation23_spill] sm:$0xff]  ;;  %v2735_v54 = vrot.slane %v14537_v46, %v11235_v14 }
 0x29d   :  { %14528 = vst [vmem:[#allocation12_spill] sm:$0xff] %v11620_v15  ;;  %14529 = vst [vmem:[#allocation20_spill] sm:$0xff] %v11622_v4  ;;  %5617 = vperm.xlu0 %9881, %v5230_v39   ;;  %v2434_v39 = vrot.slane %v14533_v28, %v11238_v29  ;;  %v2455_v22 = vrot.slane %v14536_v8, %v11235_v14  ;;  %v5245_v28 = vcombine.low %v2707_v61, %v2714_v33  ;;  %v14539_v33 = vld [vmem:[#allocation88_spill] sm:$0xff] }
 0x2a0   :  { %v11632_v18 = vpop.xlane.xlu1 %1323  ;;  %5590 = vperm.xlu1 %9882, %v5221_v45   ;;  %v11638_v15 = vpop.xlane.xlu0 %1320  ;;  %v5225_v45 = vcombine.low %v2427_v17, %v2434_v39  ;;  %v14538_v17 = vld [vmem:[#allocation25_spill] sm:$0xff] }
 0x2a1   :  { %14532 = vst [vmem:[#allocation13_spill] sm:$0xff] %v11632_v18  ;;  %5623 = vperm.xlu0 %9881, %v5232_v53   ;;  %14534 = vst [vmem:[#allocation22_spill] sm:$0xff] %v11638_v15  ;;  %v2462_v53 = vrot.slane %v14536_v8, %v11238_v29  ;;  %v2742_v18 = vrot.slane %v14537_v46, %v11238_v29  ;;  %v2483_v39 = vrot.slane %v14538_v17, %v11235_v14 }
 0x2a2   :  { %v3393_v8 = vrot.slane %v14539_v33, %v11235_v14  ;;  %v3400_v46 = vrot.slane %v14539_v33, %v11238_v29 }
 0x2a3   :  { %v5247_v61 = vcombine.low %v2735_v54, %v2742_v18  ;;  %v14543_v54 = vld [vmem:[#allocation104_spill] sm:$0xff] }
 0x2a4   :  { %v11644_v4 = vpop.permute.xlu1 %5425  ;;  %5596 = vperm.xlu1 %9882, %v5223_v7   ;;  %v5227_v7 = vcombine.low %v2455_v22, %v2462_v53  ;;  %v14542_v53 = vld [vmem:[#allocation27_spill] sm:$0xff]  ;;  %v5294_v18 = vcombine.low %v3393_v8, %v3400_v46  ;;  %v3617_v60 = vrot.slane %v14543_v54, %v11235_v14  ;;  %v3624_v33 = vrot.slane %v14543_v54, %v11238_v29 }
 0x2a5   :  { %5629 = vperm.xlu0 %9881, %v5234_v32   ;;  %v2490_v32 = vrot.slane %v14538_v17, %v11238_v29  ;;  %v2518_v17 = vrot.slane %v14542_v53, %v11238_v29  ;;  %v14547_v8 = vld [vmem:[#allocation91_spill] sm:$0xff] }
 0x2a6   :  { %v3407_v46 = vrot.slane %v14547_v8, %v11235_v14  ;;  %v5310_v54 = vcombine.low %v3617_v60, %v3624_v33  ;;  %v4282_v60 = vrot.slane %v11262_v2, %v11238_v29 }
 0x2a7   :  { %v5229_v22 = vcombine.low %v2483_v39, %v2490_v32  ;;  %v14546_v32 = vld [vmem:[#allocation29_spill] sm:$0xff] }
 0x2a8   :  { %v11654_v15 = vpop.permute.xlu1 %5428  ;;  %5602 = vperm.xlu1 %9882, %v5225_v45   ;;  %v11656_v0 = vpop.permute.xlu0 %5422 }
 0x2a9   :  { %5662 = vperm.xlu0 %9881, %v5245_v28   ;;  %v2511_v28 = vrot.slane %v14542_v53, %v11235_v14  ;;  %v2546_v53 = vrot.slane %v14546_v32, %v11238_v29 }
 0x2ab   :  { %v5231_v39 = vcombine.low %v2511_v28, %v2518_v17  ;;  %v14550_v17 = vld [vmem:[#allocation31_spill] sm:$0xff] }
 0x2ac   :  { %v11666_v5 = vpop.permute.xlu1 %5431  ;;  %5608 = vperm.xlu1 %9882, %v5227_v7   ;;  %v11668_v45 = vpop.permute.xlu0 %5449 }
 0x2ad   :  { %14540 = vst [vmem:[#allocation15_spill] sm:$0xff] %v11666_v5  ;;  %14541 = vst [vmem:[#allocation24_spill] sm:$0xff] %v11668_v45  ;;  %5668 = vperm.xlu0 %9881, %v5247_v61   ;;  %v2539_v61 = vrot.slane %v14546_v32, %v11235_v14  ;;  %v3414_v45 = vrot.slane %v14547_v8, %v11238_v29  ;;  %v2574_v32 = vrot.slane %v14550_v17, %v11238_v29 }
 0x2af   :  { %v5233_v28 = vcombine.low %v2539_v61, %v2546_v53  ;;  %v14553_v53 = vld [vmem:[#allocation40_spill] sm:$0xff] }
 0x2b0   :  { %v11678_v26 = vpop.permute.xlu1 %5434  ;;  %5614 = vperm.xlu1 %9882, %v5229_v22   ;;  %v11680_v7 = vpop.permute.xlu0 %5455  ;;  %v2721_v8 = vrot.slane %v14553_v53, %v11235_v14 }
 0x2b1   :  { %14544 = vst [vmem:[#allocation17_spill] sm:$0xff] %v11678_v26  ;;  %14545 = vst [vmem:[#allocation26_spill] sm:$0xff] %v11680_v7  ;;  %5809 = vperm.xlu0 %9881, %v5294_v18   ;;  %v2567_v18 = vrot.slane %v14550_v17, %v11235_v14  ;;  %v5295_v7 = vcombine.low %v3407_v46, %v3414_v45  ;;  %v4275_v26 = vrot.slane %v11262_v2, %v11235_v14 }
 0x2b2   :  { %v4499_v46 = vrot.slane %v11358_v48, %v11235_v14  ;;  %v4506_v2 = vrot.slane %v11358_v48, %v11238_v29 }
 0x2b3   :  { %v5235_v61 = vcombine.low %v2567_v18, %v2574_v32  ;;  %v5357_v45 = vcombine.low %v4275_v26, %v4282_v60  ;;  %v14555_v18 = vld [vmem:[#allocation89_spill] sm:$0xff] }
 0x2b4   :  { %v11690_v5 = vpop.permute.xlu1 %5437  ;;  %5620 = vperm.xlu1 %9882, %v5231_v39   ;;  %v11692_v22 = vpop.permute.xlu0 %5461  ;;  %v3379_v32 = vrot.slane %v14555_v18, %v11235_v14  ;;  %v14556_v26 = vld [vmem:[#allocation45_spill] sm:$0xff]  ;;  %v5373_v48 = vcombine.low %v4499_v46, %v4506_v2 }
 0x2b5   :  { %14548 = vst [vmem:[#allocation19_spill] sm:$0xff] %v11690_v5  ;;  %14549 = vst [vmem:[#allocation28_spill] sm:$0xff] %v11692_v22  ;;  %5857 = vperm.xlu0 %9881, %v5310_v54   ;;  %v2728_v54 = vrot.slane %v14553_v53, %v11238_v29  ;;  %v3386_v53 = vrot.slane %v14555_v18, %v11238_v29  ;;  %v2763_v60 = vrot.slane %v14556_v26, %v11235_v14 }
 0x2b8   :  { %v11702_v33 = vpop.permute.xlu1 %5440  ;;  %5626 = vperm.xlu1 %9882, %v5233_v28   ;;  %v11704_v39 = vpop.permute.xlu0 %5467 }
 0x2b9   :  { %14551 = vst [vmem:[#allocation21_spill] sm:$0xff] %v11702_v33  ;;  %14552 = vst [vmem:[#allocation41_spill] sm:$0xff] %v11704_v39  ;;  %5812 = vperm.xlu0 %9881, %v5295_v7   ;;  %v5246_v7 = vcombine.low %v2721_v8, %v2728_v54  ;;  %v2770_v39 = vrot.slane %v14556_v26, %v11238_v29  ;;  %v5293_v8 = vcombine.low %v3379_v32, %v3386_v53  ;;  %v14558_v54 = vld [vmem:[#allocation105_spill] sm:$0xff]  ;;  %v14559_v33 = vld [vmem:[#allocation106_spill] sm:$0xff] }
 0x2ba   :  { %v3610_v18 = vrot.slane %v14558_v54, %v11238_v29  ;;  %v3645_v5 = vrot.slane %v14559_v33, %v11235_v14  ;;  %v3652_v46 = vrot.slane %v14559_v33, %v11238_v29  ;;  %v14561_v32 = vld [vmem:[#allocation42_spill] sm:$0xff]  ;;  %v4534_v33 = vrot.slane %v11370_v55, %v11238_v29 }
 0x2bb   :  { %v2749_v53 = vrot.slane %v14561_v32, %v11235_v14  ;;  %v2756_v26 = vrot.slane %v14561_v32, %v11238_v29 }
 0x2bc   :  { %v11714_v17 = vpop.permute.xlu1 %5443  ;;  %5632 = vperm.xlu1 %9882, %v5235_v61   ;;  %v11716_v28 = vpop.permute.xlu0 %5473 }
 0x2bd   :  { %14554 = vst [vmem:[#allocation23_spill] sm:$0xff] %v11714_v17  ;;  %5998 = vperm.xlu0 %9881, %v5357_v45   ;;  %v3603_v45 = vrot.slane %v14558_v54, %v11235_v14  ;;  %v5249_v17 = vcombine.low %v2763_v60, %v2770_v39  ;;  %v5312_v39 = vcombine.low %v3645_v5, %v3652_v46  ;;  %v14565_v5 = vld [vmem:[#allocation93_spill] sm:$0xff] }
 0x2be   :  { %v4527_v60 = vrot.slane %v11370_v55, %v11235_v14  ;;  %v3442_v46 = vrot.slane %v14565_v5, %v11238_v29 }
 0x2c0   :  { %v11726_v22 = vpop.permute.xlu1 %5446  ;;  %5665 = vperm.xlu1 %9882, %v5246_v7   ;;  %v11728_v61 = vpop.permute.xlu0 %5479  ;;  %v5375_v55 = vcombine.low %v4527_v60, %v4534_v33  ;;  %v4324_v60 = vrot.slane %v11272_v59, %v11238_v29 }
 0x2c1   :  { %14557 = vst [vmem:[#allocation43_spill] sm:$0xff] %v11726_v22  ;;  %6046 = vperm.xlu0 %9881, %v5373_v48   ;;  %v5309_v48 = vcombine.low %v3603_v45, %v3610_v18  ;;  %v3435_v18 = vrot.slane %v14565_v5, %v11235_v14  ;;  %v14569_v5 = vld [vmem:[#allocation47_spill] sm:$0xff] }
 0x2c4   :  { %v11738_v2 = vpop.permute.xlu1 %5452  ;;  %5806 = vperm.xlu1 %9882, %v5293_v8   ;;  %v11740_v7 = vpop.permute.xlu0 %5485 }
 0x2c5   :  { %14560 = vst [vmem:[#allocation25_spill] sm:$0xff] %v11738_v2  ;;  %5674 = vperm.xlu0 %9881, %v5249_v17   ;;  %v5248_v17 = vcombine.low %v2749_v53, %v2756_v26  ;;  %v14564_v2 = vld [vmem:[#allocation107_spill] sm:$0xff]  ;;  %v4289_v26 = vrot.slane %v11260_v24, %v11235_v14 }
 0x2c6   :  { %v3631_v22 = vrot.slane %v14564_v2, %v11235_v14  ;;  %v3638_v45 = vrot.slane %v14564_v2, %v11238_v29  ;;  %v4296_v2 = vrot.slane %v11260_v24, %v11238_v29  ;;  %v4520_v24 = vrot.slane %v11356_v6, %v11238_v29 }
 0x2c8   :  { %v11750_v54 = vpop.permute.xlu1 %5458  ;;  %5854 = vperm.xlu1 %9882, %v5309_v48   ;;  %v11752_v8 = vpop.permute.xlu0 %5491  ;;  %v5311_v53 = vcombine.low %v3631_v22, %v3638_v45  ;;  %v5358_v22 = vcombine.low %v4289_v26, %v4296_v2  ;;  %v4513_v45 = vrot.slane %v11356_v6, %v11235_v14  ;;  %v14571_v26 = vld [vmem:[#allocation90_spill] sm:$0xff] }
 0x2c9   :  { %14562 = vst [vmem:[#allocation88_spill] sm:$0xff] %v11750_v54  ;;  %14563 = vst [vmem:[#allocation27_spill] sm:$0xff] %v11752_v8  ;;  %5863 = vperm.xlu0 %9881, %v5312_v39   ;;  %v5297_v39 = vcombine.low %v3435_v18, %v3442_v46  ;;  %v4317_v54 = vrot.slane %v11272_v59, %v11235_v14  ;;  %v2791_v18 = vrot.slane %v14569_v5, %v11235_v14 }
 0x2ca   :  { %v2798_v46 = vrot.slane %v14569_v5, %v11238_v29  ;;  %v3421_v2 = vrot.slane %v14571_v26, %v11235_v14  ;;  %v5374_v6 = vcombine.low %v4513_v45, %v4520_v24  ;;  %v4310_v45 = vrot.slane %v11274_v10, %v11238_v29 }
 0x2cb   :  { %v5360_v59 = vcombine.low %v4317_v54, %v4324_v60 }
 0x2cc   :  { %v11762_v32 = vpop.permute.xlu1 %5464  ;;  %5671 = vperm.xlu1 %9882, %v5248_v17   ;;  %v11764_v48 = vpop.permute.xlu0 %5497 }
 0x2cd   :  { %14566 = vst [vmem:[#allocation104_spill] sm:$0xff] %v11762_v32  ;;  %14567 = vst [vmem:[#allocation29_spill] sm:$0xff] %v11764_v48  ;;  %6052 = vperm.xlu0 %9881, %v5375_v55   ;;  %v5251_v32 = vcombine.low %v2791_v18, %v2798_v46  ;;  %v4555_v18 = vrot.slane %v11382_v1, %v11235_v14 }
 0x2d0   :  { %v11774_v33 = vpop.permute.xlu1 %5470  ;;  %5860 = vperm.xlu1 %9882, %v5311_v53   ;;  %v11776_v17 = vpop.permute.xlu0 %5503 }
 0x2d1   :  { %14568 = vst [vmem:[#allocation91_spill] sm:$0xff] %v11776_v17  ;;  %5818 = vperm.xlu0 %9881, %v5297_v39   ;;  %v3428_v39 = vrot.slane %v14571_v26, %v11238_v29  ;;  %v14572_v17 = vld [vmem:[#allocation108_spill] sm:$0xff] }
 0x2d2   :  { %v3673_v48 = vrot.slane %v14572_v17, %v11235_v14  ;;  %v3680_v54 = vrot.slane %v14572_v17, %v11238_v29  ;;  %v4562_v17 = vrot.slane %v11382_v1, %v11238_v29 }
 0x2d3   :  { %v5296_v5 = vcombine.low %v3421_v2, %v3428_v39 }
 0x2d4   :  { %v11786_v55 = vpop.permute.xlu1 %5476  ;;  %6001 = vperm.xlu1 %9882, %v5358_v22   ;;  %v11788_v53 = vpop.permute.xlu0 %5509  ;;  %v5314_v24 = vcombine.low %v3673_v48, %v3680_v54  ;;  %v14576_v48 = vld [vmem:[#allocation46_spill] sm:$0xff]  ;;  %v5377_v1 = vcombine.low %v4555_v18, %v4562_v17 }
 0x2d5   :  { %14570 = vst [vmem:[#allocation31_spill] sm:$0xff] %v11788_v53  ;;  %6007 = vperm.xlu0 %9881, %v5360_v59   ;;  %v4303_v59 = vrot.slane %v11274_v10, %v11235_v14  ;;  %v2812_v54 = vrot.slane %v14576_v48, %v11238_v29 }
 0x2d7   :  { %v5359_v10 = vcombine.low %v4303_v59, %v4310_v45 }
 0x2d8   :  { %v11798_v60 = vpop.permute.xlu1 %5482  ;;  %6049 = vperm.xlu1 %9882, %v5374_v6   ;;  %v11800_v22 = vpop.permute.xlu0 %5515  ;;  %v2805_v6 = vrot.slane %v14576_v48, %v11235_v14 }
 0x2d9   :  { %14573 = vst [vmem:[#allocation40_spill] sm:$0xff] %v11800_v22  ;;  %5680 = vperm.xlu0 %9881, %v5251_v32   ;;  %v14575_v32 = vld [vmem:[#allocation44_spill] sm:$0xff] }
 0x2da   :  { %v2777_v2 = vrot.slane %v14575_v32, %v11235_v14  ;;  %v2784_v39 = vrot.slane %v14575_v32, %v11238_v29  ;;  %v5252_v45 = vcombine.low %v2805_v6, %v2812_v54  ;;  %v14579_v32 = vld [vmem:[#allocation111_spill] sm:$0xff]  ;;  %v4569_v6 = vrot.slane %v11380_v38, %v11235_v14 }
 0x2db   :  { %v3687_v8 = vrot.slane %v14579_v32, %v11235_v14  ;;  %v3694_v18 = vrot.slane %v14579_v32, %v11238_v29  ;;  %v4576_v54 = vrot.slane %v11380_v38, %v11238_v29 }
 0x2dc   :  { %v11810_v46 = vpop.permute.xlu1 %5488  ;;  %5815 = vperm.xlu1 %9882, %v5296_v5   ;;  %v11812_v26 = vpop.permute.xlu0 %5521 }
 0x2dd   :  { %14574 = vst [vmem:[#allocation89_spill] sm:$0xff] %v11812_v26  ;;  %5869 = vperm.xlu0 %9881, %v5314_v24   ;;  %v5250_v24 = vcombine.low %v2777_v2, %v2784_v39  ;;  %v14578_v26 = vld [vmem:[#allocation109_spill] sm:$0xff]  ;;  %v4541_v39 = vrot.slane %v11368_v9, %v11235_v14  ;;  %v5315_v48 = vcombine.low %v3687_v8, %v3694_v18 }
 0x2de   :  { %v3659_v53 = vrot.slane %v14578_v26, %v11235_v14  ;;  %v3666_v59 = vrot.slane %v14578_v26, %v11238_v29  ;;  %v4548_v26 = vrot.slane %v11368_v9, %v11238_v29  ;;  %v14585_v8 = vld [vmem:[#allocation49_spill] sm:$0xff]  ;;  %v5378_v38 = vcombine.low %v4569_v6, %v4576_v54 }
 0x2df   :  { %v2819_v32 = vrot.slane %v14585_v8, %v11235_v14  ;;  %v2826_v18 = vrot.slane %v14585_v8, %v11238_v29 }
 0x2e0   :  { %v11822_v22 = vpop.permute.xlu1 %5494  ;;  %6004 = vperm.xlu1 %9882, %v5359_v10   ;;  %v11824_v5 = vpop.permute.xlu0 %5527  ;;  %v5313_v2 = vcombine.low %v3659_v53, %v3666_v59  ;;  %v14584_v53 = vld [vmem:[#allocation92_spill] sm:$0xff]  ;;  %v5376_v9 = vcombine.low %v4541_v39, %v4548_v26  ;;  %v4338_v39 = vrot.slane %v11286_v58, %v11238_v29 }
 0x2e1   :  { %14577 = vst [vmem:[#allocation45_spill] sm:$0xff] %v11824_v5  ;;  %6058 = vperm.xlu0 %9881, %v5377_v1   ;;  %v3449_v59 = vrot.slane %v14584_v53, %v11235_v14  ;;  %v5253_v26 = vcombine.low %v2819_v32, %v2826_v18  ;;  %v4583_v18 = vrot.slane %v11394_v11, %v11235_v14 }
 0x2e4   :  { %v11834_v17 = vpop.permute.xlu1 %5500  ;;  %5677 = vperm.xlu1 %9882, %v5250_v24   ;;  %v11836_v10 = vpop.permute.xlu0 %5533 }
 0x2e5   :  { %14580 = vst [vmem:[#allocation105_spill] sm:$0xff] %v11834_v17  ;;  %14581 = vst [vmem:[#allocation106_spill] sm:$0xff] %v11836_v10  ;;  %5683 = vperm.xlu0 %9881, %v5252_v45   ;;  %v3456_v45 = vrot.slane %v14584_v53, %v11238_v29  ;;  %v14588_v53 = vld [vmem:[#allocation110_spill] sm:$0xff] }
 0x2e6   :  { %v3701_v5 = vrot.slane %v14588_v53, %v11235_v14  ;;  %v3708_v6 = vrot.slane %v14588_v53, %v11238_v29 }
 0x2e8   :  { %v11846_v1 = vpop.permute.xlu1 %5506  ;;  %5866 = vperm.xlu1 %9882, %v5313_v2   ;;  %v11848_v24 = vpop.permute.xlu0 %5539  ;;  %v5316_v32 = vcombine.low %v3701_v5, %v3708_v6  ;;  %v14595_v5 = vld [vmem:[#allocation48_spill] sm:$0xff] }
 0x2e9   :  { %14582 = vst [vmem:[#allocation42_spill] sm:$0xff] %v11846_v1  ;;  %14583 = vst [vmem:[#allocation107_spill] sm:$0xff] %v11848_v24  ;;  %5872 = vperm.xlu0 %9881, %v5315_v48   ;;  %v5298_v48 = vcombine.low %v3449_v59, %v3456_v45  ;;  %v4331_v24 = vrot.slane %v11286_v58, %v11235_v14  ;;  %v14591_v59 = vld [vmem:[#allocation30_spill] sm:$0xff]  ;;  %v2840_v6 = vrot.slane %v14595_v5, %v11238_v29 }
 0x2ea   :  { %v2581_v45 = vrot.slane %v14591_v59, %v11235_v14  ;;  %v2588_v8 = vrot.slane %v14591_v59, %v11238_v29 }
 0x2eb   :  { %v5361_v58 = vcombine.low %v4331_v24, %v4338_v39  ;;  %v2833_v39 = vrot.slane %v14595_v5, %v11235_v14 }
 0x2ec   :  { %v11858_v10 = vpop.permute.xlu1 %5512  ;;  %6055 = vperm.xlu1 %9882, %v5376_v9   ;;  %v11860_v2 = vpop.permute.xlu0 %5545 }
 0x2ed   :  { %14586 = vst [vmem:[#allocation93_spill] sm:$0xff] %v11858_v10  ;;  %14587 = vst [vmem:[#allocation47_spill] sm:$0xff] %v11860_v2  ;;  %6061 = vperm.xlu0 %9881, %v5378_v38   ;;  %v4590_v38 = vrot.slane %v11394_v11, %v11238_v29 }
 0x2ef   :  { %v5379_v11 = vcombine.low %v4583_v18, %v4590_v38 }
 0x2f0   :  { %v11870_v54 = vpop.permute.xlu1 %5518  ;;  %5821 = vperm.xlu1 %9882, %v5298_v48   ;;  %v11872_v9 = vpop.permute.xlu0 %5551 }
 0x2f1   :  { %14589 = vst [vmem:[#allocation90_spill] sm:$0xff] %v11870_v54  ;;  %14590 = vst [vmem:[#allocation108_spill] sm:$0xff] %v11872_v9  ;;  %5686 = vperm.xlu0 %9881, %v5253_v26   ;;  %v5236_v26 = vcombine.low %v2581_v45, %v2588_v8  ;;  %v14594_v9 = vld [vmem:[#allocation95_spill] sm:$0xff]  ;;  %v4345_v8 = vrot.slane %v11284_v42, %v11235_v14 }
 0x2f2   :  { %v3463_v2 = vrot.slane %v14594_v9, %v11235_v14  ;;  %v3470_v24 = vrot.slane %v14594_v9, %v11238_v29  ;;  %v4352_v9 = vrot.slane %v11284_v42, %v11238_v29 }
 0x2f4   :  { %v11882_v53 = vpop.permute.xlu1 %5524  ;;  %6010 = vperm.xlu1 %9882, %v5361_v58   ;;  %v11884_v48 = vpop.permute.xlu0 %5557  ;;  %v5299_v45 = vcombine.low %v3463_v2, %v3470_v24  ;;  %v14601_v2 = vld [vmem:[#allocation33_spill] sm:$0xff]  ;;  %v5362_v42 = vcombine.low %v4345_v8, %v4352_v9 }
 0x2f5   :  { %14592 = vst [vmem:[#allocation44_spill] sm:$0xff] %v11882_v53  ;;  %14593 = vst [vmem:[#allocation46_spill] sm:$0xff] %v11884_v48  ;;  %5875 = vperm.xlu0 %9881, %v5316_v32   ;;  %v5254_v32 = vcombine.low %v2833_v39, %v2840_v6  ;;  %v14598_v48 = vld [vmem:[#allocation113_spill] sm:$0xff]  ;;  %v2595_v24 = vrot.slane %v14601_v2, %v11235_v14  ;;  %v2602_v5 = vrot.slane %v14601_v2, %v11238_v29 }
 0x2f6   :  { %v3715_v53 = vrot.slane %v14598_v48, %v11235_v14  ;;  %v3722_v18 = vrot.slane %v14598_v48, %v11238_v29  ;;  %v4597_v6 = vrot.slane %v11392_v16, %v11235_v14  ;;  %v4604_v48 = vrot.slane %v11392_v16, %v11238_v29 }
 0x2f8   :  { %v11894_v59 = vpop.permute.xlu1 %5530  ;;  %5635 = vperm.xlu1 %9882, %v5236_v26   ;;  %v11896_v58 = vpop.permute.xlu0 %5563  ;;  %v5317_v39 = vcombine.low %v3715_v53, %v3722_v18  ;;  %v14605_v53 = vld [vmem:[#allocation51_spill] sm:$0xff]  ;;  %v5380_v16 = vcombine.low %v4597_v6, %v4604_v48 }
 0x2f9   :  { %14596 = vst [vmem:[#allocation109_spill] sm:$0xff] %v11894_v59  ;;  %14597 = vst [vmem:[#allocation111_spill] sm:$0xff] %v11896_v58  ;;  %6064 = vperm.xlu0 %9881, %v5379_v11   ;;  %v14604_v58 = vld [vmem:[#allocation94_spill] sm:$0xff]  ;;  %v2847_v9 = vrot.slane %v14605_v53, %v11235_v14  ;;  %v2854_v18 = vrot.slane %v14605_v53, %v11238_v29 }
 0x2fa   :  { %v3484_v8 = vrot.slane %v14604_v58, %v11238_v29 }
 0x2fc   :  { %v11906_v38 = vpop.permute.xlu1 %5536  ;;  %5824 = vperm.xlu1 %9882, %v5299_v45   ;;  %v11908_v26 = vpop.permute.xlu0 %5569 }
 0x2fd   :  { %14599 = vst [vmem:[#allocation92_spill] sm:$0xff] %v11906_v38  ;;  %14600 = vst [vmem:[#allocation49_spill] sm:$0xff] %v11908_v26  ;;  %5689 = vperm.xlu0 %9881, %v5254_v32   ;;  %v5237_v32 = vcombine.low %v2595_v24, %v2602_v5  ;;  %v3477_v38 = vrot.slane %v14604_v58, %v11235_v14  ;;  %v4359_v5 = vrot.slane %v11298_v3, %v11235_v14 }
 0x2fe   :  { %v4366_v58 = vrot.slane %v11298_v3, %v11238_v29 }
 0x2ff   :  { %v5300_v24 = vcombine.low %v3477_v38, %v3484_v8  ;;  %v14611_v38 = vld [vmem:[#allocation32_spill] sm:$0xff] }
 0x300   :  { %v11918_v11 = vpop.permute.xlu1 %5542  ;;  %6013 = vperm.xlu1 %9882, %v5362_v42   ;;  %v11920_v45 = vpop.permute.xlu0 %5575  ;;  %v2609_v8 = vrot.slane %v14611_v38, %v11235_v14  ;;  %v2616_v53 = vrot.slane %v14611_v38, %v11238_v29  ;;  %v5363_v3 = vcombine.low %v4359_v5, %v4366_v58 }
 0x301   :  { %14602 = vst [vmem:[#allocation110_spill] sm:$0xff] %v11918_v11  ;;  %14603 = vst [vmem:[#allocation30_spill] sm:$0xff] %v11920_v45  ;;  %5878 = vperm.xlu0 %9881, %v5317_v39   ;;  %v5255_v39 = vcombine.low %v2847_v9, %v2854_v18  ;;  %v14608_v11 = vld [vmem:[#allocation112_spill] sm:$0xff]  ;;  %v4611_v18 = vrot.slane %v11406_v21, %v11235_v14 }
 0x302   :  { %v3729_v59 = vrot.slane %v14608_v11, %v11235_v14  ;;  %v3736_v6 = vrot.slane %v14608_v11, %v11238_v29  ;;  %v4618_v11 = vrot.slane %v11406_v21, %v11238_v29 }
 0x304   :  { %v11930_v2 = vpop.permute.xlu1 %5548  ;;  %5638 = vperm.xlu1 %9882, %v5237_v32   ;;  %v11932_v42 = vpop.permute.xlu0 %5581  ;;  %v5318_v9 = vcombine.low %v3729_v59, %v3736_v6  ;;  %v14615_v59 = vld [vmem:[#allocation50_spill] sm:$0xff]  ;;  %v5381_v21 = vcombine.low %v4611_v18, %v4618_v11 }
 0x305   :  { %14606 = vst [vmem:[#allocation95_spill] sm:$0xff] %v11930_v2  ;;  %14607 = vst [vmem:[#allocation48_spill] sm:$0xff] %v11932_v42  ;;  %6067 = vperm.xlu0 %9881, %v5380_v16   ;;  %v2861_v58 = vrot.slane %v14615_v59, %v11235_v14  ;;  %v2868_v6 = vrot.slane %v14615_v59, %v11238_v29 }
 0x308   :  { %v11942_v48 = vpop.permute.xlu1 %5554  ;;  %5827 = vperm.xlu1 %9882, %v5300_v24   ;;  %v11944_v32 = vpop.permute.xlu0 %5587 }
 0x309   :  { %14609 = vst [vmem:[#allocation113_spill] sm:$0xff] %v11942_v48  ;;  %14610 = vst [vmem:[#allocation33_spill] sm:$0xff] %v11944_v32  ;;  %5692 = vperm.xlu0 %9881, %v5255_v39   ;;  %v5238_v39 = vcombine.low %v2609_v8, %v2616_v53  ;;  %v14614_v48 = vld [vmem:[#allocation97_spill] sm:$0xff]  ;;  %v4373_v53 = vrot.slane %v11296_v36, %v11235_v14  ;;  %v14634_v32 = vld [vmem:[#allocation99_spill] sm:$0xff] }
 0x30a   :  { %v3491_v2 = vrot.slane %v14614_v48, %v11235_v14  ;;  %v3498_v5 = vrot.slane %v14614_v48, %v11238_v29  ;;  %v4380_v48 = vrot.slane %v11296_v36, %v11238_v29 }
 0x30c   :  { %v11954_v16 = vpop.permute.xlu1 %5560  ;;  %6016 = vperm.xlu1 %9882, %v5363_v3   ;;  %v11956_v24 = vpop.permute.xlu0 %5593  ;;  %v5301_v8 = vcombine.low %v3491_v2, %v3498_v5  ;;  %v14621_v2 = vld [vmem:[#allocation35_spill] sm:$0xff]  ;;  %v5364_v36 = vcombine.low %v4373_v53, %v4380_v48 }
 0x30d   :  { %14612 = vst [vmem:[#allocation94_spill] sm:$0xff] %v11954_v16  ;;  %14613 = vst [vmem:[#allocation51_spill] sm:$0xff] %v11956_v24  ;;  %5881 = vperm.xlu0 %9881, %v5318_v9   ;;  %v5256_v9 = vcombine.low %v2861_v58, %v2868_v6  ;;  %v14618_v16 = vld [vmem:[#allocation115_spill] sm:$0xff]  ;;  %v2623_v5 = vrot.slane %v14621_v2, %v11235_v14  ;;  %v2630_v59 = vrot.slane %v14621_v2, %v11238_v29 }
 0x30e   :  { %v3743_v24 = vrot.slane %v14618_v16, %v11235_v14  ;;  %v3750_v18 = vrot.slane %v14618_v16, %v11238_v29  ;;  %v4625_v6 = vrot.slane %v11404_v13, %v11235_v14  ;;  %v4632_v16 = vrot.slane %v11404_v13, %v11238_v29 }
 0x310   :  { %v11966_v38 = vpop.permute.xlu1 %5566  ;;  %5641 = vperm.xlu1 %9882, %v5238_v39   ;;  %v11968_v3 = vpop.permute.xlu0 %5599  ;;  %v5319_v58 = vcombine.low %v3743_v24, %v3750_v18  ;;  %v14625_v24 = vld [vmem:[#allocation53_spill] sm:$0xff]  ;;  %v5382_v13 = vcombine.low %v4625_v6, %v4632_v16 }
 0x311   :  { %14616 = vst [vmem:[#allocation112_spill] sm:$0xff] %v11966_v38  ;;  %14617 = vst [vmem:[#allocation32_spill] sm:$0xff] %v11968_v3  ;;  %6070 = vperm.xlu0 %9881, %v5381_v21   ;;  %v2875_v48 = vrot.slane %v14625_v24, %v11235_v14  ;;  %v2882_v18 = vrot.slane %v14625_v24, %v11238_v29 }
 0x314   :  { %v11978_v11 = vpop.permute.xlu1 %5572  ;;  %5830 = vperm.xlu1 %9882, %v5301_v8   ;;  %v11980_v39 = vpop.permute.xlu0 %5605 }
 0x315   :  { %14619 = vst [vmem:[#allocation97_spill] sm:$0xff] %v11978_v11  ;;  %14620 = vst [vmem:[#allocation50_spill] sm:$0xff] %v11980_v39  ;;  %5695 = vperm.xlu0 %9881, %v5256_v9   ;;  %v5239_v9 = vcombine.low %v2623_v5, %v2630_v59  ;;  %v14624_v39 = vld [vmem:[#allocation96_spill] sm:$0xff]  ;;  %v4387_v59 = vrot.slane %v11310_v20, %v11235_v14 }
 0x316   :  { %v3505_v3 = vrot.slane %v14624_v39, %v11235_v14  ;;  %v3512_v53 = vrot.slane %v14624_v39, %v11238_v29  ;;  %v4394_v39 = vrot.slane %v11310_v20, %v11238_v29 }
 0x318   :  { %v11990_v21 = vpop.permute.xlu1 %5578  ;;  %6019 = vperm.xlu1 %9882, %v5364_v36   ;;  %v11992_v8 = vpop.permute.xlu0 %5611  ;;  %v5302_v5 = vcombine.low %v3505_v3, %v3512_v53  ;;  %v14631_v3 = vld [vmem:[#allocation34_spill] sm:$0xff]  ;;  %v5365_v20 = vcombine.low %v4387_v59, %v4394_v39  ;;  %v3526_v59 = vrot.slane %v14634_v32, %v11238_v29 }
 0x319   :  { %14622 = vst [vmem:[#allocation115_spill] sm:$0xff] %v11990_v21  ;;  %14623 = vst [vmem:[#allocation35_spill] sm:$0xff] %v11992_v8  ;;  %5884 = vperm.xlu0 %9881, %v5319_v58   ;;  %v5257_v58 = vcombine.low %v2875_v48, %v2882_v18  ;;  %v14628_v8 = vld [vmem:[#allocation114_spill] sm:$0xff]  ;;  %v2637_v53 = vrot.slane %v14631_v3, %v11235_v14  ;;  %v2644_v24 = vrot.slane %v14631_v3, %v11238_v29 }
 0x31a   :  { %v3757_v54 = vrot.slane %v14628_v8, %v11235_v14  ;;  %v3764_v6 = vrot.slane %v14628_v8, %v11238_v29  ;;  %v4639_v18 = vrot.slane %v11418_v31, %v11235_v14  ;;  %v4646_v8 = vrot.slane %v11418_v31, %v11238_v29 }
 0x31b   :  { %v4674_v21 = vrot.slane %v11430_v40, %v11238_v29 }
 0x31c   :  { %v12002_v2 = vpop.permute.xlu1 %5584  ;;  %5644 = vperm.xlu1 %9882, %v5239_v9   ;;  %v12004_v36 = vpop.permute.xlu0 %5617  ;;  %v5320_v48 = vcombine.low %v3757_v54, %v3764_v6  ;;  %v14635_v54 = vld [vmem:[#allocation52_spill] sm:$0xff]  ;;  %v5383_v31 = vcombine.low %v4639_v18, %v4646_v8 }
 0x31d   :  { %14626 = vst [vmem:[#allocation96_spill] sm:$0xff] %v12002_v2  ;;  %14627 = vst [vmem:[#allocation53_spill] sm:$0xff] %v12004_v36  ;;  %6073 = vperm.xlu0 %9881, %v5382_v13   ;;  %v2889_v39 = vrot.slane %v14635_v54, %v11235_v14  ;;  %v2896_v6 = vrot.slane %v14635_v54, %v11238_v29  ;;  %v14648_v2 = vld [vmem:[#allocation116_spill] sm:$0xff]  ;;  %v4989_v36 = vrot.slane %v11560_v47, %v11235_v14 }
 0x31e   :  { %v3785_v45 = vrot.slane %v14648_v2, %v11235_v14 }
 0x320   :  { %v12014_v16 = vpop.permute.xlu1 %5590  ;;  %5833 = vperm.xlu1 %9882, %v5302_v5   ;;  %v12016_v9 = vpop.permute.xlu0 %5623 }
 0x321   :  { %14629 = vst [vmem:[#allocation114_spill] sm:$0xff] %v12014_v16  ;;  %14630 = vst [vmem:[#allocation167_spill] sm:$0xff] %v12016_v9  ;;  %5698 = vperm.xlu0 %9881, %v5257_v58   ;;  %v5240_v58 = vcombine.low %v2637_v53, %v2644_v24  ;;  %v3519_v16 = vrot.slane %v14634_v32, %v11235_v14  ;;  %v4401_v24 = vrot.slane %v11308_v57, %v11235_v14 }
 0x322   :  { %v4408_v32 = vrot.slane %v11308_v57, %v11238_v29 }
 0x323   :  { %v5303_v53 = vcombine.low %v3519_v16, %v3526_v59  ;;  %v14641_v16 = vld [vmem:[#allocation37_spill] sm:$0xff] }
 0x324   :  { %v12026_v13 = vpop.permute.xlu1 %5596  ;;  %6022 = vperm.xlu1 %9882, %v5365_v20   ;;  %v12028_v5 = vpop.permute.xlu0 %5629  ;;  %v2651_v59 = vrot.slane %v14641_v16, %v11235_v14  ;;  %v2658_v54 = vrot.slane %v14641_v16, %v11238_v29  ;;  %v5366_v57 = vcombine.low %v4401_v24, %v4408_v32 }
 0x325   :  { %14632 = vst [vmem:[#allocation34_spill] sm:$0xff] %v12026_v13  ;;  %14633 = vst [vmem:[#allocation168_spill] sm:$0xff] %v12028_v5  ;;  %5887 = vperm.xlu0 %9881, %v5320_v48   ;;  %v5258_v48 = vcombine.low %v2889_v39, %v2896_v6  ;;  %v14638_v13 = vld [vmem:[#allocation117_spill] sm:$0xff]  ;;  %v4653_v6 = vrot.slane %v11416_v23, %v11235_v14 }
 0x326   :  { %v3771_v42 = vrot.slane %v14638_v13, %v11235_v14  ;;  %v3778_v18 = vrot.slane %v14638_v13, %v11238_v29  ;;  %v4660_v13 = vrot.slane %v11416_v23, %v11238_v29 }
 0x328   :  { %v12038_v3 = vpop.permute.xlu1 %5602  ;;  %5647 = vperm.xlu1 %9882, %v5240_v58   ;;  %v12040_v20 = vpop.permute.xlu0 %5662  ;;  %v5321_v39 = vcombine.low %v3771_v42, %v3778_v18  ;;  %v14645_v42 = vld [vmem:[#allocation55_spill] sm:$0xff]  ;;  %v5384_v23 = vcombine.low %v4653_v6, %v4660_v13  ;;  %v3792_v6 = vrot.slane %v14648_v2, %v11238_v29 }
 0x329   :  { %14636 = vst [vmem:[#allocation99_spill] sm:$0xff] %v12038_v3  ;;  %14637 = vst [vmem:[#allocation52_spill] sm:$0xff] %v12040_v20  ;;  %6076 = vperm.xlu0 %9881, %v5383_v31   ;;  %v2903_v32 = vrot.slane %v14645_v42, %v11235_v14  ;;  %v2910_v18 = vrot.slane %v14645_v42, %v11238_v29  ;;  %v9888_v2 = vld [vmem:[%s14157_s1 + $0x8] ss:$16 sps:$4 sm:$0xff]   ;;  %v14651_v42 = vld [vmem:[#allocation36_spill] sm:$0xff] }
 0x32c   :  { %v12050_v8 = vpop.permute.xlu1 %5608  ;;  %5836 = vperm.xlu1 %9882, %v5303_v53   ;;  %v12052_v58 = vpop.permute.xlu0 %5668 }
 0x32d   :  { %14639 = vst [vmem:[#allocation117_spill] sm:$0xff] %v12050_v8  ;;  %14640 = vst [vmem:[#allocation169_spill] sm:$0xff] %v12052_v58  ;;  %5701 = vperm.xlu0 %9881, %v5258_v48   ;;  %v5241_v48 = vcombine.low %v2651_v59, %v2658_v54  ;;  %v14644_v8 = vld [vmem:[#allocation98_spill] sm:$0xff]  ;;  %v4415_v54 = vrot.slane %v11322_v27, %v11235_v14 }
 0x32e   :  { %v3533_v3 = vrot.slane %v14644_v8, %v11235_v14  ;;  %v3540_v24 = vrot.slane %v14644_v8, %v11238_v29  ;;  %v4422_v8 = vrot.slane %v11322_v27, %v11238_v29  ;;  %v9885_v27 = vld [vmem:[%s14157_s1 + $0xc] ss:$16 sps:$4 sm:$0xff]  }
 0x32f   :  { %8375 = vmatprep.subr.bf16.mxu1 %v9885_v27 }
 0x330   :  { %v12062_v31 = vpop.permute.xlu1 %5614  ;;  %6025 = vperm.xlu1 %9882, %v5366_v57   ;;  %v12064_v53 = vpop.permute.xlu0 %5809  ;;  %v5304_v59 = vcombine.low %v3533_v3, %v3540_v24  ;;  %v9883_v3 = vld [vmem:[%s14157_s1 + $0x4] ss:$16 sps:$4 sm:$0xff]   ;;  %v9887_v24 = vld [vmem:[%s14157_s1] ss:$16 sps:$4 sm:$0xff]   ;;  %8376 = vmatpush1.bf16.msra.mxu1 %v9888_v2 }
 0x331   :  { %14642 = vst [vmem:[#allocation37_spill] sm:$0xff] %v12062_v31  ;;  %14643 = vst [vmem:[#allocation170_spill] sm:$0xff] %v12064_v53  ;;  %5890 = vperm.xlu0 %9881, %v5321_v39   ;;  %v5259_v39 = vcombine.low %v2903_v32, %v2910_v18  ;;  %v2665_v32 = vrot.slane %v14651_v42, %v11235_v14  ;;  %v2672_v18 = vrot.slane %v14651_v42, %v11238_v29  ;;  %v14655_v2 = vld [vmem:[#allocation54_spill] sm:$0xff] }
 0x332   :  { %8293 = vmatprep.subr.bf16.mxu0 %v9883_v3  ;;  %v14654_v3 = vld [vmem:[#allocation101_spill] sm:$0xff]  ;;  %v2917_v42 = vrot.slane %v14655_v2, %v11235_v14 }
 0x333   :  { %8294 = vmatpush1.bf16.msra.mxu0 %v9887_v24  ;;  %v3547_v27 = vrot.slane %v14654_v3, %v11235_v14  ;;  %v3554_v24 = vrot.slane %v14654_v3, %v11238_v29  ;;  %v14658_v3 = vld [vmem:[#allocation119_spill] sm:$0xff] }
 0x334   :  { %v12074_v16 = vpop.permute.xlu1 %5620  ;;  %5650 = vperm.xlu1 %9882, %v5241_v48   ;;  %v12076_v57 = vpop.permute.xlu0 %5857 }
 0x335   :  { %14646 = vst [vmem:[#allocation98_spill] sm:$0xff] %v12074_v16  ;;  %14647 = vst [vmem:[#allocation55_spill] sm:$0xff] %v12076_v57  ;;  %6079 = vperm.xlu0 %9881, %v5384_v23   ;;  %v5367_v23 = vcombine.low %v4415_v54, %v4422_v8  ;;  %v9889_v54 = vld [vmem:[%s14157_s1 + $0x24] ss:$16 sps:$4 sm:$0xff]   ;;  %v9894_v8 = vld [vmem:[%s14157_s1 + $0x28] ss:$16 sps:$4 sm:$0xff]  }
 0x336   :  { %8295 = vmatprep.subr.bf16.mxu0 %v9889_v54  ;;  %v9897_v54 = vld [vmem:[%s14157_s1 + $0x4c] ss:$16 sps:$4 sm:$0xff]   ;;  %v14749_v16 = vld [vmem:[#allocation129_spill] sm:$0xff] }
 0x337   :  { %v3939_v31 = vrot.slane %v14749_v16, %v11235_v14 }
 0x338   :  { %v12086_v13 = vpop.permute.xlu1 %5626  ;;  %5839 = vperm.xlu1 %9882, %v5304_v59   ;;  %v12088_v48 = vpop.permute.xlu0 %5812  ;;  %v5322_v59 = vcombine.low %v3785_v45, %v3792_v6  ;;  %v9891_v45 = vld [vmem:[%s14157_s1 + $0x2c] ss:$16 sps:$4 sm:$0xff]   ;;  %v5242_v6 = vcombine.low %v2665_v32, %v2672_v18  ;;  %v9895_v18 = vld [vmem:[%s14157_s1 + $0x44] ss:$16 sps:$4 sm:$0xff]  }
 0x339   :  { %14649 = vst [vmem:[#allocation116_spill] sm:$0xff] %v12086_v13  ;;  %14650 = vst [vmem:[#allocation171_spill] sm:$0xff] %v12088_v48  ;;  %5704 = vperm.xlu0 %9881, %v5259_v39   ;;  %v4667_v39 = vrot.slane %v11430_v40, %v11235_v14  ;;  %v9893_v40 = vld [vmem:[%s14157_s1 + $0x20] ss:$16 sps:$4 sm:$0xff]   ;;  %8377 = vmatprep.subr.bf16.mxu1 %v9891_v45  ;;  %v5305_v45 = vcombine.low %v3547_v27, %v3554_v24  ;;  %v9903_v24 = vld [vmem:[%s14157_s1 + $0x6c] ss:$16 sps:$4 sm:$0xff]  }
 0x33a   :  { %8296 = vmatpush1.bf16.msra.mxu0 %v9893_v40  ;;  %8378 = vmatpush1.bf16.msra.mxu1 %v9894_v8  ;;  %v4429_v40 = vrot.slane %v11320_v19, %v11235_v14  ;;  %v4436_v8 = vrot.slane %v11320_v19, %v11238_v29  ;;  %v9901_v19 = vld [vmem:[%s14157_s1 + $0x64] ss:$16 sps:$4 sm:$0xff]  }
 0x33b   :  { %8297 = vmatprep.subr.bf16.mxu0 %v9895_v18  ;;  %8379 = vmatprep.subr.bf16.mxu1 %v9897_v54  ;;  %v14661_v18 = vld [vmem:[#allocation39_spill] sm:$0xff] }
 0x33c   :  { %v12110_v26 = vpop.permute.xlu1 %5632  ;;  %6028 = vperm.xlu1 %9882, %v5367_v23   ;;  %v12112_v11 = vpop.permute.xlu0 %5998  ;;  %v2924_v23 = vrot.slane %v14655_v2, %v11238_v29  ;;  %v3799_v2 = vrot.slane %v14658_v3, %v11235_v14  ;;  %v2679_v54 = vrot.slane %v14661_v18, %v11235_v14  ;;  %v14719_v48 = vld [vmem:[#allocation67_spill] sm:$0xff] }
 0x33d   :  { %14652 = vst [vmem:[#allocation36_spill] sm:$0xff] %v12110_v26  ;;  %14653 = vst [vmem:[#allocation172_spill] sm:$0xff] %v12112_v11  ;;  %5893 = vperm.xlu0 %9881, %v5322_v59   ;;  %v5385_v59 = vcombine.low %v4667_v39, %v4674_v21  ;;  %v9899_v21 = vld [vmem:[%s14157_s1 + $0x40] ss:$16 sps:$4 sm:$0xff]   ;;  %v9900_v39 = vld [vmem:[%s14157_s1 + $0x48] ss:$16 sps:$4 sm:$0xff]  }
 0x33e   :  { %8298 = vmatpush1.bf16.msra.mxu0 %v9899_v21  ;;  %8380 = vmatpush1.bf16.msra.mxu1 %v9900_v39  ;;  %v2686_v21 = vrot.slane %v14661_v18, %v11238_v29  ;;  %v5368_v39 = vcombine.low %v4429_v40, %v4436_v8  ;;  %v9907_v40 = vld [vmem:[%s14157_s1 + $0x84] ss:$16 sps:$4 sm:$0xff]   ;;  %v9909_v8 = vld [vmem:[%s14157_s1 + $0x8c] ss:$16 sps:$4 sm:$0xff]  }
 0x33f   :  { %8299 = vmatprep.subr.bf16.mxu0 %v9901_v19  ;;  %8381 = vmatprep.subr.bf16.mxu1 %v9903_v24  ;;  %v14664_v19 = vld [vmem:[#allocation100_spill] sm:$0xff] }
 0x340   :  { %v12134_v38 = vpop.permute.xlu1 %5665  ;;  %5653 = vperm.xlu1 %9882, %v5242_v6   ;;  %v12136_v32 = vpop.permute.xlu0 %6046  ;;  %v5260_v6 = vcombine.low %v2917_v42, %v2924_v23  ;;  %v9905_v42 = vld [vmem:[%s14157_s1 + $0x60] ss:$16 sps:$4 sm:$0xff]   ;;  %v9906_v23 = vld [vmem:[%s14157_s1 + $0x68] ss:$16 sps:$4 sm:$0xff]   ;;  %v3561_v24 = vrot.slane %v14664_v19, %v11235_v14 }
 0x341   :  { %14656 = vst [vmem:[#allocation101_spill] sm:$0xff] %v12134_v38  ;;  %14657 = vst [vmem:[#allocation54_spill] sm:$0xff] %v12136_v32  ;;  %6082 = vperm.xlu0 %9881, %v5385_v59   ;;  %v3806_v59 = vrot.slane %v14658_v3, %v11238_v29  ;;  %v4688_v3 = vrot.slane %v11428_v30, %v11238_v29 }
 0x342   :  { %8300 = vmatpush1.bf16.msra.mxu0 %v9905_v42  ;;  %8382 = vmatpush1.bf16.msra.mxu1 %v9906_v23  ;;  %v3568_v42 = vrot.slane %v14664_v19, %v11238_v29  ;;  %v14665_v23 = vld [vmem:[#allocation118_spill] sm:$0xff]  ;;  %v4695_v19 = vrot.slane %v11442_v50, %v11235_v14 }
 0x343   :  { %8301 = vmatprep.subr.bf16.mxu0 %v9907_v40  ;;  %8383 = vmatprep.subr.bf16.mxu1 %v9909_v8  ;;  %v3813_v18 = vrot.slane %v14665_v23, %v11235_v14  ;;  %v9915_v40 = vld [vmem:[%s14157_s1 + $0xac] ss:$16 sps:$4 sm:$0xff]  }
 0x344   :  { %v12158_v11 = vpop.permute.xlu1 %5806  ;;  %5842 = vperm.xlu1 %9882, %v5305_v45   ;;  %v12160_v27 = vpop.permute.xlu0 %5674  ;;  %v5323_v45 = vcombine.low %v3799_v2, %v3806_v59  ;;  %v9912_v2 = vld [vmem:[%s14157_s1 + $0x88] ss:$16 sps:$4 sm:$0xff]   ;;  %v5243_v59 = vcombine.low %v2679_v54, %v2686_v21  ;;  %v9913_v21 = vld [vmem:[%s14157_s1 + $0xa4] ss:$16 sps:$4 sm:$0xff]   ;;  %v5306_v8 = vcombine.low %v3561_v24, %v3568_v42  ;;  %v9921_v42 = vld [vmem:[%s14157_s1 + $0xcc] ss:$16 sps:$4 sm:$0xff]  }
 0x345   :  { %14659 = vst [vmem:[#allocation119_spill] sm:$0xff] %v12158_v11  ;;  %14660 = vst [vmem:[#allocation173_spill] sm:$0xff] %v12160_v27  ;;  %5707 = vperm.xlu0 %9881, %v5260_v6   ;;  %v4681_v6 = vrot.slane %v11428_v30, %v11235_v14  ;;  %v9911_v30 = vld [vmem:[%s14157_s1 + $0x80] ss:$16 sps:$4 sm:$0xff]   ;;  %v14745_v11 = vld [vmem:[#allocation125_spill] sm:$0xff] }
 0x346   :  { %8302 = vmatpush1.bf16.msra.mxu0 %v9911_v30  ;;  %8384 = vmatpush1.bf16.msra.mxu1 %v9912_v2  ;;  %v4443_v30 = vrot.slane %v11334_v34, %v11235_v14  ;;  %v4450_v2 = vrot.slane %v11334_v34, %v11238_v29  ;;  %v9919_v34 = vld [vmem:[%s14157_s1 + $0xc4] ss:$16 sps:$4 sm:$0xff]   ;;  %v3890_v20 = vrot.slane %v14745_v11, %v11238_v29 }
 0x347   :  { %8303 = vmatprep.subr.bf16.mxu0 %v9913_v21  ;;  %8385 = vmatprep.subr.bf16.mxu1 %v9915_v40 }
 0x348   :  { %v12182_v27 = vpop.permute.xlu1 %5854  ;;  %6031 = vperm.xlu1 %9882, %v5368_v39   ;;  %v12184_v32 = vpop.permute.xlu0 %5863  ;;  %v3820_v39 = vrot.slane %v14665_v23, %v11238_v29  ;;  %v4702_v23 = vrot.slane %v11442_v50, %v11238_v29  ;;  %v9923_v50 = vld [vmem:[%s14157_s1 + $0xc0] ss:$16 sps:$4 sm:$0xff]  }
 0x349   :  { %14662 = vst [vmem:[#allocation39_spill] sm:$0xff] %v12182_v27  ;;  %14663 = vst [vmem:[#allocation174_spill] sm:$0xff] %v12184_v32  ;;  %5896 = vperm.xlu0 %9881, %v5323_v45   ;;  %v5386_v45 = vcombine.low %v4681_v6, %v4688_v3  ;;  %v9917_v6 = vld [vmem:[%s14157_s1 + $0xa0] ss:$16 sps:$4 sm:$0xff]   ;;  %v9918_v3 = vld [vmem:[%s14157_s1 + $0xa8] ss:$16 sps:$4 sm:$0xff]  }
 0x34a   :  { %8304 = vmatpush1.bf16.msra.mxu0 %v9917_v6  ;;  %8386 = vmatpush1.bf16.msra.mxu1 %v9918_v3  ;;  %v5369_v6 = vcombine.low %v4443_v30, %v4450_v2  ;;  %v4709_v3 = vrot.slane %v11440_v37, %v11235_v14  ;;  %v9925_v30 = vld [vmem:[%s14157_s1 + $0xe4] ss:$16 sps:$4 sm:$0xff]   ;;  %v9927_v2 = vld [vmem:[%s14157_s1 + $0xec] ss:$16 sps:$4 sm:$0xff]  }
 0x34b   :  { %8305 = vmatprep.subr.bf16.mxu0 %v9919_v34  ;;  %8387 = vmatprep.subr.bf16.mxu1 %v9921_v42  ;;  %v14673_v34 = vld [vmem:[#allocation103_spill] sm:$0xff] }
 0x34c   :  { %v12206_v32 = vpop.permute.xlu1 %5671  ;;  %5656 = vperm.xlu1 %9882, %v5243_v59   ;;  %v12208_v54 = vpop.permute.xlu0 %6052  ;;  %v5324_v59 = vcombine.low %v3813_v18, %v3820_v39  ;;  %v9924_v18 = vld [vmem:[%s14157_s1 + $0xc8] ss:$16 sps:$4 sm:$0xff]   ;;  %v14670_v39 = vld [vmem:[#allocation38_spill] sm:$0xff]  ;;  %v3575_v42 = vrot.slane %v14673_v34, %v11235_v14 }
 0x34d   :  { %14666 = vst [vmem:[#allocation100_spill] sm:$0xff] %v12206_v32  ;;  %14667 = vst [vmem:[#allocation118_spill] sm:$0xff] %v12208_v54  ;;  %6085 = vperm.xlu0 %9881, %v5386_v45   ;;  %v2693_v21 = vrot.slane %v14670_v39, %v11235_v14  ;;  %v2700_v40 = vrot.slane %v14670_v39, %v11238_v29 }
 0x34e   :  { %8306 = vmatpush1.bf16.msra.mxu0 %v9923_v50  ;;  %8388 = vmatpush1.bf16.msra.mxu1 %v9924_v18  ;;  %v3582_v50 = vrot.slane %v14673_v34, %v11238_v29  ;;  %v14674_v18 = vld [vmem:[#allocation56_spill] sm:$0xff] }
 0x34f   :  { %8307 = vmatprep.subr.bf16.mxu0 %v9925_v30  ;;  %8389 = vmatprep.subr.bf16.mxu1 %v9927_v2  ;;  %v2945_v39 = vrot.slane %v14674_v18, %v11235_v14  ;;  %v9933_v30 = vld [vmem:[%s14157_s1 + $0x10c] ss:$16 sps:$4 sm:$0xff]  }
 0x350   :  { %v12230_v45 = vpop.permute.xlu1 %5860  ;;  %5845 = vperm.xlu1 %9882, %v5306_v8   ;;  %v12232_v24 = vpop.permute.xlu0 %5818  ;;  %v4716_v8 = vrot.slane %v11440_v37, %v11238_v29  ;;  %v9929_v37 = vld [vmem:[%s14157_s1 + $0xe0] ss:$16 sps:$4 sm:$0xff]   ;;  %v5307_v2 = vcombine.low %v3575_v42, %v3582_v50  ;;  %v9939_v50 = vld [vmem:[%s14157_s1 + $0x12c] ss:$16 sps:$4 sm:$0xff]  }
 0x351   :  { %14668 = vst [vmem:[#allocation175_spill] sm:$0xff] %v12230_v45  ;;  %14669 = vst [vmem:[#allocation176_spill] sm:$0xff] %v12232_v24  ;;  %5899 = vperm.xlu0 %9881, %v5324_v59   ;;  %v5387_v59 = vcombine.low %v4695_v19, %v4702_v23  ;;  %v9930_v19 = vld [vmem:[%s14157_s1 + $0xe8] ss:$16 sps:$4 sm:$0xff]   ;;  %v5244_v23 = vcombine.low %v2693_v21, %v2700_v40  ;;  %v9931_v40 = vld [vmem:[%s14157_s1 + $0x104] ss:$16 sps:$4 sm:$0xff]   ;;  %v4975_v45 = vrot.slane %v11562_v49, %v11235_v14 }
 0x352   :  { %8308 = vmatpush1.bf16.msra.mxu0 %v9929_v37  ;;  %8390 = vmatpush1.bf16.msra.mxu1 %v9930_v19  ;;  %v4457_v37 = vrot.slane %v11332_v63, %v11235_v14  ;;  %v4464_v19 = vrot.slane %v11332_v63, %v11238_v29  ;;  %v14677_v34 = vld [vmem:[#allocation72_spill] sm:$0xff]  ;;  %v9937_v63 = vld [vmem:[%s14157_s1 + $0x124] ss:$16 sps:$4 sm:$0xff]  }
 0x353   :  { %8309 = vmatprep.subr.bf16.mxu0 %v9931_v40  ;;  %8391 = vmatprep.subr.bf16.mxu1 %v9933_v30  ;;  %v14680_v40 = vld [vmem:[#allocation102_spill] sm:$0xff] }
 0x354   :  { %v12254_v24 = vpop.permute.xlu1 %6001  ;;  %6034 = vperm.xlu1 %9882, %v5369_v6   ;;  %v12256_v54 = vpop.permute.xlu0 %6007  ;;  %v2952_v6 = vrot.slane %v14674_v18, %v11238_v29  ;;  %v3169_v18 = vrot.slane %v14677_v34, %v11235_v14  ;;  %v3589_v30 = vrot.slane %v14680_v40, %v11235_v14 }
 0x355   :  { %14671 = vst [vmem:[#allocation38_spill] sm:$0xff] %v12254_v24  ;;  %14672 = vst [vmem:[#allocation177_spill] sm:$0xff] %v12256_v54  ;;  %6088 = vperm.xlu0 %9881, %v5387_v59   ;;  %v5388_v59 = vcombine.low %v4709_v3, %v4716_v8  ;;  %v9935_v3 = vld [vmem:[%s14157_s1 + $0x100] ss:$16 sps:$4 sm:$0xff]   ;;  %v9936_v8 = vld [vmem:[%s14157_s1 + $0x108] ss:$16 sps:$4 sm:$0xff]  }
 0x356   :  { %8310 = vmatpush1.bf16.msra.mxu0 %v9935_v3  ;;  %8392 = vmatpush1.bf16.msra.mxu1 %v9936_v8  ;;  %v3596_v3 = vrot.slane %v14680_v40, %v11238_v29  ;;  %v5370_v8 = vcombine.low %v4457_v37, %v4464_v19  ;;  %v9943_v37 = vld [vmem:[%s14157_s1 + $0x144] ss:$16 sps:$4 sm:$0xff]   ;;  %v9945_v19 = vld [vmem:[%s14157_s1 + $0x14c] ss:$16 sps:$4 sm:$0xff]  }
 0x357   :  { %8311 = vmatprep.subr.bf16.mxu0 %v9937_v63  ;;  %8393 = vmatprep.subr.bf16.mxu1 %v9939_v50  ;;  %v4471_v50 = vrot.slane %v11346_v41, %v11235_v14  ;;  %v14684_v40 = vld [vmem:[#allocation120_spill] sm:$0xff] }
 0x358   :  { %v12278_v54 = vpop.permute.xlu1 %6049  ;;  %5659 = vperm.xlu1 %9882, %v5244_v23   ;;  %v12280_v21 = vpop.permute.xlu0 %5680  ;;  %v5262_v23 = vcombine.low %v2945_v39, %v2952_v6  ;;  %v9941_v39 = vld [vmem:[%s14157_s1 + $0x120] ss:$16 sps:$4 sm:$0xff]   ;;  %v9942_v6 = vld [vmem:[%s14157_s1 + $0x128] ss:$16 sps:$4 sm:$0xff]   ;;  %v5308_v63 = vcombine.low %v3589_v30, %v3596_v3 }
 0x359   :  { %14675 = vst [vmem:[#allocation103_spill] sm:$0xff] %v12278_v54  ;;  %14676 = vst [vmem:[#allocation56_spill] sm:$0xff] %v12280_v21  ;;  %6091 = vperm.xlu0 %9881, %v5388_v59   ;;  %v3176_v59 = vrot.slane %v14677_v34, %v11238_v29  ;;  %v9953_v3 = vld [vmem:[%s14157_s1 + $0x160] ss:$16 sps:$4 sm:$0xff]   ;;  %v3078_v54 = vrot.slane %v14719_v48, %v11238_v29 }
 0x35a   :  { %8312 = vmatpush1.bf16.msra.mxu0 %v9941_v39  ;;  %8394 = vmatpush1.bf16.msra.mxu1 %v9942_v6  ;;  %v4478_v39 = vrot.slane %v11346_v41, %v11238_v29  ;;  %v9949_v41 = vld [vmem:[%s14157_s1 + $0x164] ss:$16 sps:$4 sm:$0xff]  }
 0x35b   :  { %8313 = vmatprep.subr.bf16.mxu0 %v9943_v37  ;;  %8395 = vmatprep.subr.bf16.mxu1 %v9945_v19  ;;  %v4485_v37 = vrot.slane %v11344_v56, %v11235_v14  ;;  %v4492_v19 = vrot.slane %v11344_v56, %v11238_v29  ;;  %v9955_v56 = vld [vmem:[%s14157_s1 + $0x184] ss:$16 sps:$4 sm:$0xff]  }
 0x35c   :  { %v12302_v21 = vpop.permute.xlu1 %5815  ;;  %5848 = vperm.xlu1 %9882, %v5307_v2   ;;  %v12304_v42 = vpop.permute.xlu0 %5869  ;;  %v5278_v2 = vcombine.low %v3169_v18, %v3176_v59  ;;  %v9947_v18 = vld [vmem:[%s14157_s1 + $0x140] ss:$16 sps:$4 sm:$0xff]   ;;  %v9948_v59 = vld [vmem:[%s14157_s1 + $0x148] ss:$16 sps:$4 sm:$0xff]  }
 0x35d   :  { %14678 = vst [vmem:[#allocation72_spill] sm:$0xff] %v12302_v21  ;;  %14679 = vst [vmem:[#allocation178_spill] sm:$0xff] %v12304_v42  ;;  %5713 = vperm.xlu0 %9881, %v5262_v23   ;;  %v14681_v23 = vld [vmem:[#allocation75_spill] sm:$0xff] }
 0x35e   :  { %v3183_v34 = vrot.slane %v14681_v23, %v11235_v14  ;;  %v3190_v42 = vrot.slane %v14681_v23, %v11238_v29  ;;  %8314 = vmatpush1.bf16.msra.mxu0 %v9947_v18  ;;  %8396 = vmatpush1.bf16.msra.mxu1 %v9948_v59  ;;  %v5371_v18 = vcombine.low %v4471_v50, %v4478_v39  ;;  %v9957_v50 = vld [vmem:[%s14157_s1 + $0x18c] ss:$16 sps:$4 sm:$0xff]   ;;  %v9959_v39 = vld [vmem:[%s14157_s1 + $0x180] ss:$16 sps:$4 sm:$0xff]  }
 0x35f   :  { %8315 = vmatprep.subr.bf16.mxu0 %v9949_v41 }
 0x360   :  { %v12326_v21 = vpop.permute.xlu1 %6004  ;;  %6037 = vperm.xlu1 %9882, %v5370_v8   ;;  %v12328_v24 = vpop.permute.xlu0 %6058  ;;  %v5279_v6 = vcombine.low %v3183_v34, %v3190_v42  ;;  %v3841_v8 = vrot.slane %v14684_v40, %v11235_v14  ;;  %v9951_v42 = vld [vmem:[%s14157_s1 + $0x16c] ss:$16 sps:$4 sm:$0xff]   ;;  %v9954_v34 = vld [vmem:[%s14157_s1 + $0x168] ss:$16 sps:$4 sm:$0xff]  }
 0x361   :  { %14682 = vst [vmem:[#allocation102_spill] sm:$0xff] %v12326_v21  ;;  %14683 = vst [vmem:[#allocation75_spill] sm:$0xff] %v12328_v24  ;;  %5761 = vperm.xlu0 %9881, %v5278_v2   ;;  %v3848_v2 = vrot.slane %v14684_v40, %v11238_v29  ;;  %8397 = vmatprep.subr.bf16.mxu1 %v9951_v42 }
 0x362   :  { %8316 = vmatpush1.bf16.msra.mxu0 %v9953_v3  ;;  %8398 = vmatpush1.bf16.msra.mxu1 %v9954_v34  ;;  %v5372_v3 = vcombine.low %v4485_v37, %v4492_v19  ;;  %v14691_v34 = vld [vmem:[#allocation74_spill] sm:$0xff]  ;;  %v9961_v37 = vld [vmem:[%s14157_s1 + $0x1a4] ss:$16 sps:$4 sm:$0xff]  }
 0x363   :  { %v5326_v59 = vcombine.low %v3841_v8, %v3848_v2  ;;  %v9960_v8 = vld [vmem:[%s14157_s1 + $0x188] ss:$16 sps:$4 sm:$0xff]   ;;  %8317 = vmatprep.subr.bf16.mxu0 %v9955_v56  ;;  %8399 = vmatprep.subr.bf16.mxu1 %v9957_v50  ;;  %v9963_v19 = vld [vmem:[%s14157_s1 + $0x1ac] ss:$16 sps:$4 sm:$0xff]  }
 0x364   :  { %v12350_v23 = vpop.permute.xlu1 %5677  ;;  %5851 = vperm.xlu1 %9882, %v5308_v63   ;;  %v12352_v30 = vpop.permute.xlu0 %5683  ;;  %v14687_v63 = vld [vmem:[#allocation136_spill] sm:$0xff]  ;;  %v14690_v2 = vld [vmem:[#allocation57_spill] sm:$0xff] }
 0x365   :  { %14685 = vst [vmem:[#allocation120_spill] sm:$0xff] %v12350_v23  ;;  %14686 = vst [vmem:[#allocation179_spill] sm:$0xff] %v12352_v30  ;;  %5764 = vperm.xlu0 %9881, %v5279_v6   ;;  %v4065_v6 = vrot.slane %v14687_v63, %v11235_v14  ;;  %v4072_v40 = vrot.slane %v14687_v63, %v11238_v29  ;;  %v2931_v41 = vrot.slane %v14690_v2, %v11235_v14  ;;  %v14694_v50 = vld [vmem:[#allocation73_spill] sm:$0xff] }
 0x366   :  { %v2938_v42 = vrot.slane %v14690_v2, %v11238_v29  ;;  %8318 = vmatpush1.bf16.msra.mxu0 %v9959_v39  ;;  %8400 = vmatpush1.bf16.msra.mxu1 %v9960_v8  ;;  %v3155_v39 = vrot.slane %v14694_v50, %v11235_v14  ;;  %v3162_v8 = vrot.slane %v14694_v50, %v11238_v29 }
 0x367   :  { %v5342_v63 = vcombine.low %v4065_v6, %v4072_v40  ;;  %v9965_v6 = vld [vmem:[%s14157_s1 + $0x1a0] ss:$16 sps:$4 sm:$0xff]   ;;  %v9966_v40 = vld [vmem:[%s14157_s1 + $0x1a8] ss:$16 sps:$4 sm:$0xff]   ;;  %8319 = vmatprep.subr.bf16.mxu0 %v9961_v37  ;;  %8401 = vmatprep.subr.bf16.mxu1 %v9963_v19 }
 0x368   :  { %v12374_v30 = vpop.permute.xlu1 %5866  ;;  %6040 = vperm.xlu1 %9882, %v5371_v18   ;;  %v12376_v24 = vpop.permute.xlu0 %5872  ;;  %v3197_v18 = vrot.slane %v14691_v34, %v11235_v14  ;;  %v5261_v56 = vcombine.low %v2931_v41, %v2938_v42  ;;  %v9967_v42 = vld [vmem:[%s14157_s1 + $0x1c4] ss:$16 sps:$4 sm:$0xff]   ;;  %v9972_v37 = vld [vmem:[%s14157_s1 + $0x1c8] ss:$16 sps:$4 sm:$0xff]  }
 0x369   :  { %14688 = vst [vmem:[#allocation136_spill] sm:$0xff] %v12374_v30  ;;  %14689 = vst [vmem:[#allocation180_spill] sm:$0xff] %v12376_v24  ;;  %5905 = vperm.xlu0 %9881, %v5326_v59   ;;  %v3204_v59 = vrot.slane %v14691_v34, %v11238_v29  ;;  %v14698_v19 = vld [vmem:[#allocation59_spill] sm:$0xff]  ;;  %v14711_v30 = vld [vmem:[#allocation62_spill] sm:$0xff] }
 0x36a   :  { %8320 = vmatpush1.bf16.msra.mxu0 %v9965_v6  ;;  %8402 = vmatpush1.bf16.msra.mxu1 %v9966_v40  ;;  %v2959_v6 = vrot.slane %v14698_v19, %v11235_v14  ;;  %v2966_v40 = vrot.slane %v14698_v19, %v11238_v29  ;;  %v4961_v19 = vrot.slane %v11548_v35, %v11235_v14 }
 0x36b   :  { %v5280_v2 = vcombine.low %v3197_v18, %v3204_v59  ;;  %v9969_v18 = vld [vmem:[%s14157_s1 + $0x1cc] ss:$16 sps:$4 sm:$0xff]   ;;  %v9971_v59 = vld [vmem:[%s14157_s1 + $0x1c0] ss:$16 sps:$4 sm:$0xff]   ;;  %8321 = vmatprep.subr.bf16.mxu0 %v9967_v42  ;;  %v14701_v42 = vld [vmem:[#allocation121_spill] sm:$0xff]  ;;  %v3029_v23 = vrot.slane %v14711_v30, %v11235_v14 }
 0x36c   :  { %v12398_v24 = vpop.permute.xlu1 %6055  ;;  %6043 = vperm.xlu1 %9882, %v5372_v3   ;;  %v12400_v21 = vpop.permute.xlu0 %6061  ;;  %v14695_v3 = vld [vmem:[#allocation139_spill] sm:$0xff]  ;;  %8403 = vmatprep.subr.bf16.mxu1 %v9969_v18  ;;  %v3827_v18 = vrot.slane %v14701_v42, %v11235_v14 }
 0x36d   :  { %14692 = vst [vmem:[#allocation57_spill] sm:$0xff] %v12398_v24  ;;  %14693 = vst [vmem:[#allocation74_spill] sm:$0xff] %v12400_v21  ;;  %5953 = vperm.xlu0 %9881, %v5342_v63   ;;  %v4079_v34 = vrot.slane %v14695_v3, %v11235_v14  ;;  %v4086_v63 = vrot.slane %v14695_v3, %v11238_v29  ;;  %v4744_v3 = vrot.slane %v11452_v44, %v11238_v29 }
 0x36e   :  { %8322 = vmatpush1.bf16.msra.mxu0 %v9971_v59  ;;  %8404 = vmatpush1.bf16.msra.mxu1 %v9972_v37  ;;  %v3834_v59 = vrot.slane %v14701_v42, %v11238_v29  ;;  %v14707_v42 = vld [vmem:[#allocation77_spill] sm:$0xff] }
 0x36f   :  { %v5343_v50 = vcombine.low %v4079_v34, %v4086_v63  ;;  %v9978_v34 = vld [vmem:[%s14157_s1 + $0x1e8] ss:$16 sps:$4 sm:$0xff]   ;;  %v5263_v63 = vcombine.low %v2959_v6, %v2966_v40  ;;  %v14704_v40 = vld [vmem:[#allocation58_spill] sm:$0xff] }
 0x370   :  { %v12422_v21 = vpop.permute.xlu1 %5821  ;;  %5710 = vperm.xlu1 %9882, %v5261_v56   ;;  %v12424_v41 = vpop.permute.xlu0 %5686  ;;  %v5277_v56 = vcombine.low %v3155_v39, %v3162_v8  ;;  %v9973_v39 = vld [vmem:[%s14157_s1 + $0x1e4] ss:$16 sps:$4 sm:$0xff]   ;;  %v9975_v8 = vld [vmem:[%s14157_s1 + $0x1ec] ss:$16 sps:$4 sm:$0xff]  }
 0x371   :  { %14696 = vst [vmem:[#allocation73_spill] sm:$0xff] %v12422_v21  ;;  %14697 = vst [vmem:[#allocation139_spill] sm:$0xff] %v12424_v41  ;;  %5767 = vperm.xlu0 %9881, %v5280_v2   ;;  %v4737_v2 = vrot.slane %v11452_v44, %v11235_v14  ;;  %v9977_v44 = vld [vmem:[%s14157_s1 + $0x1e0] ss:$16 sps:$4 sm:$0xff]   ;;  %8323 = vmatprep.subr.bf16.mxu0 %v9973_v39  ;;  %v2980_v39 = vrot.slane %v14704_v40, %v11238_v29 }
 0x372   :  { %8405 = vmatprep.subr.bf16.mxu1 %v9975_v8  ;;  %8324 = vmatpush1.bf16.msra.mxu0 %v9977_v44  ;;  %v14706_v44 = vld [vmem:[#allocation137_spill] sm:$0xff] }
 0x373   :  { %v5390_v37 = vcombine.low %v4737_v2, %v4744_v3  ;;  %8406 = vmatpush1.bf16.msra.mxu1 %v9978_v34  ;;  %v14705_v2 = vld [vmem:[#allocation60_spill] sm:$0xff]  ;;  %v4051_v34 = vrot.slane %v14706_v44, %v11235_v14 }
 0x374   :  { %v12446_v41 = vpop.permute.xlu1 %6010  ;;  %5758 = vperm.xlu1 %9882, %v5277_v56   ;;  %v12448_v21 = vpop.permute.xlu0 %5875  ;;  %v4968_v56 = vrot.slane %v11548_v35, %v11238_v29  ;;  %v3001_v3 = vrot.slane %v14705_v2, %v11235_v14  ;;  %v3008_v8 = vrot.slane %v14705_v2, %v11238_v29  ;;  %v5325_v35 = vcombine.low %v3827_v18, %v3834_v59  ;;  %v14710_v59 = vld [vmem:[#allocation61_spill] sm:$0xff] }
 0x375   :  { %14699 = vst [vmem:[#allocation59_spill] sm:$0xff] %v12446_v41  ;;  %14700 = vst [vmem:[#allocation181_spill] sm:$0xff] %v12448_v21  ;;  %5956 = vperm.xlu0 %9881, %v5343_v50   ;;  %v2973_v21 = vrot.slane %v14704_v40, %v11235_v14  ;;  %v3218_v40 = vrot.slane %v14707_v42, %v11238_v29  ;;  %v2987_v2 = vrot.slane %v14710_v59, %v11235_v14 }
 0x376   :  { %v12494_v18 = vcombine.low %v3001_v3, %v3008_v8  ;;  %v14713_v3 = vld [vmem:[#allocation138_spill] sm:$0xff] }
 0x377   :  { %v4093_v8 = vrot.slane %v14713_v3, %v11235_v14 }
 0x378   :  { %v12470_v50 = vpop.permute.xlu1 %5635  ;;  %5716 = vperm.xlu1 %9882, %v5263_v63   ;;  %v12472_v6 = vpop.permute.xlu0 %6064  ;;  %v4058_v63 = vrot.slane %v14706_v44, %v11238_v29  ;;  %v2994_v44 = vrot.slane %v14710_v59, %v11238_v29  ;;  %v14714_v59 = vld [vmem:[#allocation64_spill] sm:$0xff] }
 0x379   :  { %14702 = vst [vmem:[#allocation121_spill] sm:$0xff] %v12470_v50  ;;  %14703 = vst [vmem:[#allocation182_spill] sm:$0xff] %v12472_v6  ;;  %6097 = vperm.xlu0 %9881, %v5390_v37   ;;  %v3211_v6 = vrot.slane %v14707_v42, %v11235_v14  ;;  %v5406_v50 = vcombine.low %v4961_v19, %v4968_v56  ;;  %v5264_v37 = vcombine.low %v2973_v21, %v2980_v39  ;;  %v14712_v56 = vld [vmem:[#allocation63_spill] sm:$0xff] }
 0x37a   :  { %v3036_v19 = vrot.slane %v14711_v30, %v11238_v29  ;;  %v5341_v42 = vcombine.low %v4051_v34, %v4058_v63  ;;  %v3022_v21 = vrot.slane %v14712_v56, %v11238_v29  ;;  %v3064_v30 = vrot.slane %v14714_v59, %v11238_v29 }
 0x37b   :  { %v5281_v39 = vcombine.low %v3211_v6, %v3218_v40  ;;  %v14718_v40 = vld [vmem:[#allocation66_spill] sm:$0xff] }
 0x37c   :  { %v12490_v41 = vpop.permute.xlu1 %5824  ;;  %5902 = vperm.xlu1 %9882, %v5325_v35   ;;  %v12492_v24 = vpop.permute.xlu0 %5689  ;;  %v3015_v35 = vrot.slane %v14712_v56, %v11235_v14  ;;  %v3085_v56 = vrot.slane %v14718_v40, %v11235_v14 }
 0x37d   :  { %14708 = vst [vmem:[#allocation58_spill] sm:$0xff] %v12490_v41  ;;  %14709 = vst [vmem:[#allocation60_spill] sm:$0xff] %v12492_v24  ;;  %6145 = vperm.xlu0 %9881, %v5406_v50   ;;  %v4100_v50 = vrot.slane %v14713_v3, %v11238_v29  ;;  %v3057_v24 = vrot.slane %v14714_v59, %v11235_v14  ;;  %v14715_v41 = vld [vmem:[#allocation65_spill] sm:$0xff]  ;;  %v3092_v3 = vrot.slane %v14718_v40, %v11238_v29 }
 0x37e   :  { %v3043_v26 = vrot.slane %v14715_v41, %v11235_v14  ;;  %v3050_v34 = vrot.slane %v14715_v41, %v11238_v29  ;;  %v3071_v59 = vrot.slane %v14719_v48, %v11235_v14  ;;  %v14720_v41 = vld [vmem:[#allocation76_spill] sm:$0xff]  ;;  %v12540_v40 = vcombine.low %v2987_v2, %v2994_v44 }
 0x37f   :  { %v3225_v57 = vrot.slane %v14720_v41, %v11235_v14  ;;  %v5344_v58 = vcombine.low %v4093_v8, %v4100_v50  ;;  %v4982_v48 = vrot.slane %v11562_v49, %v11238_v29  ;;  %v12548_v32 = vcombine.low %v3057_v24, %v3064_v30  ;;  %v14731_v30 = vld [vmem:[#allocation79_spill] sm:$0xff] }
 0x380   :  { %v12520_v63 = vpop.permute.xlu1 %6013  ;;  %5950 = vperm.xlu1 %9882, %v5341_v42   ;;  %v12522_v6 = vpop.permute.xlu0 %5878  ;;  %v3232_v42 = vrot.slane %v14720_v41, %v11238_v29  ;;  %v12550_v41 = vcombine.low %v3015_v35, %v3022_v21  ;;  %v12552_v5 = vcombine.low %v3043_v26, %v3050_v34  ;;  %v12558_v44 = vcombine.low %v3085_v56, %v3092_v3  ;;  %v14730_v35 = vld [vmem:[#allocation78_spill] sm:$0xff] }
 0x381   :  { %14716 = vst [vmem:[#allocation137_spill] sm:$0xff] %v12520_v63  ;;  %14717 = vst [vmem:[#allocation77_spill] sm:$0xff] %v12522_v6  ;;  %5770 = vperm.xlu0 %9881, %v5281_v39   ;;  %v14721_v6 = vld [vmem:[#allocation123_spill] sm:$0xff]  ;;  %v12546_v39 = vcombine.low %v3029_v23, %v3036_v19  ;;  %v12560_v8 = vcombine.low %v3071_v59, %v3078_v54  ;;  %v4723_v26 = vrot.slane %v11454_v62, %v11235_v14 }
 0x382   :  { %v3855_v63 = vrot.slane %v14721_v6, %v11235_v14  ;;  %v3862_v53 = vrot.slane %v14721_v6, %v11238_v29  ;;  %14723 = vst [vmem:[#allocation62_spill] sm:$0xff] %v12548_v32  ;;  %14724 = vst [vmem:[#allocation63_spill] sm:$0xff] %v12552_v5  ;;  %v5282_v23 = vcombine.low %v3225_v57, %v3232_v42  ;;  %v14736_v42 = vld [vmem:[#allocation82_spill] sm:$0xff]  ;;  %v14744_v32 = vld [vmem:[#allocation124_spill] sm:$0xff] }
 0x383   :  { %14722 = vst [vmem:[#allocation61_spill] sm:$0xff] %v12546_v39  ;;  %14727 = vst [vmem:[#allocation65_spill] sm:$0xff] %v12558_v44  ;;  %v3253_v21 = vrot.slane %v14730_v35, %v11235_v14  ;;  %v3260_v54 = vrot.slane %v14730_v35, %v11238_v29  ;;  %v3239_v34 = vrot.slane %v14731_v30, %v11235_v14  ;;  %v14738_v44 = vld [vmem:[#allocation84_spill] sm:$0xff] }
 0x384   :  { %v12554_v27 = vpop.permute.xlu1 %5638  ;;  %5719 = vperm.xlu1 %9882, %v5264_v37   ;;  %v12556_v2 = vpop.permute.xlu0 %6067  ;;  %14728 = vst [vmem:[#allocation66_spill] sm:$0xff] %v12560_v8  ;;  %v5327_v19 = vcombine.low %v3855_v63, %v3862_v53  ;;  %v4730_v37 = vrot.slane %v11454_v62, %v11238_v29  ;;  %v5407_v6 = vcombine.low %v4975_v45, %v4982_v48  ;;  %v14733_v62 = vld [vmem:[#allocation81_spill] sm:$0xff] }
 0x385   :  { %14725 = vst [vmem:[#allocation138_spill] sm:$0xff] %v12554_v27  ;;  %14726 = vst [vmem:[#allocation64_spill] sm:$0xff] %v12556_v2  ;;  %5959 = vperm.xlu0 %9881, %v5344_v58   ;;  %v14732_v58 = vld [vmem:[#allocation80_spill] sm:$0xff]  ;;  %v3246_v63 = vrot.slane %v14731_v30, %v11238_v29  ;;  %v3267_v56 = vrot.slane %v14733_v62, %v11235_v14  ;;  %v3309_v45 = vrot.slane %v14736_v42, %v11235_v14  ;;  %v14739_v8 = vld [vmem:[#allocation141_spill] sm:$0xff] }
 0x386   :  { %v3281_v57 = vrot.slane %v14732_v58, %v11235_v14  ;;  %v3288_v53 = vrot.slane %v14732_v58, %v11238_v29  ;;  %v3316_v48 = vrot.slane %v14736_v42, %v11238_v29  ;;  %v3274_v35 = vrot.slane %v14733_v62, %v11238_v29  ;;  %v14737_v58 = vld [vmem:[#allocation83_spill] sm:$0xff] }
 0x387   :  { %v3295_v30 = vrot.slane %v14737_v58, %v11235_v14  ;;  %v3302_v49 = vrot.slane %v14737_v58, %v11238_v29  ;;  %v5389_v24 = vcombine.low %v4723_v26, %v4730_v37  ;;  %v4954_v50 = vrot.slane %v11550_v52, %v11238_v29  ;;  %v14740_v26 = vld [vmem:[#allocation85_spill] sm:$0xff] }
 0x388   :  { %v12584_v3 = vpop.permute.xlu1 %5827  ;;  %5908 = vperm.xlu1 %9882, %v5327_v19   ;;  %v12586_v59 = vpop.permute.xlu0 %5692  ;;  %v4947_v19 = vrot.slane %v11550_v52, %v11235_v14  ;;  %v3337_v42 = vrot.slane %v14738_v44, %v11235_v14  ;;  %v3344_v62 = vrot.slane %v14738_v44, %v11238_v29  ;;  %v3323_v37 = vrot.slane %v14740_v26, %v11235_v14  ;;  %v14741_v52 = vld [vmem:[#allocation122_spill] sm:$0xff] }
 0x389   :  { %14734 = vst [vmem:[#allocation67_spill] sm:$0xff] %v12584_v3  ;;  %14735 = vst [vmem:[#allocation76_spill] sm:$0xff] %v12586_v59  ;;  %6148 = vperm.xlu0 %9881, %v5407_v6   ;;  %v4107_v59 = vrot.slane %v14739_v8, %v11235_v14  ;;  %v4114_v6 = vrot.slane %v14739_v8, %v11238_v29  ;;  %v3330_v58 = vrot.slane %v14740_v26, %v11238_v29 }
 0x38a   :  { %v3869_v3 = vrot.slane %v14741_v52, %v11235_v14  ;;  %v3876_v2 = vrot.slane %v14741_v52, %v11238_v29  ;;  %v3897_v8 = vrot.slane %v14744_v32, %v11235_v14  ;;  %v3904_v5 = vrot.slane %v14744_v32, %v11238_v29  ;;  %v14746_v52 = vld [vmem:[#allocation126_spill] sm:$0xff] }
 0x38b   :  { %v3883_v26 = vrot.slane %v14745_v11, %v11235_v14  ;;  %v3925_v38 = vrot.slane %v14746_v52, %v11235_v14  ;;  %v5405_v9 = vcombine.low %v4947_v19, %v4954_v50  ;;  %v5345_v13 = vcombine.low %v4107_v59, %v4114_v6 }
 0x38c   :  { %v12618_v27 = vpop.permute.xlu1 %6016  ;;  %6094 = vperm.xlu1 %9882, %v5389_v24   ;;  %v12620_v44 = vpop.permute.xlu0 %5881  ;;  %v3932_v24 = vrot.slane %v14746_v52, %v11238_v29  ;;  %v4996_v11 = vrot.slane %v11560_v47, %v11238_v29  ;;  %v3946_v50 = vrot.slane %v14749_v16, %v11238_v29  ;;  %v12654_v6 = vcombine.low %v3253_v21, %v3260_v54 }
 0x38d   :  { %14742 = vst [vmem:[#allocation123_spill] sm:$0xff] %v12618_v27  ;;  %14743 = vst [vmem:[#allocation78_spill] sm:$0xff] %v12620_v44  ;;  %5773 = vperm.xlu0 %9881, %v5282_v23   ;;  %v14747_v44 = vld [vmem:[#allocation127_spill] sm:$0xff]  ;;  %v14748_v23 = vld [vmem:[#allocation128_spill] sm:$0xff]  ;;  %v12656_v47 = vcombine.low %v3281_v57, %v3288_v53  ;;  %v12658_v39 = vcombine.low %v3267_v56, %v3274_v35  ;;  %v12662_v1 = vcombine.low %v3337_v42, %v3344_v62  ;;  %v14758_v56 = vlaneseq }
 0x38e   :  { %v3911_v27 = vrot.slane %v14747_v44, %v11235_v14  ;;  %v3918_v32 = vrot.slane %v14747_v44, %v11238_v29  ;;  %v3953_v10 = vrot.slane %v14748_v23, %v11235_v14  ;;  %v3960_v52 = vrot.slane %v14748_v23, %v11238_v29 }
 0x38f   :  { %v5283_v44 = vcombine.low %v3239_v34, %v3246_v63  ;;  %v12660_v23 = vcombine.low %v3309_v45, %v3316_v48  ;;  %14752 = vst [vmem:[#allocation81_spill] sm:$0xff] %v12662_v1  ;;  %v12664_v17 = vcombine.low %v3295_v30, %v3302_v49  ;;  %v12666_v16 = vcombine.low %v3323_v37, %v3330_v58  ;;  %v14759_v48 = vld [vmem:[#allocation144_spill] sm:$0xff]  ;;  %v14760_v30 = vld [vmem:[#allocation143_spill] sm:$0xff] }
 0x390   :  { %v12650_v19 = vpop.permute.xlu1 %5641  ;;  %6142 = vperm.xlu1 %9882, %v5405_v9   ;;  %v12652_v59 = vpop.permute.xlu0 %6070  ;;  %v12668_v9 = vcombine.low %v3897_v8, %v3904_v5  ;;  %v5408_v21 = vcombine.low %v4989_v36, %v4996_v11  ;;  %v12672_v54 = vcombine.low %v3925_v38, %v3932_v24  ;;  %v12674_v34 = vcombine.low %v3953_v10, %v3960_v52  ;;  %v14755_v5 = vld [vmem:[#allocation131_spill] sm:$0xff]  ;;  %v14756_v38 = vld [vmem:[#allocation140_spill] sm:$0xff]  ;;  %v14762_v8 = vld [vmem:[#allocation145_spill] sm:$0xff] }
 0x391   :  { %14750 = vst [vmem:[#allocation79_spill] sm:$0xff] %v12650_v19  ;;  %14751 = vst [vmem:[#allocation80_spill] sm:$0xff] %v12652_v59  ;;  %5962 = vperm.xlu0 %9881, %v5345_v13   ;;  %v5328_v19 = vcombine.low %v3869_v3, %v3876_v2  ;;  %v12670_v59 = vcombine.low %v3883_v26, %v3890_v20  ;;  %v12676_v57 = vcombine.low %v3911_v27, %v3918_v32 }
 0x392   :  { %14753 = vst [vmem:[#allocation82_spill] sm:$0xff] %v12666_v16  ;;  %14754 = vst [vmem:[#allocation83_spill] sm:$0xff] %v12674_v34  ;;  %v12678_v13 = vcombine.low %v3939_v31, %v3946_v50  ;;  %v3967_v2 = vrot.slane %v14755_v5, %v11235_v14  ;;  %v3974_v36 = vrot.slane %v14755_v5, %v11238_v29  ;;  %v14757_v31 = vld [vmem:[#allocation142_spill] sm:$0xff]  ;;  %v12700_v3 = vand.u32 127, %v14758_v56  ;;  %v14763_v50 = vld [vmem:[#allocation148_spill] sm:$0xff] }
 0x393   :  { %v4121_v10 = vrot.slane %v14756_v38, %v11235_v14  ;;  %v4128_v20 = vrot.slane %v14756_v38, %v11238_v29  ;;  %v4149_v27 = vrot.slane %v14757_v31, %v11235_v14  ;;  %v4758_v63 = vrot.slane %v11466_v12, %v11238_v29  ;;  %v14764_v38 = vld [vmem:[#allocation152_spill] sm:$0xff] }
 0x394   :  { %v12680_v53 = vpop.permute.xlu1 %5830  ;;  %5722 = vperm.xlu1 %9882, %v12540_v40   ;;  %v12683_v49 = vpop.permute.xlu0 %5695  ;;  %v4751_v40 = vrot.slane %v11466_v12, %v11235_v14  ;;  %v4156_v45 = vrot.slane %v14757_v31, %v11238_v29  ;;  %v4177_v35 = vrot.slane %v14759_v48, %v11235_v14  ;;  %v4135_v42 = vrot.slane %v14760_v30, %v11235_v14  ;;  %v14761_v12 = vld [vmem:[#allocation147_spill] sm:$0xff] }
 0x395   :  { %6151 = vperm.xlu0 %9881, %v5408_v21   ;;  %v4142_v62 = vrot.slane %v14760_v30, %v11238_v29  ;;  %v4184_v37 = vrot.slane %v14759_v48, %v11238_v29  ;;  %v4205_v58 = vrot.slane %v14761_v12, %v11235_v14  ;;  %v4163_v26 = vrot.slane %v14762_v8, %v11235_v14 }
 0x396   :  { %v4170_v24 = vrot.slane %v14762_v8, %v11238_v29  ;;  %v4212_v52 = vrot.slane %v14761_v12, %v11238_v29  ;;  %v4191_v21 = vrot.slane %v14763_v50, %v11235_v14  ;;  %v4198_v5 = vrot.slane %v14763_v50, %v11238_v29 }
 0x397   :  { %v4219_v31 = vrot.slane %v14764_v38, %v11235_v14  ;;  %v4226_v56 = vrot.slane %v14764_v38, %v11238_v29  ;;  %v5391_v48 = vcombine.low %v4751_v40, %v4758_v63  ;;  %v6202_v30 = vadd.s32 4294967280, %v12700_v3 }
 0x398   :  { %v12718_v32 = vpop.permute.xlu1 %6019  ;;  %5911 = vperm.xlu1 %9882, %v5328_v19   ;;  %v12720_v11 = vpop.permute.xlu0 %5884  ;;  %v6195_v19 = vadd.s32 4294967288, %v12700_v3  ;;  %v12734_v8 = vcombine.low %v3967_v2, %v3974_v36  ;;  %v5346_v12 = vcombine.low %v4121_v10, %v4128_v20  ;;  %v5003_v1 = vrot.slane %v11574_v43, %v11235_v14 }
 0x399   :  { %5776 = vperm.xlu0 %9881, %v5283_v44   ;;  %v5010_v50 = vrot.slane %v11574_v43, %v11238_v29  ;;  %v12740_v16 = vcombine.low %v4149_v27, %v4156_v45  ;;  %v12742_v44 = vcombine.low %v4177_v35, %v4184_v37  ;;  %v12744_v34 = vcombine.low %v4135_v42, %v4142_v62  ;;  %v14768_v45 = vld [vmem:[#allocation146_spill] sm:$0xff] }
 0x39a   :  { %14765 = vst [vmem:[#allocation84_spill] sm:$0xff] %v12734_v8  ;;  %v12746_v40 = vcombine.low %v4163_v26, %v4170_v24  ;;  %v12752_v36 = vcombine.low %v4205_v58, %v4212_v52  ;;  %v12754_v10 = vcombine.low %v4191_v21, %v4198_v5  ;;  %v6209_v20 = vadd.s32 4294967272, %v12700_v3 }
 0x39b   :  { %v6251_v43 = vadd.s32 4294967224, %v12700_v3  ;;  %v12758_v27 = vcombine.low %v4219_v31, %v4226_v56  ;;  %v12761_v35 = vsub.s32 %v6195_v19, %v14768_v45  ;;  %v12764_v42 = vsub.s32 %v6202_v30, %v14768_v45 }
 0x39c   :  { %v12748_v63 = vpop.permute.xlu1 %5644  ;;  %6100 = vperm.xlu1 %9882, %v5391_v48   ;;  %v12750_v2 = vpop.permute.xlu0 %6073  ;;  %14766 = vst [vmem:[#allocation141_spill] sm:$0xff] %v12752_v36  ;;  %v12768_v62 = vsub.s32 %v12700_v3, %v14768_v45  ;;  %v5409_v37 = vcombine.low %v5003_v1, %v5010_v50  ;;  %v6216_v58 = vadd.s32 4294967264, %v12700_v3  ;;  %v6265_v26 = vadd.s32 4294967208, %v12700_v3 }
 0x39d   :  { %5965 = vperm.xlu0 %9881, %v5346_v12   ;;  %14767 = vst [vmem:[#allocation85_spill] sm:$0xff] %v12758_v27  ;;  %14769 = vst [vmem:[#allocation122_spill] sm:$0xff] %v12761_v35  ;;  %v6223_v24 = vadd.s32 4294967256, %v12700_v3  ;;  %v6279_v52 = vadd.s32 4294967192, %v12700_v3  ;;  %v6230_v21 = vadd.s32 4294967248, %v12700_v3  ;;  %v12781_v1 = vsub.s32 %v6209_v20, %v14768_v45 }
 0x39e   :  { %14770 = vst [vmem:[#allocation124_spill] sm:$0xff] %v12764_v42  ;;  %14771 = vst [vmem:[#allocation125_spill] sm:$0xff] %v12768_v62  ;;  %v12784_v31 = vsub.s32 %v6251_v43, %v14768_v45  ;;  %v6293_v56 = vadd.s32 4294967176, %v12700_v3  ;;  %v4765_v48 = vrot.slane %v11464_v51, %v11235_v14  ;;  %v4772_v19 = vrot.slane %v11464_v51, %v11238_v29 }
 0x39f   :  { %14773 = vst [vmem:[#allocation127_spill] sm:$0xff] %v12781_v1  ;;  %v6303_v30 = vrot.slane %v11774_v33, %v12768_v62  ;;  %v12795_v12 = vsub.s32 %v6216_v58, %v14768_v45  ;;  %v12798_v50 = vsub.s32 %v6265_v26, %v14768_v45  ;;  %v6312_v20 = vrot.slane %v11786_v55, %v12764_v42 }
 0x3a0   :  { %v12775_v5 = vpop.permute.xlu1 %5833  ;;  %5725 = vperm.xlu1 %9882, %v12494_v18   ;;  %v12778_v38 = vpop.permute.xlu0 %5698  ;;  %v6237_v18 = vadd.s32 4294967240, %v12700_v3  ;;  %v12803_v43 = vsub.s32 %v6223_v24, %v14768_v45  ;;  %v12806_v51 = vsub.s32 %v6279_v52, %v14768_v45  ;;  %v6307_v33 = vrot.slane %v11716_v28, %v12761_v35 }
 0x3a1   :  { %14772 = vst [vmem:[#allocation126_spill] sm:$0xff] %v12778_v38  ;;  %6154 = vperm.xlu0 %9881, %v5409_v37   ;;  %14774 = vst [vmem:[#allocation128_spill] sm:$0xff] %v12795_v12  ;;  %v12809_v37 = vsub.s32 %v6230_v21, %v14768_v45  ;;  %v6194_v55 = vrot.slane %v11656_v0, %v12768_v62  ;;  %v12821_v24 = vsub.s32 %v6293_v56, %v14768_v45 }
 0x3a2   :  { %v6244_v52 = vadd.s32 4294967232, %v12700_v3  ;;  %v6258_v21 = vadd.s32 4294967216, %v12700_v3  ;;  %v5392_v28 = vcombine.low %v4765_v48, %v4772_v19  ;;  %v5017_v27 = vrot.slane %v11572_v25, %v11235_v14 }
 0x3a3   :  { %v6308_v0 = vsel %vm6200_vm1, %v6307_v33, %v6303_v30  ;;  %v5024_v56 = vrot.slane %v11572_v25, %v11238_v29  ;;  %v6199_v8 = vrot.slane %v11644_v4, %v12761_v35  ;;  %v6206_v48 = vrot.slane %v11654_v15, %v12764_v42 }
 0x3a4   :  { %v12813_v58 = vpop.permute.xlu1 %6022  ;;  %5914 = vperm.xlu1 %9882, %v12670_v59   ;;  %v12816_v26 = vpop.permute.xlu0 %5887  ;;  %v12829_v59 = vsub.s32 %v6237_v18, %v14768_v45  ;;  %v6313_v36 = vsel %vm6207_vm2, %v6312_v20, %v6308_v0  ;;  %v6317_v19 = vrot.slane %v11728_v61, %v12781_v1  ;;  %v6272_v18 = vadd.s32 4294967200, %v12700_v3  ;;  %v14779_v20 = vld [vmem:[#allocation15_spill] sm:$0xff]  ;;  %v14780_v61 = vld [vmem:[#allocation156_spill] sm:$0xff] }
 0x3a5   :  { %14775 = vst [vmem:[#allocation129_spill] sm:$0xff] %v12813_v58  ;;  %14776 = vst [vmem:[#allocation131_spill] sm:$0xff] %v12816_v26  ;;  %5779 = vperm.xlu0 %9881, %v12654_v6   ;;  %v6322_v6 = vrot.slane %v11798_v60, %v12795_v12  ;;  %v6201_v4 = vsel %vm6200_vm1, %v6199_v8, %v6194_v55  ;;  %v6213_v33 = vrot.slane %v14779_v20, %v12781_v1 }
 0x3a6   :  { %v12852_v60 = vsub.s32 %v6244_v52, %v14768_v45  ;;  %v12855_v15 = vsub.s32 %v6258_v21, %v14768_v45  ;;  %v4779_v0 = vrot.slane %v14780_v61, %v11235_v14  ;;  %v6318_v55 = vsel %vm6214_vm3, %v6317_v19, %v6313_v36  ;;  %v14782_v52 = vld [vmem:[#allocation19_spill] sm:$0xff] }
 0x3a7   :  { %v5410_v20 = vcombine.low %v5017_v27, %v5024_v56  ;;  %v6323_v21 = vsel %vm6221_vm4, %v6322_v6, %v6318_v55  ;;  %v6208_v26 = vsel %vm6207_vm2, %v6206_v48, %v6201_v4  ;;  %v12876_v36 = vsub.s32 %v6272_v18, %v14768_v45  ;;  %v14786_v6 = vld [vmem:[#allocation155_spill] sm:$0xff] }
 0x3a8   :  { %v12844_v30 = vpop.permute.xlu1 %5647  ;;  %6103 = vperm.xlu1 %9882, %v5392_v28   ;;  %v12846_v25 = vpop.permute.xlu0 %6076  ;;  %v4786_v28 = vrot.slane %v14780_v61, %v11238_v29  ;;  %v14783_v61 = vld [vmem:[#allocation21_spill] sm:$0xff]  ;;  %v6215_v48 = vsel %vm6214_vm3, %v6213_v33, %v6208_v26  ;;  %v14787_v19 = vld [vmem:[#allocation23_spill] sm:$0xff]  ;;  %v6286_v55 = vadd.s32 4294967184, %v12700_v3  ;;  %v6342_v3 = vrot.slane %v11822_v22, %v12852_v60 }
 0x3a9   :  { %14777 = vst [vmem:[#allocation140_spill] sm:$0xff] %v12844_v30  ;;  %14778 = vst [vmem:[#allocation142_spill] sm:$0xff] %v12846_v25  ;;  %5968 = vperm.xlu0 %9881, %v12744_v34   ;;  %v14781_v25 = vld [vmem:[#allocation17_spill] sm:$0xff]  ;;  %v6227_v30 = vrot.slane %v14782_v52, %v12803_v43  ;;  %v6332_v34 = vrot.slane %v11810_v46, %v12809_v37  ;;  %v6234_v58 = vrot.slane %v14783_v61, %v12809_v37 }
 0x3aa   :  { %v6220_v8 = vrot.slane %v14781_v25, %v12795_v12  ;;  %v6327_v25 = vrot.slane %v11740_v7, %v12803_v43  ;;  %v4793_v46 = vrot.slane %v14786_v6, %v11235_v14  ;;  %v6241_v4 = vrot.slane %v14787_v19, %v12829_v59  ;;  %v14790_v19 = vld [vmem:[#allocation27_spill] sm:$0xff] }
 0x3ab   :  { %v4800_v7 = vrot.slane %v14786_v6, %v11238_v29 }
 0x3ac   :  { %v12878_v27 = vpop.permute.xlu1 %5836  ;;  %5728 = vperm.xlu1 %9882, %v12550_v41   ;;  %v12881_v56 = vpop.permute.xlu0 %5701  ;;  %v6222_v18 = vsel %vm6221_vm4, %v6220_v8, %v6215_v48  ;;  %v14788_v41 = vld [vmem:[#allocation43_spill] sm:$0xff]  ;;  %v6328_v61 = vsel %vm6228_vm5, %v6327_v25, %v6323_v21  ;;  %v6337_v21 = vrot.slane %v14790_v19, %v12829_v59 }
 0x3ad   :  { %14784 = vst [vmem:[#allocation144_spill] sm:$0xff] %v12878_v27  ;;  %14785 = vst [vmem:[#allocation143_spill] sm:$0xff] %v12881_v56  ;;  %6157 = vperm.xlu0 %9881, %v5410_v20   ;;  %v6248_v52 = vrot.slane %v14788_v41, %v12852_v60  ;;  %v5393_v56 = vcombine.low %v4779_v0, %v4786_v28  ;;  %v6229_v26 = vsel %vm6228_vm5, %v6227_v30, %v6222_v18  ;;  %v14789_v20 = vld [vmem:[#allocation157_spill] sm:$0xff]  ;;  %v14793_v28 = vld [vmem:[#allocation159_spill] sm:$0xff] }
 0x3ae   :  { %v6333_v33 = vsel %vm6235_vm6, %v6332_v34, %v6328_v61  ;;  %v4821_v6 = vrot.slane %v14789_v20, %v11235_v14  ;;  %v4828_v8 = vrot.slane %v14789_v20, %v11238_v29  ;;  %v6236_v48 = vsel %vm6235_vm6, %v6234_v58, %v6229_v26  ;;  %v14794_v34 = vld [vmem:[#allocation158_spill] sm:$0xff]  ;;  %v14796_v26 = vld [vmem:[#allocation25_spill] sm:$0xff] }
 0x3af   :  { %v4849_v22 = vrot.slane %v14793_v28, %v11235_v14  ;;  %v4807_v25 = vrot.slane %v14794_v34, %v11235_v14  ;;  %v4814_v18 = vrot.slane %v14794_v34, %v11238_v29  ;;  %v6243_v58 = vsel %vm6242_vm7, %v6241_v4, %v6236_v48  ;;  %v14795_v41 = vld [vmem:[#allocation14_spill] sm:$0xff]  ;;  %v14797_v34 = vld [vmem:[#allocation24_spill] sm:$0xff]  ;;  %v14798_v4 = vld [vmem:[#allocation105_spill] sm:$0xff] }
 0x3b0   :  { %v12906_v0 = vpop.permute.xlu1 %6025  ;;  %5917 = vperm.xlu1 %9882, %v12668_v9   ;;  %v12909_v30 = vpop.permute.xlu0 %5890  ;;  %v5031_v61 = vrot.slane %v14795_v41, %v11235_v14  ;;  %v6250_v9 = vsel %vm14346_vm8, %v6248_v52, %v6243_v58  ;;  %v6262_v20 = vrot.slane %v14796_v26, %v12855_v15  ;;  %v6338_v19 = vsel %vm6242_vm7, %v6337_v21, %v6333_v33  ;;  %v14799_v58 = vld [vmem:[#allocation160_spill] sm:$0xff]  ;;  %v14800_v21 = vld [vmem:[#allocation29_spill] sm:$0xff] }
 0x3b1   :  { %14791 = vst [vmem:[#allocation147_spill] sm:$0xff] %v12906_v0  ;;  %14792 = vst [vmem:[#allocation145_spill] sm:$0xff] %v12909_v30  ;;  %5782 = vperm.xlu0 %9881, %v12658_v39   ;;  %v5038_v30 = vrot.slane %v14795_v41, %v11238_v29  ;;  %v6255_v0 = vrot.slane %v14797_v34, %v12784_v31  ;;  %v6343_v39 = vsel %vm14346_vm8, %v6342_v3, %v6338_v19 }
 0x3b2   :  { %v6352_v48 = vrot.slane %v14798_v4, %v12855_v15  ;;  %v4856_v52 = vrot.slane %v14793_v28, %v11238_v29  ;;  %v4835_v26 = vrot.slane %v14799_v58, %v11235_v14  ;;  %v4842_v33 = vrot.slane %v14799_v58, %v11238_v29 }
 0x3b3   :  { %v6347_v41 = vrot.slane %v14800_v21, %v12784_v31  ;;  %v5394_v3 = vcombine.low %v4793_v46, %v4800_v7  ;;  %v12944_v19 = vcombine.low %v4821_v6, %v4828_v8  ;;  %v6257_v4 = vsel %vm6256_vm9, %v6255_v0, %v6250_v9  ;;  %v14802_v21 = vld [vmem:[#allocation88_spill] sm:$0xff]  ;;  %v14803_v7 = vld [vmem:[#allocation26_spill] sm:$0xff] }
 0x3b4   :  { %v12940_v27 = vpop.permute.xlu1 %5650  ;;  %6106 = vperm.xlu1 %9882, %v5393_v56   ;;  %v12942_v34 = vpop.permute.xlu0 %6079  ;;  %v12948_v28 = vsub.s32 %v6286_v55, %v14768_v45  ;;  %v12951_v38 = vcombine.low %v4807_v25, %v4814_v18  ;;  %v6264_v58 = vsel %vm6263_vm10, %v6262_v20, %v6257_v4  ;;  %v5411_v46 = vcombine.low %v5031_v61, %v5038_v30  ;;  %v14804_v55 = vld [vmem:[#allocation42_spill] sm:$0xff]  ;;  %v14807_v18 = vld [vmem:[#allocation9_spill] sm:$0xff]  ;;  %v14808_v20 = vld [vmem:[#allocation91_spill] sm:$0xff] }
 0x3b5   :  { %14801 = vst [vmem:[#allocation148_spill] sm:$0xff] %v12940_v27  ;;  %5971 = vperm.xlu0 %9881, %v12740_v16   ;;  %v6276_v27 = vrot.slane %v14802_v21, %v12876_v36  ;;  %v6348_v56 = vsel %vm6256_vm9, %v6347_v41, %v6343_v39  ;;  %v6269_v6 = vrot.slane %v14803_v7, %v12798_v50  ;;  %v14809_v30 = vld [vmem:[#allocation61_spill] sm:$0xff] }
 0x3b6   :  { %v6353_v8 = vsel %vm6263_vm10, %v6352_v48, %v6348_v56  ;;  %v6362_v0 = vrot.slane %v14804_v55, %v12876_v36  ;;  %v12962_v16 = vcombine.low %v4849_v22, %v4856_v52  ;;  %v12964_v25 = vcombine.low %v4835_v26, %v4842_v33  ;;  %v14811_v22 = vld [vmem:[#allocation10_spill] sm:$0xff]  ;;  %v14812_v33 = vld [vmem:[#allocation37_spill] sm:$0xff]  ;;  %v14813_v56 = vld [vmem:[#allocation104_spill] sm:$0xff] }
 0x3b7   :  { %v5045_v9 = vrot.slane %v14807_v18, %v11235_v14  ;;  %v6357_v4 = vrot.slane %v14808_v20, %v12798_v50  ;;  %v5052_v48 = vrot.slane %v14807_v18, %v11238_v29  ;;  %v5073_v52 = vrot.slane %v14811_v22, %v11235_v14  ;;  %v14814_v20 = vld [vmem:[#allocation98_spill] sm:$0xff]  ;;  %v14815_v18 = vld [vmem:[#allocation28_spill] sm:$0xff] }
 0x3b8   :  { %14805 = vst [vmem:[#allocation152_spill] sm:$0xff] %v12962_v16  ;;  %14806 = vst [vmem:[#allocation15_spill] sm:$0xff] %v12964_v25  ;;  %v12970_v39 = vpop.permute.xlu1 %5839  ;;  %5731 = vperm.xlu1 %9882, %v14809_v30   ;;  %v12973_v61 = vpop.permute.xlu0 %5704  ;;  %v6271_v26 = vsel %vm14347_vm11, %v6269_v6, %v6264_v58  ;;  %v6540_v41 = vrot.slane %v14812_v33, %v12768_v62  ;;  %v6290_v7 = vrot.slane %v14813_v56, %v12948_v28  ;;  %v14816_v58 = vld [vmem:[#allocation93_spill] sm:$0xff]  ;;  %v14819_v56 = vld [vmem:[#allocation31_spill] sm:$0xff] }
 0x3b9   :  { %14810 = vst [vmem:[#allocation156_spill] sm:$0xff] %v12973_v61  ;;  %6160 = vperm.xlu0 %9881, %v5411_v46   ;;  %v6278_v21 = vsel %vm6277_vm12, %v6276_v27, %v6271_v26  ;;  %v6358_v55 = vsel %vm14347_vm11, %v6357_v4, %v6353_v8  ;;  %v6549_v30 = vrot.slane %v14814_v20, %v12764_v42  ;;  %v14817_v46 = vld [vmem:[#allocation53_spill] sm:$0xff]  ;;  %v14818_v26 = vld [vmem:[#allocation16_spill] sm:$0xff] }
 0x3ba   :  { %v6283_v45 = vrot.slane %v14815_v18, %v12806_v51  ;;  %v6363_v16 = vsel %vm6277_vm12, %v6362_v0, %v6358_v55  ;;  %v6372_v6 = vrot.slane %v14816_v58, %v12948_v28  ;;  %v6544_v33 = vrot.slane %v14817_v46, %v12761_v35  ;;  %v14822_v55 = vld [vmem:[#allocation18_spill] sm:$0xff] }
 0x3bb   :  { %v5080_v27 = vrot.slane %v14811_v22, %v11238_v29  ;;  %v5059_v8 = vrot.slane %v14818_v26, %v11235_v14  ;;  %v5066_v4 = vrot.slane %v14818_v26, %v11238_v29  ;;  %v6367_v20 = vrot.slane %v14819_v56, %v12806_v51 }
 0x3bc   :  { %v13003_v18 = vpop.permute.xlu1 %6028  ;;  %5920 = vperm.xlu1 %9882, %v12676_v57   ;;  %v13006_v0 = vpop.permute.xlu0 %5893  ;;  %v5087_v58 = vrot.slane %v14822_v55, %v11235_v14  ;;  %v5094_v22 = vrot.slane %v14822_v55, %v11238_v29  ;;  %v6285_v46 = vsel %vm6284_vm13, %v6283_v45, %v6278_v21  ;;  %v6545_v25 = vsel %vm6200_vm1, %v6544_v33, %v6540_v41  ;;  %v14824_v14 = vld [vmem:[#allocation41_spill] sm:$0xff]  ;;  %v14825_v45 = vld [vmem:[#allocation167_spill] sm:$0xff] }
 0x3bd   :  { %14820 = vst [vmem:[#allocation17_spill] sm:$0xff] %v13003_v18  ;;  %14821 = vst [vmem:[#allocation19_spill] sm:$0xff] %v13006_v0  ;;  %5785 = vperm.xlu0 %9881, %v12656_v47   ;;  %v6292_v26 = vsel %vm6291_vm14, %v6290_v7, %v6285_v46  ;;  %v6368_v56 = vsel %vm6284_vm13, %v6367_v20, %v6363_v16  ;;  %v6550_v57 = vsel %vm6207_vm2, %v6549_v30, %v6545_v25  ;;  %v14823_v0 = vld [vmem:[#allocation116_spill] sm:$0xff]  ;;  %v14826_v41 = vld [vmem:[#allocation101_spill] sm:$0xff] }
 0x3be   :  { %v6559_v18 = vrot.slane %v14823_v0, %v12795_v12  ;;  %v6297_v61 = vrot.slane %v14824_v14, %v12821_v24  ;;  %v6373_v55 = vsel %vm6291_vm14, %v6372_v6, %v6368_v56  ;;  %v6554_v21 = vrot.slane %v14825_v45, %v12781_v1  ;;  %v14827_v25 = vld [vmem:[#allocation40_spill] sm:$0xff]  ;;  %v14837_v45 = vld [vmem:[#allocation169_spill] sm:$0xff] }
 0x3bf   :  { %v6623_v47 = vrot.slane %v14826_v41, %v12761_v35  ;;  %v5412_v33 = vcombine.low %v5045_v9, %v5052_v48  ;;  %v13027_v7 = vcombine.low %v5073_v52, %v5080_v27  ;;  %v13029_v16 = vcombine.low %v5059_v8, %v5066_v4  ;;  %v14830_v46 = vld [vmem:[#allocation52_spill] sm:$0xff]  ;;  %v14833_v4 = vld [vmem:[#allocation39_spill] sm:$0xff]  ;;  %v14845_v29 = vld [vmem:[#allocation173_spill] sm:$0xff] }
 0x3c0   :  { %v6377_v30 = vrot.slane %v14827_v25, %v12821_v24  ;;  %v13033_v20 = vpop.permute.xlu1 %5653  ;;  %6109 = vperm.xlu1 %9882, %v5394_v3   ;;  %v13035_v14 = vpop.permute.xlu0 %6082  ;;  %v13037_v6 = vcombine.low %v5087_v58, %v5094_v22  ;;  %v13040_v0 = vsel %vm6298_vm15, %v6297_v61, %v6292_v26  ;;  %v6619_v9 = vrot.slane %v14830_v46, %v12768_v62  ;;  %v14832_v3 = vld [vmem:[#allocation119_spill] sm:$0xff]  ;;  %v14834_v61 = vld [vmem:[#allocation168_spill] sm:$0xff] }
 0x3c1   :  { %14829 = vst [vmem:[#allocation155_spill] sm:$0xff] %v13040_v0  ;;  %v6555_v48 = vsel %vm6214_vm3, %v6554_v21, %v6550_v57  ;;  %5974 = vperm.xlu0 %9881, %v12746_v40   ;;  %v6856_v8 = vrot.slane %v14832_v3, %v12768_v62  ;;  %v6935_v58 = vrot.slane %v14833_v4, %v12768_v62  ;;  %v14835_v56 = vld [vmem:[#allocation100_spill] sm:$0xff]  ;;  %v14836_v40 = vld [vmem:[#allocation175_spill] sm:$0xff]  ;;  %v14838_v21 = vld [vmem:[#allocation170_spill] sm:$0xff] }
 0x3c2   :  { %14828 = vst [vmem:[#allocation21_spill] sm:$0xff] %v13037_v6  ;;  %v13047_v52 = vsel %vm6298_vm15, %v6377_v30, %v6373_v55  ;;  %v6560_v27 = vsel %vm6221_vm4, %v6559_v18, %v6555_v48  ;;  %v6564_v22 = vrot.slane %v14834_v61, %v12803_v43  ;;  %v6624_v26 = vsel %vm6200_vm1, %v6623_v47, %v6619_v9  ;;  %v14839_v25 = vld [vmem:[#allocation55_spill] sm:$0xff]  ;;  %v14847_v6 = vld [vmem:[#allocation136_spill] sm:$0xff] }
 0x3c3   :  { %14831 = vst [vmem:[#allocation23_spill] sm:$0xff] %v13047_v52  ;;  %v6633_v57 = vrot.slane %v14835_v56, %v12781_v1  ;;  %v6944_v55 = vrot.slane %v14836_v40, %v12764_v42  ;;  %v6628_v18 = vrot.slane %v14837_v45, %v12764_v42  ;;  %v6860_v41 = vrot.slane %v14838_v21, %v12761_v35  ;;  %v14840_v46 = vld [vmem:[#allocation103_spill] sm:$0xff]  ;;  %v14843_v40 = vld [vmem:[#allocation36_spill] sm:$0xff]  ;;  %v14844_v21 = vld [vmem:[#allocation54_spill] sm:$0xff] }
 0x3c4   :  { %v6939_v30 = vrot.slane %v14839_v25, %v12761_v35  ;;  %v7255_v48 = vrot.slane %v14840_v46, %v12761_v35  ;;  %v13069_v3 = vpop.permute.xlu1 %5842  ;;  %v14841_v47 = vld [vmem:[#allocation63_spill] sm:$0xff]  ;;  %v13072_v9 = vpop.permute.xlu0 %5707  ;;  %v6565_v56 = vsel %vm6228_vm5, %v6564_v22, %v6560_v27  ;;  %v6569_v45 = vrot.slane %v14843_v40, %v12809_v37  ;;  %v14846_v22 = vld [vmem:[#allocation120_spill] sm:$0xff] }
 0x3c5   :  { %5734 = vperm.xlu1 %9882, %v14841_v47   ;;  %v14842_v4 = vld [vmem:[#allocation171_spill] sm:$0xff]  ;;  %v7251_v25 = vrot.slane %v14844_v21, %v12768_v62  ;;  %6163 = vperm.xlu0 %9881, %v5412_v33   ;;  %v6861_v46 = vsel %vm6200_vm1, %v6860_v41, %v6856_v8  ;;  %v6638_v0 = vrot.slane %v14845_v29, %v12795_v12  ;;  %v14848_v33 = vld [vmem:[#allocation174_spill] sm:$0xff] }
 0x3c6   :  { %v6865_v61 = vrot.slane %v14842_v4, %v12764_v42  ;;  %v6940_v47 = vsel %vm6200_vm1, %v6939_v30, %v6935_v58  ;;  %v6629_v52 = vsel %vm6207_vm2, %v6628_v18, %v6624_v26  ;;  %v6643_v40 = vrot.slane %v14846_v22, %v12803_v43  ;;  %v14849_v41 = vld [vmem:[#allocation38_spill] sm:$0xff]  ;;  %v14850_v26 = vld [vmem:[#allocation57_spill] sm:$0xff]  ;;  %v14854_v22 = vld [vmem:[#allocation72_spill] sm:$0xff] }
 0x3c7   :  { %v6634_v4 = vsel %vm6214_vm3, %v6633_v57, %v6629_v52  ;;  %v6945_v27 = vsel %vm6207_vm2, %v6944_v55, %v6940_v47  ;;  %v6954_v21 = vrot.slane %v14847_v6, %v12795_v12  ;;  %v6949_v8 = vrot.slane %v14848_v33, %v12781_v1  ;;  %v14852_v55 = vld [vmem:[#allocation172_spill] sm:$0xff]  ;;  %v14853_v30 = vld [vmem:[#allocation118_spill] sm:$0xff] }
 0x3c8   :  { %v7176_v29 = vrot.slane %v14849_v41, %v12761_v35  ;;  %v7256_v58 = vsel %vm6200_vm1, %v7255_v48, %v7251_v25  ;;  %v7265_v18 = vrot.slane %v14850_v26, %v12781_v1  ;;  %v13099_v52 = vpop.permute.xlu1 %6031  ;;  %v13102_v57 = vpop.permute.xlu0 %5896  ;;  %v7172_v6 = vrot.slane %v14852_v55, %v12768_v62  ;;  %v14855_v48 = vld [vmem:[#allocation102_spill] sm:$0xff]  ;;  %v14856_v55 = vld [vmem:[#allocation176_spill] sm:$0xff] }
 0x3c9   :  { %5923 = vperm.xlu1 %9882, %v12672_v54   ;;  %14851 = vst [vmem:[#allocation43_spill] sm:$0xff] %v13102_v57  ;;  %v7260_v47 = vrot.slane %v14853_v30, %v12764_v42  ;;  %v6870_v33 = vrot.slane %v14854_v22, %v12781_v1  ;;  %v7181_v25 = vrot.slane %v14855_v48, %v12764_v42 }
 0x3ca   :  { %5788 = vperm.xlu0 %9881, %v12664_v17   ;;  %v6570_v41 = vsel %vm6235_vm6, %v6569_v45, %v6565_v56  ;;  %v6866_v54 = vsel %vm6207_vm2, %v6865_v61, %v6861_v46  ;;  %v6639_v26 = vsel %vm6221_vm4, %v6638_v0, %v6634_v4  ;;  %v6950_v35 = vsel %vm6214_vm3, %v6949_v8, %v6945_v27  ;;  %v14857_v17 = vld [vmem:[#allocation56_spill] sm:$0xff]  ;;  %v14858_v61 = vld [vmem:[#allocation178_spill] sm:$0xff]  ;;  %v14860_v8 = vld [vmem:[#allocation75_spill] sm:$0xff] }
 0x3cb   :  { %v6875_v62 = vrot.slane %v14856_v55, %v12795_v12  ;;  %v6644_v30 = vsel %vm6228_vm5, %v6643_v40, %v6639_v26  ;;  %v6955_v22 = vsel %vm6221_vm4, %v6954_v21, %v6950_v35  ;;  %v7261_v57 = vsel %vm6207_vm2, %v7260_v47, %v7256_v58  ;;  %v14859_v35 = vld [vmem:[#allocation177_spill] sm:$0xff] }
 0x3cc   :  { %v7177_v48 = vsel %vm6200_vm1, %v7176_v29, %v7172_v6  ;;  %v6648_v56 = vrot.slane %v14857_v17, %v12809_v37  ;;  %v6959_v45 = vrot.slane %v14858_v61, %v12803_v43  ;;  %v7266_v0 = vsel %vm6214_vm3, %v7265_v18, %v7261_v57  ;;  %v13128_v46 = vpop.permute.xlu1 %5656  ;;  %v13131_v4 = vpop.permute.xlu0 %6085  ;;  %v14861_v18 = vld [vmem:[#allocation179_spill] sm:$0xff]  ;;  %v14862_v6 = vld [vmem:[#allocation180_spill] sm:$0xff]  ;;  %v14868_v61 = vld [vmem:[#allocation182_spill] sm:$0xff] }
 0x3cd   :  { %6112 = vperm.xlu1 %9882, %v12951_v38   ;;  %v7186_v27 = vrot.slane %v14859_v35, %v12781_v1  ;;  %v6871_v40 = vsel %vm6214_vm3, %v6870_v33, %v6866_v54  ;;  %v7182_v21 = vsel %vm6207_vm2, %v7181_v25, %v7177_v48  ;;  %v7270_v29 = vrot.slane %v14860_v8, %v12795_v12  ;;  %v14863_v33 = vld [vmem:[#allocation73_spill] sm:$0xff]  ;;  %v14864_v54 = vld [vmem:[#allocation139_spill] sm:$0xff] }
 0x3ce   :  { %5977 = vperm.xlu0 %9881, %v12742_v44   ;;  %v6649_v58 = vsel %vm6235_vm6, %v6648_v56, %v6644_v30  ;;  %v6653_v57 = vrot.slane %v14861_v18, %v12829_v59  ;;  %v6960_v38 = vsel %vm6228_vm5, %v6959_v45, %v6955_v22  ;;  %v6964_v47 = vrot.slane %v14862_v6, %v12809_v37  ;;  %v14865_v44 = vld [vmem:[#allocation59_spill] sm:$0xff]  ;;  %v14866_v30 = vld [vmem:[#allocation181_spill] sm:$0xff]  ;;  %v14871_v6 = vld [vmem:[#allocation74_spill] sm:$0xff] }
 0x3cf   :  { %v7271_v26 = vsel %vm6221_vm4, %v7270_v29, %v7266_v0  ;;  %v6880_v25 = vrot.slane %v14863_v33, %v12803_v43  ;;  %v6658_v55 = vrot.slane %v14864_v54, %v12852_v60  ;;  %v7191_v48 = vrot.slane %v14865_v44, %v12795_v12  ;;  %v14867_v56 = vld [vmem:[#allocation121_spill] sm:$0xff]  ;;  %v14869_v0 = vld [vmem:[#allocation58_spill] sm:$0xff]  ;;  %v14872_v44 = vld [vmem:[#allocation60_spill] sm:$0xff] }
 0x3d0   :  { %v6969_v17 = vrot.slane %v14866_v30, %v12829_v59  ;;  %v6574_v22 = vrot.slane %v14867_v56, %v12829_v59  ;;  %v7280_v45 = vrot.slane %v14868_v61, %v12809_v37  ;;  %v6885_v35 = vrot.slane %v14869_v0, %v12809_v37  ;;  %v13161_v8 = vpop.permute.xlu1 %5845  ;;  %v14870_v29 = vld [vmem:[#allocation62_spill] sm:$0xff]  ;;  %v13164_v18 = vpop.permute.xlu0 %5899  ;;  %v14873_v56 = vld [vmem:[#allocation137_spill] sm:$0xff] }
 0x3d1   :  { %5737 = vperm.xlu1 %9882, %v14870_v29   ;;  %v7275_v33 = vrot.slane %v14871_v6, %v12803_v43  ;;  %v6876_v54 = vsel %vm6221_vm4, %v6875_v62, %v6871_v40  ;;  %v6663_v30 = vrot.slane %v14872_v44, %v12784_v31  ;;  %v7196_v61 = vrot.slane %v14873_v56, %v12803_v43  ;;  %v14874_v1 = vld [vmem:[#allocation77_spill] sm:$0xff] }
 0x3d2   :  { %6166 = vperm.xlu0 %9881, %v13029_v16   ;;  %v6654_v0 = vsel %vm6242_vm7, %v6653_v57, %v6649_v58  ;;  %v6965_v12 = vsel %vm6235_vm6, %v6964_v47, %v6960_v38  ;;  %v7187_v29 = vsel %vm6214_vm3, %v7186_v27, %v7182_v21  ;;  %v6974_v42 = vrot.slane %v14874_v1, %v12852_v60  ;;  %v14875_v47 = vld [vmem:[#allocation138_spill] sm:$0xff] }
 0x3d3   :  { %v7276_v6 = vsel %vm6228_vm5, %v7275_v33, %v7271_v26  ;;  %v6881_v62 = vsel %vm6228_vm5, %v6880_v25, %v6876_v54  ;;  %v6659_v40 = vsel %vm14346_vm8, %v6658_v55, %v6654_v0  ;;  %v7192_v44 = vsel %vm6221_vm4, %v7191_v48, %v7187_v29  ;;  %v14877_v55 = vld [vmem:[#allocation67_spill] sm:$0xff] }
 0x3d4   :  { %v6970_v56 = vsel %vm6242_vm7, %v6969_v17, %v6965_v12  ;;  %v6575_v16 = vsel %vm6242_vm7, %v6574_v22, %v6570_v41  ;;  %v7281_v58 = vsel %vm6235_vm6, %v7280_v45, %v7276_v6  ;;  %v6886_v57 = vsel %vm6235_vm6, %v6885_v35, %v6881_v62  ;;  %v13187_v27 = vpop.permute.xlu1 %6034  ;;  %v13190_v1 = vpop.permute.xlu0 %6088  ;;  %v14876_v12 = vld [vmem:[#allocation64_spill] sm:$0xff]  ;;  %v14879_v22 = vld [vmem:[#allocation123_spill] sm:$0xff]  ;;  %v14880_v35 = vld [vmem:[#allocation78_spill] sm:$0xff] }
 0x3d5   :  { %5926 = vperm.xlu1 %9882, %v12678_v13   ;;  %v6664_v21 = vsel %vm6256_vm9, %v6663_v30, %v6659_v40  ;;  %v7197_v38 = vsel %vm6228_vm5, %v7196_v61, %v7192_v44  ;;  %v6579_v26 = vrot.slane %v14875_v47, %v12852_v60  ;;  %v7285_v41 = vrot.slane %v14876_v12, %v12829_v59  ;;  %v14878_v13 = vld [vmem:[#allocation76_spill] sm:$0xff]  ;;  %v14881_v54 = vld [vmem:[#allocation79_spill] sm:$0xff]  ;;  %v14883_v47 = vld [vmem:[#allocation126_spill] sm:$0xff] }
 0x3d6   :  { %5791 = vperm.xlu0 %9881, %v12660_v23   ;;  %v6975_v25 = vsel %vm14346_vm8, %v6974_v42, %v6970_v56  ;;  %v6890_v48 = vrot.slane %v14877_v55, %v12829_v59  ;;  %v6668_v17 = vrot.slane %v14878_v13, %v12855_v15  ;;  %v7201_v45 = vrot.slane %v14879_v22, %v12809_v37  ;;  %v14882_v61 = vld [vmem:[#allocation80_spill] sm:$0xff]  ;;  %v14885_v13 = vld [vmem:[#allocation129_spill] sm:$0xff]  ;;  %v14886_v22 = vld [vmem:[#allocation131_spill] sm:$0xff] }
 0x3d7   :  { %v6979_v33 = vrot.slane %v14880_v35, %v12784_v31  ;;  %v6584_v30 = vrot.slane %v14881_v54, %v12784_v31  ;;  %v7290_v23 = vrot.slane %v14882_v61, %v12852_v60  ;;  %v6895_v42 = vrot.slane %v12680_v53, %v12852_v60 }
 0x3d8   :  { %v6673_v0 = vrot.slane %v12683_v49, %v12798_v50  ;;  %v7206_v29 = vrot.slane %v12718_v32, %v12829_v59  ;;  %v6984_v6 = vrot.slane %v12720_v11, %v12855_v15  ;;  %v6589_v62 = vrot.slane %v12748_v63, %v12855_v15  ;;  %v13222_v40 = vpop.permute.xlu1 %5659  ;;  %v13225_v44 = vpop.permute.xlu0 %6091 }
 0x3d9   :  { %6115 = vperm.xlu1 %9882, %v12944_v19   ;;  %v6580_v53 = vsel %vm14346_vm8, %v6579_v26, %v6575_v16  ;;  %v7286_v56 = vsel %vm6242_vm7, %v7285_v41, %v7281_v58  ;;  %v7295_v49 = vrot.slane %v12750_v2, %v12784_v31  ;;  %v6900_v32 = vrot.slane %v12775_v5, %v12784_v31  ;;  %v14884_v41 = vld [vmem:[#allocation66_spill] sm:$0xff] }
 0x3da   :  { %5980 = vperm.xlu0 %9881, %v12754_v10   ;;  %v6891_v11 = vsel %vm6242_vm7, %v6890_v48, %v6886_v57  ;;  %v6669_v63 = vsel %vm6263_vm10, %v6668_v17, %v6664_v21  ;;  %v7202_v19 = vsel %vm6235_vm6, %v7201_v45, %v7197_v38  ;;  %v6678_v12 = vrot.slane %v14883_v47, %v12876_v36  ;;  %v14895_v47 = vld [vmem:[#allocation17_spill] sm:$0xff] }
 0x3db   :  { %v6980_v16 = vsel %vm6256_vm9, %v6979_v33, %v6975_v25  ;;  %v6585_v58 = vsel %vm6256_vm9, %v6584_v30, %v6580_v53  ;;  %v7291_v2 = vsel %vm14346_vm8, %v7290_v23, %v7286_v56  ;;  %v6896_v26 = vsel %vm14346_vm8, %v6895_v42, %v6891_v11  ;;  %v14887_v33 = vld [vmem:[#allocation140_spill] sm:$0xff]  ;;  %v14888_v30 = vld [vmem:[#allocation142_spill] sm:$0xff]  ;;  %v14892_v53 = vld [vmem:[#allocation145_spill] sm:$0xff] }
 0x3dc   :  { %v6674_v5 = vsel %vm14347_vm11, %v6673_v0, %v6669_v63  ;;  %v7207_v10 = vsel %vm6242_vm7, %v7206_v29, %v7202_v19  ;;  %v6985_v57 = vsel %vm6263_vm10, %v6984_v6, %v6980_v16  ;;  %v6590_v21 = vsel %vm6263_vm10, %v6589_v62, %v6585_v58  ;;  %v13247_v38 = vpop.permute.xlu1 %5848  ;;  %v13250_v55 = vpop.permute.xlu0 %5713  ;;  %v14889_v23 = vld [vmem:[#allocation144_spill] sm:$0xff]  ;;  %v14890_v0 = vld [vmem:[#allocation143_spill] sm:$0xff] }
 0x3dd   :  { %5740 = vperm.xlu1 %9882, %v14884_v41   ;;  %v7296_v25 = vsel %vm6256_vm9, %v7295_v49, %v7291_v2  ;;  %v6901_v48 = vsel %vm6256_vm9, %v6900_v32, %v6896_v26  ;;  %v7211_v17 = vrot.slane %v14885_v13, %v12852_v60  ;;  %v6989_v45 = vrot.slane %v14886_v22, %v12798_v50  ;;  %v14891_v6 = vld [vmem:[#allocation147_spill] sm:$0xff]  ;;  %v14893_v56 = vld [vmem:[#allocation148_spill] sm:$0xff]  ;;  %v14898_v13 = vld [vmem:[#allocation82_spill] sm:$0xff] }
 0x3de   :  { %6169 = vperm.xlu0 %9881, %v13027_v7   ;;  %v6679_v35 = vsel %vm6277_vm12, %v6678_v12, %v6674_v5  ;;  %v6594_v54 = vrot.slane %v14887_v33, %v12798_v50  ;;  %v7300_v61 = vrot.slane %v14888_v30, %v12855_v15  ;;  %v6905_v42 = vrot.slane %v14889_v23, %v12855_v15  ;;  %v14894_v63 = vld [vmem:[#allocation156_spill] sm:$0xff]  ;;  %v14896_v58 = vld [vmem:[#allocation83_spill] sm:$0xff] }
 0x3df   :  { %v6683_v29 = vrot.slane %v14890_v0, %v12806_v51  ;;  %v7216_v62 = vrot.slane %v14891_v6, %v12784_v31  ;;  %v6994_v7 = vrot.slane %v14892_v53, %v12876_v36  ;;  %v6599_v49 = vrot.slane %v14893_v56, %v12876_v36  ;;  %v14900_v6 = vld [vmem:[#allocation141_spill] sm:$0xff] }
 0x3e0   :  { %v7305_v32 = vrot.slane %v12942_v34, %v12798_v50  ;;  %v6910_v11 = vrot.slane %v12970_v39, %v12798_v50  ;;  %v6688_v19 = vrot.slane %v14894_v63, %v12948_v28  ;;  %v7221_v12 = vrot.slane %v14895_v47, %v12855_v15  ;;  %v13282_v16 = vpop.permute.xlu1 %6037  ;;  %v13285_v2 = vpop.permute.xlu0 %5761  ;;  %v14897_v34 = vld [vmem:[#allocation19_spill] sm:$0xff]  ;;  %v14902_v47 = vld [vmem:[#allocation65_spill] sm:$0xff] }
 0x3e1   :  { %5929 = vperm.xlu1 %9882, %v14896_v58   ;;  %v7212_v26 = vsel %vm14346_vm8, %v7211_v17, %v7207_v10  ;;  %v6990_v5 = vsel %vm14347_vm11, %v6989_v45, %v6985_v57  ;;  %v6999_v41 = vrot.slane %v14897_v34, %v12806_v51  ;;  %v6604_v39 = vrot.slane %v13033_v20, %v12806_v51 }
 0x3e2   :  { %5794 = vperm.xlu0 %9881, %v14898_v13   ;;  %v6595_v22 = vsel %vm14347_vm11, %v6594_v54, %v6590_v21  ;;  %v7301_v33 = vsel %vm6263_vm10, %v7300_v61, %v7296_v25  ;;  %v6906_v30 = vsel %vm6263_vm10, %v6905_v42, %v6901_v48  ;;  %v7310_v23 = vrot.slane %v13035_v14, %v12876_v36  ;;  %v14899_v61 = vld [vmem:[#allocation15_spill] sm:$0xff] }
 0x3e3   :  { %v6684_v10 = vsel %vm6284_vm13, %v6683_v29, %v6679_v35  ;;  %v7217_v57 = vsel %vm6256_vm9, %v7216_v62, %v7212_v26  ;;  %v6995_v17 = vsel %vm6277_vm12, %v6994_v7, %v6990_v5  ;;  %v6600_v45 = vsel %vm6277_vm12, %v6599_v49, %v6595_v22  ;;  %v14901_v49 = vld [vmem:[#allocation43_spill] sm:$0xff] }
 0x3e4   :  { %v7306_v20 = vsel %vm14347_vm11, %v7305_v32, %v7301_v33  ;;  %v6911_v21 = vsel %vm14347_vm11, %v6910_v11, %v6906_v30  ;;  %v6689_v25 = vsel %vm6291_vm14, %v6688_v19, %v6684_v10  ;;  %v7222_v48 = vsel %vm6263_vm10, %v7221_v12, %v7217_v57  ;;  %v5852_v54 = vpop.permute.xlu1 %5851  ;;  %v13308_v14 = vpop.permute.xlu0 %5764  ;;  %v14903_v12 = vld [vmem:[#allocation21_spill] sm:$0xff] }
 0x3e5   :  { %6118 = vperm.xlu1 %9882, %v14899_v61   ;;  %vm14349_vm8 = vcmask 1042434   ;;  %v7000_v35 = vsel %vm6284_vm13, %v6999_v41, %v6995_v17  ;;  %v6605_v42 = vsel %vm6284_vm13, %v6604_v39, %v6600_v45  ;;  %v6915_v0 = vrot.slane %v13069_v3, %v12876_v36 }
 0x3e6   :  { %v6693_v29 = vrot.slane %v13072_v9, %v12821_v24  ;;  %5983 = vperm.xlu0 %9881, %v14900_v6   ;;  %v7311_v62 = vsel %vm6277_vm12, %v7310_v23, %v7306_v20  ;;  %v7226_v53 = vrot.slane %v13099_v52, %v12798_v50  ;;  %v6609_v7 = vrot.slane %v13128_v46, %v12948_v28  ;;  %v14904_v23 = vld [vmem:[#allocation84_spill] sm:$0xff]  ;;  %v14905_v20 = vld [vmem:[#allocation81_spill] sm:$0xff] }
 0x3e7   :  { %v6920_v56 = vrot.slane %v13161_v8, %v12806_v51  ;;  %v7004_v32 = vrot.slane %v14901_v49, %v12948_v28  ;;  %v7315_v3 = vrot.slane %v13131_v4, %v12806_v51  ;;  %v6614_v9 = vrot.slane %v13222_v40, %v12821_v24 }
 0x3e8   :  { %v6925_v11 = vrot.slane %v13247_v38, %v12948_v28  ;;  %v7009_v52 = vrot.slane %v13164_v18, %v12821_v24  ;;  %v7231_v46 = vrot.slane %v13187_v27, %v12876_v36  ;;  %v7320_v8 = vrot.slane %v13190_v1, %v12948_v28  ;;  %v6041_v19 = vpop.permute.xlu1 %6040  ;;  %v13340_v4 = vpop.permute.xlu0 %5905 }
 0x3e9   :  { %v6930_v63 = vrot.slane %v5852_v54, %v12821_v24  ;;  %5743 = vperm.xlu1 %9882, %v14902_v47   ;;  %v6916_v40 = vsel %vm6277_vm12, %v6915_v0, %v6911_v21  ;;  %v6694_v38 = vsel %vm6298_vm15, %v6693_v29, %v6689_v25  ;;  %v7325_v18 = vrot.slane %v13225_v44, %v12821_v24  ;;  %v14906_v21 = vld [vmem:[#allocation149_spill] sm:$0xff]  ;;  %v14907_v25 = vld [vmem:[#allocation11_spill] sm:$0xff]  ;;  %v14910_v29 = vld [vmem:[#allocation150_spill] sm:$0xff] }
 0x3ea   :  { %v7236_v27 = vrot.slane %v13282_v16, %v12806_v51  ;;  %6172 = vperm.xlu0 %9881, %v14903_v12   ;;  %v7227_v1 = vsel %vm14347_vm11, %v7226_v53, %v7222_v48  ;;  %v6610_v58 = vsel %vm6291_vm14, %v6609_v7, %v6605_v42  ;;  %v6921_v26 = vsel %vm6284_vm13, %v6920_v56, %v6916_v40  ;;  %v14908_v54 = vld [vmem:[#allocation23_spill] sm:$0xff]  ;;  %v14911_v56 = vld [vmem:[#allocation130_spill] sm:$0xff]  ;;  %v14915_v40 = vld [vmem:[#allocation85_spill] sm:$0xff] }
 0x3eb   :  { %v7241_v5 = vrot.slane %v6041_v19, %v12948_v28  ;;  %v7005_v34 = vsel %vm6291_vm14, %v7004_v32, %v7000_v35  ;;  %v7316_v41 = vsel %vm6284_vm13, %v7315_v3, %v7311_v62  ;;  %v6615_v39 = vsel %vm6298_vm15, %v6614_v9, %v6610_v58  ;;  %v14909_v35 = vld [vmem:[#allocation155_spill] sm:$0xff]  ;;  %v14912_v9 = vld [vmem:[#allocation152_spill] sm:$0xff]  ;;  %v14914_v19 = vld [vmem:[#allocation125_spill] sm:$0xff] }
 0x3ec   :  { %v6926_v44 = vsel %vm6291_vm14, %v6925_v11, %v6921_v26  ;;  %v7010_v16 = vsel %vm6298_vm15, %v7009_v52, %v7005_v34  ;;  %v7232_v13 = vsel %vm6277_vm12, %v7231_v46, %v7227_v1  ;;  %v7321_v22 = vsel %vm6291_vm14, %v7320_v8, %v7316_v41  ;;  %v6044_v30 = vpop.permute.xlu1 %6043  ;;  %v13362_v10 = vpop.permute.xlu0 %5953  ;;  %v14913_v8 = vld [vmem:[#allocation122_spill] sm:$0xff]  ;;  %v14919_v58 = vld [vmem:[#allocation87_spill] sm:$0xff] }
 0x3ed   :  { %v6931_v33 = vsel %vm6298_vm15, %v6930_v63, %v6926_v44  ;;  %5932 = vperm.xlu1 %9882, %v14904_v23   ;;  %v7326_v57 = vsel %vm6298_vm15, %v7325_v18, %v7321_v22  ;;  %v7237_v17 = vsel %vm6284_vm13, %v7236_v27, %v7232_v13  ;;  %v7246_v45 = vrot.slane %v6044_v30, %v12821_v24  ;;  %v14916_v18 = vld [vmem:[#allocation69_spill] sm:$0xff]  ;;  %v14920_v13 = vld [vmem:[#allocation151_spill] sm:$0xff] }
 0x3ee   :  { %5797 = vperm.xlu0 %9881, %v14905_v20   ;;  %vm14348_vm11 = vcmask 1043459   ;;  %v5101_v48 = vrot.slane %v14907_v25, %v14906_v21  ;;  %v7491_v61 = vsel %vm7485_vm0, %v6694_v38, %v14908_v54  ;;  %v7486_v42 = vsel %vm7485_vm0, %v6615_v39, %v14909_v35 }
 0x3ef   :  { %v7242_v0 = vsel %vm6291_vm14, %v7241_v5, %v7237_v17  ;;  %v5108_v6 = vrot.slane %v14907_v25, %v14910_v29  ;;  %v7488_v53 = vsel %vm14349_vm8, %v6931_v33, %v7486_v42  ;;  %v7492_v7 = vsel %vm14349_vm8, %v7010_v16, %v7491_v61  ;;  %v14921_v17 = vld [vmem:[#allocation162_spill] sm:$0xff]  ;;  %v14922_v25 = vld [vmem:[#allocation124_spill] sm:$0xff]  ;;  %v14923_v61 = vld [vmem:[#allocation127_spill] sm:$0xff] }
 0x3f0   :  { %v7247_v62 = vsel %vm6298_vm15, %v7246_v45, %v7242_v0  ;;  %v3981_v49 = vrot.slane %v14911_v56, %v14906_v21  ;;  %v3988_v32 = vrot.slane %v14911_v56, %v14910_v29  ;;  %v5711_v3 = vpop.permute.xlu1 %5710  ;;  %v5768_v11 = vpop.permute.xlu0 %5767  ;;  %v7493_v46 = vsel %vm14348_vm11, %v7326_v57, %v7492_v7  ;;  %v14924_v7 = vld [vmem:[#allocation68_spill] sm:$0xff] }
 0x3f1   :  { %6121 = vperm.xlu1 %9882, %v14912_v9   ;;  %v7490_v52 = vsel %vm14348_vm11, %v7247_v62, %v7488_v53  ;;  %v6702_v63 = vrot.slane %v13250_v55, %v14913_v8  ;;  %v6698_v47 = vrot.slane %v5711_v3, %v14914_v19  ;;  %v14917_v27 = vrot.slane %v14916_v18, %v14910_v29  ;;  %v9984_v3 = vld [vmem:[%s14157_s1 + $0x20c] ss:$16 sps:$4 sm:$0xff]  }
 0x3f2   :  { %5986 = vperm.xlu0 %9881, %v14915_v40   ;;  %v7500_v38 = vcombine.low %v7490_v52, %v7493_v46  ;;  %v14918_v12 = vrot.slane %v14916_v18, %v14906_v21  ;;  %v3351_v26 = vrot.slane %v14919_v58, %v14906_v21  ;;  %v3358_v5 = vrot.slane %v14919_v58, %v14910_v29  ;;  %v9979_v46 = vld [vmem:[%s14157_s1 + $0x200] ss:$16 sps:$4 sm:$0xff]  }
 0x3f3   :  { %v5416_v34 = vcombine.low %v5101_v48, %v5108_v6  ;;  %v6703_v55 = vsel %vm6200_vm1, %v6702_v63, %v6698_v47  ;;  %v5336_v39 = vcombine.low %v3981_v49, %v3988_v32  ;;  %v4233_v22 = vrot.slane %v14920_v13, %v14906_v21  ;;  %v9981_v32 = vld [vmem:[%s14157_s1 + $0x204] ss:$16 sps:$4 sm:$0xff]   ;;  %v9982_v63 = vld [vmem:[%s14157_s1 + $0x208] ss:$16 sps:$4 sm:$0xff]   ;;  %v14925_v47 = vld [vmem:[#allocation20_spill] sm:$0xff]  ;;  %8416 = vmatprep.subr.bf16.mxu1 %v9984_v3 }
 0x3f4   :  { %v5273_v1 = vcombine.low %v14918_v12, %v14917_v27  ;;  %v7513_v41 = vmul.f32 0.0625, %v7500_v38  ;;  %v5759_v44 = vpop.permute.xlu1 %5758  ;;  %v13402_v16 = vpop.permute.xlu0 %5956  ;;  %v6781_v33 = vrot.slane %v13285_v2, %v14913_v8  ;;  %v4240_v57 = vrot.slane %v14920_v13, %v14910_v29  ;;  %8334 = vmatprep.subr.bf16.mxu0 %v9981_v32  ;;  %v14926_v27 = vld [vmem:[#allocation133_spill] sm:$0xff]  ;;  %v9991_v32 = vld [vmem:[%s14157_s1 + $0x240] ss:$16 sps:$4 sm:$0xff]  }
 0x3f5   :  { %v6777_v30 = vrot.slane %v5759_v44, %v14914_v19  ;;  %v4863_v45 = vrot.slane %v14921_v17, %v14906_v21  ;;  %v4870_v20 = vrot.slane %v14921_v17, %v14910_v29  ;;  %v6786_v48 = vrot.slane %v13308_v14, %v14922_v25  ;;  %v14927_v44 = vld [vmem:[#allocation86_spill] sm:$0xff]  ;;  %v9994_v3 = vld [vmem:[%s14157_s1 + $0x248] ss:$16 sps:$4 sm:$0xff]  }
 0x3f6   :  { %5746 = vperm.xlu1 %9882, %v5273_v1   ;;  %6175 = vperm.xlu0 %9881, %v5416_v34   ;;  %v7517_v23 = vcombine.high %v7513_v41, %v7513_v41  ;;  %v5291_v54 = vcombine.low %v3351_v26, %v3358_v5  ;;  %v6791_v35 = vrot.slane %v5768_v11, %v14923_v61  ;;  %v14928_v17 = vld [vmem:[#allocation154_spill] sm:$0xff]  ;;  %vm14944_vm11 = vcmask 589312  }
 0x3f7   :  { %v6782_v2 = vsel %vm6200_vm1, %v6781_v33, %v6777_v30  ;;  %v7521_v53 = vpack.c.bf16 %v7513_v41, %v7513_v41  ;;  %v3113_v56 = vrot.slane %v14924_v7, %v14906_v21  ;;  %v3120_v9 = vrot.slane %v14924_v7, %v14910_v29  ;;  %v9990_v41 = vld [vmem:[%s14157_s1 + $0x22c] ss:$16 sps:$4 sm:$0xff]   ;;  %v14930_v7 = vld [vmem:[#allocation161_spill] sm:$0xff]  ;;  %vm14945_vm8 = vmmov %vm14944_vm11 }
 0x3f8   :  { %v7522_v42 = vpack.c.bf16 %v7517_v23, %v7517_v23  ;;  %v6787_v0 = vsel %vm6207_vm2, %v6786_v48, %v6782_v2  ;;  %v5717_v6 = vpop.permute.xlu1 %5716  ;;  %v13420_v62 = vpop.permute.xlu0 %6097  ;;  %v5354_v11 = vcombine.low %v4233_v22, %v4240_v57  ;;  %v5399_v52 = vcombine.low %v4863_v45, %v4870_v20  ;;  %v9988_v22 = vld [vmem:[%s14157_s1 + $0x228] ss:$16 sps:$4 sm:$0xff]   ;;  %v14929_v2 = vld [vmem:[#allocation128_spill] sm:$0xff] }
 0x3f9   :  { %v6707_v49 = vrot.slane %v5717_v6, %v14922_v25  ;;  %v6792_v14 = vsel %vm6214_vm3, %v6791_v35, %v6787_v0  ;;  %v5115_v40 = vrot.slane %v14925_v47, %v14906_v21  ;;  %v5122_v38 = vrot.slane %v14925_v47, %v14910_v29  ;;  %v9993_v0 = vld [vmem:[%s14157_s1 + $0x244] ss:$16 sps:$4 sm:$0xff]   ;;  %v9996_v6 = vld [vmem:[%s14157_s1 + $0x24c] ss:$16 sps:$4 sm:$0xff]  }
 0x3fa   :  { %5935 = vperm.xlu1 %9882, %v5336_v39   ;;  %5800 = vperm.xlu0 %9881, %v5291_v54   ;;  %v3995_v12 = vrot.slane %v14926_v27, %v14906_v21  ;;  %v4002_v1 = vrot.slane %v14926_v27, %v14910_v29  ;;  %v7018_v5 = vrot.slane %v13340_v4, %v14913_v8  ;;  %v9985_v4 = vld [vmem:[%s14157_s1 + $0x220] ss:$16 sps:$4 sm:$0xff]   ;;  %v14931_v47 = vld [vmem:[#allocation71_spill] sm:$0xff] }
 0x3fb   :  { %8325 = vmatprep.mubr.bf16.mxu0 %v7522_v42  ;;  %8407 = vmatprep.mubr.bf16.mxu1 %v7522_v42  ;;  %v13445_v18 = vsel %vm6207_vm2, %v6707_v49, %v6703_v55  ;;  %v9987_v55 = vld [vmem:[%s14157_s1 + $0x224] ss:$16 sps:$4 sm:$0xff]   ;;  %v5274_v39 = vcombine.low %v3113_v56, %v3120_v9  ;;  %v3365_v13 = vrot.slane %v14927_v44, %v14906_v21 }
 0x3fc   :  { %8326 = vmatmul.mubr.bf16.vlgmr.msra.gmra.mrb[0].mxu0 %v7521_v53  ;;  %8408 = vmatmul.mubr.bf16.vlgmr.msra.gmra.mrb[0].mxu1 %v7521_v53  ;;  %v5903_v58 = vpop.permute.xlu1 %5902  ;;  %v13451_v26 = vpop.permute.xlu0 %6145  ;;  %v3372_v33 = vrot.slane %v14927_v44, %v14910_v29  ;;  %v5417_v30 = vcombine.low %v5115_v40, %v5122_v38  ;;  %v5337_v57 = vcombine.low %v3995_v12, %v4002_v1  ;;  %v10002_v12 = vld [vmem:[%s14157_s1 + $0x26c] ss:$16 sps:$4 sm:$0xff]  }
 0x3fd   :  { %v7014_v34 = vrot.slane %v5903_v58, %v14914_v19  ;;  %8335 = vmatpush1.bf16.msra.mxu0 %v9979_v46  ;;  %8417 = vmatpush1.bf16.msra.mxu1 %v9982_v63  ;;  %v4247_v45 = vrot.slane %v14928_v17, %v14906_v21  ;;  %v7097_v54 = vrot.slane %v13362_v10, %v14913_v8 }
 0x3fe   :  { %6124 = vperm.xlu1 %9882, %v5399_v52   ;;  %5989 = vperm.xlu0 %9881, %v5354_v11   ;;  %v4254_v53 = vrot.slane %v14928_v17, %v14910_v29  ;;  %v4877_v10 = vrot.slane %v14930_v7, %v14906_v21  ;;  %v4884_v56 = vrot.slane %v14930_v7, %v14910_v29 }
 0x3ff   :  { %v13473_v23 = vsel %vm6200_vm1, %v7018_v5, %v7014_v34  ;;  %8336 = vmatprep.subr.bf16.mxu0 %v9987_v55  ;;  %8418 = vmatprep.subr.bf16.mxu1 %v9990_v41  ;;  %v7102_v49 = vrot.slane %v13402_v16, %v14922_v25  ;;  %v5292_v9 = vcombine.low %v3365_v13, %v3372_v33  ;;  %v14932_v34 = vld [vmem:[#allocation12_spill] sm:$0xff] }
 0x400   :  { %v5951_v20 = vpop.permute.xlu1 %5950  ;;  %v5771_v48 = vpop.permute.xlu0 %5770  ;;  %v3127_v40 = vrot.slane %v14931_v47, %v14906_v21  ;;  %v3134_v1 = vrot.slane %v14931_v47, %v14910_v29  ;;  %v5355_v58 = vcombine.low %v4247_v45, %v4254_v53  ;;  %v5400_v5 = vcombine.low %v4877_v10, %v4884_v56  ;;  %v9997_v41 = vld [vmem:[%s14157_s1 + $0x260] ss:$16 sps:$4 sm:$0xff]  }
 0x401   :  { %v7093_v35 = vrot.slane %v5951_v20, %v14914_v19  ;;  %v6796_v42 = vrot.slane %v5771_v48, %v14929_v2  ;;  %8337 = vmatpush1.bf16.msra.mxu0 %v9985_v4  ;;  %8419 = vmatpush1.bf16.msra.mxu1 %v9988_v22  ;;  %v5129_v55 = vrot.slane %v14932_v34, %v14906_v21  ;;  %v14933_v22 = vld [vmem:[#allocation132_spill] sm:$0xff]  ;;  %v14936_v47 = vld [vmem:[#allocation22_spill] sm:$0xff] }
 0x402   :  { %5749 = vperm.xlu1 %9882, %v5274_v39   ;;  %6178 = vperm.xlu0 %9881, %v5417_v30   ;;  %v10000_v39 = vld [vmem:[%s14157_s1 + $0x268] ss:$16 sps:$4 sm:$0xff]   ;;  %v5136_v44 = vrot.slane %v14932_v34, %v14910_v29  ;;  %v4009_v33 = vrot.slane %v14933_v22, %v14906_v21  ;;  %v4016_v30 = vrot.slane %v14933_v22, %v14910_v29  ;;  %v10008_v20 = vld [vmem:[%s14157_s1 + $0x28c] ss:$16 sps:$4 sm:$0xff]  }
 0x403   :  { %v7098_v11 = vsel %vm6200_vm1, %v7097_v54, %v7093_v35  ;;  %v13503_v52 = vsel %vm6221_vm4, %v6796_v42, %v6792_v14  ;;  %8338 = vmatprep.subr.bf16.mxu0 %v9993_v0  ;;  %8420 = vmatprep.subr.bf16.mxu1 %v9996_v6  ;;  %v9999_v14 = vld [vmem:[%s14157_s1 + $0x264] ss:$16 sps:$4 sm:$0xff]   ;;  %v5275_v48 = vcombine.low %v3127_v40, %v3134_v1  ;;  %v10003_v0 = vld [vmem:[%s14157_s1 + $0x280] ss:$16 sps:$4 sm:$0xff]   ;;  %v10006_v6 = vld [vmem:[%s14157_s1 + $0x288] ss:$16 sps:$4 sm:$0xff]  }
 0x404   :  { %v5720_v46 = vpop.permute.xlu1 %5719  ;;  %v7103_v16 = vsel %vm6207_vm2, %v7102_v49, %v7098_v11  ;;  %v5960_v63 = vpop.permute.xlu0 %5959  ;;  %v14934_v54 = vld [vmem:[#allocation153_spill] sm:$0xff]  ;;  %v5418_v53 = vcombine.low %v5129_v55, %v5136_v44  ;;  %v5338_v10 = vcombine.low %v4009_v33, %v4016_v30  ;;  %v10014_v11 = vld [vmem:[%s14157_s1 + $0x2ac] ss:$16 sps:$4 sm:$0xff]   ;;  %v5143_v40 = vrot.slane %v14936_v47, %v14906_v21 }
 0x405   :  { %v6712_v38 = vrot.slane %v5720_v46, %v14923_v61  ;;  %v7107_v27 = vrot.slane %v5960_v63, %v14923_v61  ;;  %8339 = vmatpush1.bf16.msra.mxu0 %v9991_v32  ;;  %8421 = vmatpush1.bf16.msra.mxu1 %v9994_v3  ;;  %v4261_v35 = vrot.slane %v14934_v54, %v14906_v21  ;;  %v10020_v33 = vld [vmem:[%s14157_s1 + $0x2cc] ss:$16 sps:$4 sm:$0xff]  }
 0x406   :  { %5938 = vperm.xlu1 %9882, %v5337_v57   ;;  %5803 = vperm.xlu0 %9881, %v5292_v9   ;;  %v4268_v42 = vrot.slane %v14934_v54, %v14910_v29  ;;  %v7334_v32 = vrot.slane %v13420_v62, %v14913_v8 }
 0x407   :  { %v13530_v13 = vsel %vm6214_vm3, %v6712_v38, %v13445_v18  ;;  %v13533_v4 = vsel %vm6214_vm3, %v7107_v27, %v7103_v16  ;;  %8340 = vmatprep.subr.bf16.mxu0 %v9999_v14  ;;  %8422 = vmatprep.subr.bf16.mxu1 %v10002_v12  ;;  %v10005_v18 = vld [vmem:[%s14157_s1 + $0x284] ss:$16 sps:$4 sm:$0xff]   ;;  %v14935_v16 = vld [vmem:[#allocation164_spill] sm:$0xff]  ;;  %v10012_v27 = vld [vmem:[%s14157_s1 + $0x2a8] ss:$16 sps:$4 sm:$0xff]   ;;  %v5150_v14 = vrot.slane %v14936_v47, %v14910_v29 }
 0x408   :  { %v5909_v57 = vpop.permute.xlu1 %5908  ;;  %v13539_v17 = vpop.permute.xlu0 %6148  ;;  %v5356_v46 = vcombine.low %v4261_v35, %v4268_v42  ;;  %v4891_v63 = vrot.slane %v14935_v16, %v14906_v21  ;;  %v4898_v62 = vrot.slane %v14935_v16, %v14910_v29  ;;  %v10009_v38 = vld [vmem:[%s14157_s1 + $0x2a0] ss:$16 sps:$4 sm:$0xff]  }
 0x409   :  { %v7023_v45 = vrot.slane %v5909_v57, %v14922_v25  ;;  %8341 = vmatpush1.bf16.msra.mxu0 %v9997_v41  ;;  %8423 = vmatpush1.bf16.msra.mxu1 %v10000_v39  ;;  %v7413_v39 = vrot.slane %v13451_v26, %v14913_v8  ;;  %v14938_v57 = vld [vmem:[#allocation13_spill] sm:$0xff]  ;;  %v5419_v54 = vcombine.low %v5143_v40, %v5150_v14 }
 0x40a   :  { %6127 = vperm.xlu1 %9882, %v5400_v5   ;;  %5992 = vperm.xlu0 %9881, %v5355_v58   ;;  %v14937_v58 = vld [vmem:[#allocation70_spill] sm:$0xff]  ;;  %v5401_v30 = vcombine.low %v4891_v63, %v4898_v62  ;;  %v5164_v26 = vrot.slane %v14938_v57, %v14910_v29 }
 0x40b   :  { %v13560_v7 = vsel %vm6207_vm2, %v7023_v45, %v13473_v23  ;;  %8342 = vmatprep.subr.bf16.mxu0 %v10005_v18  ;;  %8424 = vmatprep.subr.bf16.mxu1 %v10008_v20  ;;  %v10011_v23 = vld [vmem:[%s14157_s1 + $0x2a4] ss:$16 sps:$4 sm:$0xff]   ;;  %v3141_v5 = vrot.slane %v14937_v58, %v14906_v21  ;;  %v3148_v34 = vrot.slane %v14937_v58, %v14910_v29  ;;  %v10015_v20 = vld [vmem:[%s14157_s1 + $0x2c0] ss:$16 sps:$4 sm:$0xff]  }
 0x40c   :  { %v6095_v56 = vpop.permute.xlu1 %6094  ;;  %v5774_v49 = vpop.permute.xlu0 %5773  ;;  %v5157_v45 = vrot.slane %v14938_v57, %v14906_v21  ;;  %v7418_v18 = vrot.slane %v13539_v17, %v14922_v25  ;;  %v14940_v58 = vld [vmem:[#allocation163_spill] sm:$0xff] }
 0x40d   :  { %v7330_v3 = vrot.slane %v6095_v56, %v14914_v19  ;;  %v6801_v9 = vrot.slane %v5774_v49, %v12803_v43  ;;  %8343 = vmatpush1.bf16.msra.mxu0 %v10003_v0  ;;  %8425 = vmatpush1.bf16.msra.mxu1 %v10006_v6  ;;  %v10023_v56 = vld [vmem:[%s14157_s1 + $0x2e4] ss:$16 sps:$4 sm:$0xff]   ;;  %v5276_v49 = vcombine.low %v3141_v5, %v3148_v34 }
 0x40e   :  { %5752 = vperm.xlu1 %9882, %v5275_v48   ;;  %6181 = vperm.xlu0 %9881, %v5418_v53   ;;  %v10018_v48 = vld [vmem:[%s14157_s1 + $0x2c8] ss:$16 sps:$4 sm:$0xff]   ;;  %v4905_v5 = vrot.slane %v14940_v58, %v14906_v21  ;;  %v4912_v34 = vrot.slane %v14940_v58, %v14910_v29  ;;  %v10035_v57 = vld [vmem:[%s14157_s1 + $0x324] ss:$16 sps:$4 sm:$0xff]  }
 0x40f   :  { %v13587_v12 = vsel %vm6200_vm1, %v7334_v32, %v7330_v3  ;;  %v13591_v1 = vsel %vm6228_vm5, %v6801_v9, %v13503_v52  ;;  %8344 = vmatprep.subr.bf16.mxu0 %v10011_v23  ;;  %8426 = vmatprep.subr.bf16.mxu1 %v10014_v11  ;;  %v10017_v52 = vld [vmem:[%s14157_s1 + $0x2c4] ss:$16 sps:$4 sm:$0xff]   ;;  %v10021_v23 = vld [vmem:[%s14157_s1 + $0x2e0] ss:$16 sps:$4 sm:$0xff]   ;;  %v10024_v11 = vld [vmem:[%s14157_s1 + $0x2e8] ss:$16 sps:$4 sm:$0xff]  }
 0x410   :  { %v6143_v55 = vpop.permute.xlu1 %6142  ;;  %v5963_v41 = vpop.permute.xlu0 %5962  ;;  %v14939_v32 = vld [vmem:[#allocation135_spill] sm:$0xff] }
 0x411   :  { %v7409_v44 = vrot.slane %v6143_v55, %v14914_v19  ;;  %v7112_v22 = vrot.slane %v5963_v41, %v14929_v2  ;;  %8345 = vmatpush1.bf16.msra.mxu0 %v10009_v38  ;;  %8427 = vmatpush1.bf16.msra.mxu1 %v10012_v27  ;;  %v4023_v3 = vrot.slane %v14939_v32, %v14906_v21  ;;  %v10029_v27 = vld [vmem:[%s14157_s1 + $0x304] ss:$16 sps:$4 sm:$0xff]   ;;  %v10027_v55 = vld [vmem:[%s14157_s1 + $0x300] ss:$16 sps:$4 sm:$0xff]   ;;  %v10030_v41 = vld [vmem:[%s14157_s1 + $0x308] ss:$16 sps:$4 sm:$0xff]  }
 0x412   :  { %5941 = vperm.xlu1 %9882, %v5338_v10   ;;  %5995 = vperm.xlu0 %9881, %v5356_v46   ;;  %v4030_v9 = vrot.slane %v14939_v32, %v14910_v29  ;;  %v5420_v46 = vcombine.low %v5157_v45, %v5164_v26  ;;  %v10039_v32 = vld [vmem:[%s14157_s1 + $0x340] ss:$16 sps:$4 sm:$0xff]   ;;  %v10048_v58 = vld [vmem:[%s14157_s1 + $0x368] ss:$16 sps:$4 sm:$0xff]  }
 0x413   :  { %v7414_v35 = vsel %vm6200_vm1, %v7413_v39, %v7409_v44  ;;  %v7113_v42 = vsel %vm6221_vm4, %v7112_v22, %v13533_v4  ;;  %8346 = vmatprep.subr.bf16.mxu0 %v10017_v52  ;;  %8428 = vmatprep.subr.bf16.mxu1 %v10020_v33  ;;  %v10026_v4 = vld [vmem:[%s14157_s1 + $0x2ec] ss:$16 sps:$4 sm:$0xff]  }
 0x414   :  { %v5723_v0 = vpop.permute.xlu1 %5722  ;;  %v7419_v17 = vsel %vm6207_vm2, %v7418_v18, %v7414_v35  ;;  %v6152_v6 = vpop.permute.xlu0 %6151  ;;  %v5339_v14 = vcombine.low %v4023_v3, %v4030_v9  ;;  %v5402_v18 = vcombine.low %v4905_v5, %v4912_v34  ;;  %v10042_v3 = vld [vmem:[%s14157_s1 + $0x348] ss:$16 sps:$4 sm:$0xff]  }
 0x415   :  { %v6717_v53 = vrot.slane %v5723_v0, %v14929_v2  ;;  %v7423_v10 = vrot.slane %v6152_v6, %v14923_v61  ;;  %8347 = vmatpush1.bf16.msra.mxu0 %v10015_v20  ;;  %8429 = vmatpush1.bf16.msra.mxu1 %v10018_v48  ;;  %v10033_v20 = vld [vmem:[%s14157_s1 + $0x320] ss:$16 sps:$4 sm:$0xff]   ;;  %v10036_v48 = vld [vmem:[%s14157_s1 + $0x328] ss:$16 sps:$4 sm:$0xff]  }
 0x416   :  { %6130 = vperm.xlu1 %9882, %v5401_v30   ;;  %6184 = vperm.xlu0 %9881, %v5419_v54  }
 0x417   :  { %v6718_v16 = vsel %vm6221_vm4, %v6717_v53, %v13530_v13  ;;  %v7424_v63 = vsel %vm6214_vm3, %v7423_v10, %v7419_v17  ;;  %8348 = vmatprep.subr.bf16.mxu0 %v10023_v56  ;;  %8430 = vmatprep.subr.bf16.mxu1 %v10026_v4  ;;  %v10032_v13 = vld [vmem:[%s14157_s1 + $0x30c] ss:$16 sps:$4 sm:$0xff]   ;;  %v10041_v10 = vld [vmem:[%s14157_s1 + $0x344] ss:$16 sps:$4 sm:$0xff]  }
 0x418   :  { %v5912_v62 = vpop.permute.xlu1 %5911  ;;  %v5777_v47 = vpop.permute.xlu0 %5776 }
 0x419   :  { %v7028_v40 = vrot.slane %v5912_v62, %v14923_v61  ;;  %v6806_v38 = vrot.slane %v5777_v47, %v12809_v37  ;;  %8349 = vmatpush1.bf16.msra.mxu0 %v10021_v23  ;;  %8431 = vmatpush1.bf16.msra.mxu1 %v10024_v11 }
 0x41a   :  { %5755 = vperm.xlu1 %9882, %v5276_v49   ;;  %6187 = vperm.xlu0 %9881, %v5420_v46  }
 0x41b   :  { %v7029_v39 = vsel %vm6214_vm3, %v7028_v40, %v13560_v7  ;;  %v6807_v44 = vsel %vm6235_vm6, %v6806_v38, %v13591_v1  ;;  %8350 = vmatprep.subr.bf16.mxu0 %v10029_v27  ;;  %8432 = vmatprep.subr.bf16.mxu1 %v10032_v13  ;;  %v10038_v7 = vld [vmem:[%s14157_s1 + $0x32c] ss:$16 sps:$4 sm:$0xff]   ;;  %v10047_v40 = vld [vmem:[%s14157_s1 + $0x364] ss:$16 sps:$4 sm:$0xff]  }
 0x41c   :  { %v6101_v22 = vpop.permute.xlu1 %6100  ;;  %v5966_v52 = vpop.permute.xlu0 %5965  ;;  %v14941_v1 = vld [vmem:[#allocation134_spill] sm:$0xff] }
 0x41d   :  { %v7339_v33 = vrot.slane %v6101_v22, %v14922_v25  ;;  %v7117_v30 = vrot.slane %v5966_v52, %v12803_v43  ;;  %8351 = vmatpush1.bf16.msra.mxu0 %v10027_v55  ;;  %v4037_v45 = vrot.slane %v14941_v1, %v14906_v21  ;;  %v4044_v26 = vrot.slane %v14941_v1, %v14910_v29  ;;  %v10053_v22 = vld [vmem:[%s14157_s1 + $0x384] ss:$16 sps:$4 sm:$0xff]  }
 0x41e   :  { %5944 = vperm.xlu1 %9882, %v5339_v14   ;;  %8433 = vmatpush1.bf16.msra.mxu1 %v10030_v41  ;;  %v10045_v14 = vld [vmem:[%s14157_s1 + $0x360] ss:$16 sps:$4 sm:$0xff]  }
 0x41f   :  { %v7340_v54 = vsel %vm6207_vm2, %v7339_v33, %v13587_v12  ;;  %v7118_v35 = vsel %vm6228_vm5, %v7117_v30, %v7113_v42  ;;  %8352 = vmatprep.subr.bf16.mxu0 %v10035_v57  ;;  %8434 = vmatprep.subr.bf16.mxu1 %v10038_v7  ;;  %v10044_v12 = vld [vmem:[%s14157_s1 + $0x34c] ss:$16 sps:$4 sm:$0xff]   ;;  %v5340_v56 = vcombine.low %v4037_v45, %v4044_v26  ;;  %v10054_v33 = vld [vmem:[%s14157_s1 + $0x388] ss:$16 sps:$4 sm:$0xff]  }
 0x420   :  { %v5726_v0 = vpop.permute.xlu1 %5725  ;;  %v6155_v17 = vpop.permute.xlu0 %6154  ;;  %v14942_v42 = vld [vmem:[#allocation166_spill] sm:$0xff] }
 0x421   :  { %v6722_v6 = vrot.slane %v5726_v0, %v12803_v43  ;;  %v7428_v53 = vrot.slane %v6155_v17, %v14929_v2  ;;  %8353 = vmatpush1.bf16.msra.mxu0 %v10033_v20  ;;  %v4919_v4 = vrot.slane %v14942_v42, %v14906_v21  ;;  %v4926_v49 = vrot.slane %v14942_v42, %v14910_v29  ;;  %v10062_v20 = vld [vmem:[%s14157_s1 + $0x3ac] ss:$16 sps:$4 sm:$0xff]  }
 0x422   :  { %6133 = vperm.xlu1 %9882, %v5402_v18   ;;  %8435 = vmatpush1.bf16.msra.mxu1 %v10036_v48  ;;  %v10059_v18 = vld [vmem:[%s14157_s1 + $0x3a4] ss:$16 sps:$4 sm:$0xff]   ;;  %v10057_v48 = vld [vmem:[%s14157_s1 + $0x3a0] ss:$16 sps:$4 sm:$0xff]   ;;  %v10068_v42 = vld [vmem:[%s14157_s1 + $0x3cc] ss:$16 sps:$4 sm:$0xff]  }
 0x423   :  { %v6723_v9 = vsel %vm6228_vm5, %v6722_v6, %v6718_v16  ;;  %v7429_v23 = vsel %vm6221_vm4, %v7428_v53, %v7424_v63  ;;  %8354 = vmatprep.subr.bf16.mxu0 %v10041_v10  ;;  %8436 = vmatprep.subr.bf16.mxu1 %v10044_v12  ;;  %v10050_v16 = vld [vmem:[%s14157_s1 + $0x36c] ss:$16 sps:$4 sm:$0xff]   ;;  %v14943_v63 = vld [vmem:[#allocation165_spill] sm:$0xff]  ;;  %v5403_v13 = vcombine.low %v4919_v4, %v4926_v49 }
 0x424   :  { %v5915_v11 = vpop.permute.xlu1 %5914  ;;  %v5780_v46 = vpop.permute.xlu0 %5779  ;;  %v4933_v38 = vrot.slane %v14943_v63, %v14906_v21  ;;  %v4940_v27 = vrot.slane %v14943_v63, %v14910_v29  ;;  %v10065_v53 = vld [vmem:[%s14157_s1 + $0x3c4] ss:$16 sps:$4 sm:$0xff]   ;;  %v10066_v4 = vld [vmem:[%s14157_s1 + $0x3c8] ss:$16 sps:$4 sm:$0xff]  }
 0x425   :  { %v7033_v62 = vrot.slane %v5915_v11, %v14929_v2  ;;  %v6811_v47 = vrot.slane %v5780_v46, %v12829_v59  ;;  %8355 = vmatpush1.bf16.msra.mxu0 %v10039_v32  ;;  %v10071_v49 = vld [vmem:[%s14157_s1 + $0x3e4] ss:$16 sps:$4 sm:$0xff]  }
 0x426   :  { %5947 = vperm.xlu1 %9882, %v5340_v56   ;;  %8437 = vmatpush1.bf16.msra.mxu1 %v10042_v3  ;;  %v5404_v52 = vcombine.low %v4933_v38, %v4940_v27  ;;  %v10063_v56 = vld [vmem:[%s14157_s1 + $0x3c0] ss:$16 sps:$4 sm:$0xff]  }
 0x427   :  { %v7034_v5 = vsel %vm6221_vm4, %v7033_v62, %v7029_v39  ;;  %v6812_v34 = vsel %vm6242_vm7, %v6811_v47, %v6807_v44  ;;  %8356 = vmatprep.subr.bf16.mxu0 %v10047_v40  ;;  %8438 = vmatprep.subr.bf16.mxu1 %v10050_v16  ;;  %v10056_v39 = vld [vmem:[%s14157_s1 + $0x38c] ss:$16 sps:$4 sm:$0xff]   ;;  %v10051_v44 = vld [vmem:[%s14157_s1 + $0x380] ss:$16 sps:$4 sm:$0xff]   ;;  %v10072_v40 = vld [vmem:[%s14157_s1 + $0x3e8] ss:$16 sps:$4 sm:$0xff]  }
 0x428   :  { %v6104_v21 = vpop.permute.xlu1 %6103  ;;  %v5969_v55 = vpop.permute.xlu0 %5968  ;;  %v10069_v47 = vld [vmem:[%s14157_s1 + $0x3e0] ss:$16 sps:$4 sm:$0xff]  }
 0x429   :  { %v7344_v29 = vrot.slane %v6104_v21, %v14923_v61  ;;  %v7122_v41 = vrot.slane %v5969_v55, %v12809_v37  ;;  %8357 = vmatpush1.bf16.msra.mxu0 %v10045_v14 }
 0x42a   :  { %6136 = vperm.xlu1 %9882, %v5403_v13   ;;  %8439 = vmatpush1.bf16.msra.mxu1 %v10048_v58 }
 0x42b   :  { %v7345_v30 = vsel %vm6214_vm3, %v7344_v29, %v7340_v54  ;;  %v7123_v57 = vsel %vm6235_vm6, %v7122_v41, %v7118_v35  ;;  %8358 = vmatprep.subr.bf16.mxu0 %v10053_v22  ;;  %8440 = vmatprep.subr.bf16.mxu1 %v10056_v39  ;;  %v10060_v54 = vld [vmem:[%s14157_s1 + $0x3a8] ss:$16 sps:$4 sm:$0xff]  }
 0x42c   :  { %v5729_v7 = vpop.permute.xlu1 %5728  ;;  %v6158_v1 = vpop.permute.xlu0 %6157 }
 0x42d   :  { %v6727_v45 = vrot.slane %v5729_v7, %v12809_v37  ;;  %v7433_v26 = vrot.slane %v6158_v1, %v12803_v43  ;;  %8359 = vmatpush1.bf16.msra.mxu0 %v10051_v44 }
 0x42e   :  { %6139 = vperm.xlu1 %9882, %v5404_v52   ;;  %8441 = vmatpush1.bf16.msra.mxu1 %v10054_v33 }
 0x42f   :  { %v6728_v35 = vsel %vm6235_vm6, %v6727_v45, %v6723_v9  ;;  %v7434_v0 = vsel %vm6228_vm5, %v7433_v26, %v7429_v23  ;;  %8360 = vmatprep.subr.bf16.mxu0 %v10059_v18  ;;  %8442 = vmatprep.subr.bf16.mxu1 %v10062_v20  ;;  %v10074_v9 = vld [vmem:[%s14157_s1 + $0x3ec] ss:$16 sps:$4 sm:$0xff]  }
 0x430   :  { %v5918_v17 = vpop.permute.xlu1 %5917  ;;  %v5783_v6 = vpop.permute.xlu0 %5782 }
 0x431   :  { %v7038_v10 = vrot.slane %v5918_v17, %v12803_v43  ;;  %v6816_v12 = vrot.slane %v5783_v6, %v12852_v60  ;;  %8361 = vmatpush1.bf16.msra.mxu0 %v10057_v48 }
 0x432   :  { %8443 = vmatpush1.bf16.msra.mxu1 %v10060_v54  ;;  %8362 = vmatprep.subr.bf16.mxu0 %v10065_v53 }
 0x433   :  { %v7039_v32 = vsel %vm6228_vm5, %v7038_v10, %v7034_v5  ;;  %v6817_v3 = vsel %vm14944_vm11, %v6816_v12, %v6812_v34  ;;  %8444 = vmatprep.subr.bf16.mxu1 %v10068_v42 }
 0x434   :  { %v6107_v23 = vpop.permute.xlu1 %6106  ;;  %v5972_v11 = vpop.permute.xlu0 %5971 }
 0x435   :  { %v7349_v46 = vrot.slane %v6107_v23, %v14929_v2  ;;  %v7127_v62 = vrot.slane %v5972_v11, %v12829_v59  ;;  %8363 = vmatpush1.bf16.msra.mxu0 %v10063_v56 }
 0x436   :  { %8445 = vmatpush1.bf16.msra.mxu1 %v10066_v4  ;;  %8364 = vmatprep.subr.bf16.mxu0 %v10071_v49 }
 0x437   :  { %v7350_v16 = vsel %vm6221_vm4, %v7349_v46, %v7345_v30  ;;  %v7128_v63 = vsel %vm6242_vm7, %v7127_v62, %v7123_v57  ;;  %8446 = vmatprep.subr.bf16.mxu1 %v10074_v9 }
 0x438   :  { %v5732_v38 = vpop.permute.xlu1 %5731  ;;  %v6161_v27 = vpop.permute.xlu0 %6160 }
 0x439   :  { %v6732_v13 = vrot.slane %v5732_v38, %v12829_v59  ;;  %v7438_v14 = vrot.slane %v6161_v27, %v12809_v37  ;;  %8365 = vmatpush1.bf16.msra.mxu0 %v10069_v47 }
 0x43a   :  { %8447 = vmatpush1.bf16.msra.mxu1 %v10072_v40 }
 0x43b   :  { %v6733_v58 = vsel %vm6242_vm7, %v6732_v13, %v6728_v35  ;;  %v7439_v5 = vsel %vm6235_vm6, %v7438_v14, %v7434_v0 }
 0x43c   :  { %v5921_v34 = vpop.permute.xlu1 %5920  ;;  %v5786_v21 = vpop.permute.xlu0 %5785 }
 0x43d   :  { %v7043_v55 = vrot.slane %v5921_v34, %v12809_v37  ;;  %v6821_v29 = vrot.slane %v5786_v21, %v12784_v31 }
 0x43f   :  { %v7044_v41 = vsel %vm6235_vm6, %v7043_v55, %v7039_v32  ;;  %v6822_v22 = vsel %vm6256_vm9, %v6821_v29, %v6817_v3 }
 0x440   :  { %v6110_v39 = vpop.permute.xlu1 %6109  ;;  %v5975_v52 = vpop.permute.xlu0 %5974 }
 0x441   :  { %v7354_v44 = vrot.slane %v6110_v39, %v12803_v43  ;;  %v7132_v33 = vrot.slane %v5975_v52, %v12852_v60 }
 0x443   :  { %v7355_v30 = vsel %vm6228_vm5, %v7354_v44, %v7350_v16  ;;  %v7133_v57 = vsel %vm14944_vm11, %v7132_v33, %v7128_v63  ;;  %vm14946_vm11 = vmmov %vm14945_vm8 }
 0x444   :  { %v5735_v7 = vpop.permute.xlu1 %5734  ;;  %v6164_v1 = vpop.permute.xlu0 %6163 }
 0x445   :  { %v6737_v45 = vrot.slane %v5735_v7, %v12852_v60  ;;  %v7443_v26 = vrot.slane %v6164_v1, %v12829_v59 }
 0x447   :  { %v6738_v18 = vsel %vm14945_vm8, %v6737_v45, %v6733_v58  ;;  %v7444_v20 = vsel %vm6242_vm7, %v7443_v26, %v7439_v5  ;;  %v14947_v45 = vld [vmem:[#allocation112_spill] sm:$0xff] }
 0x448   :  { %v5924_v48 = vpop.permute.xlu1 %5923  ;;  %v6461_v26 = vrot.slane %v14947_v45, %v14914_v19 }
 0x449   :  { %v5789_v54 = vpop.permute.xlu0 %5788  ;;  %v7048_v35 = vrot.slane %v5924_v48, %v12829_v59  ;;  %v14949_v48 = vld [vmem:[#allocation49_spill] sm:$0xff] }
 0x44a   :  { %v6826_v0 = vrot.slane %v5789_v54, %v12855_v15  ;;  %v6465_v54 = vrot.slane %v14949_v48, %v14913_v8  ;;  %v14957_v48 = vld [vmem:[#allocation44_spill] sm:$0xff] }
 0x44b   :  { %v7049_v17 = vsel %vm6242_vm7, %v7048_v35, %v7044_v41 }
 0x44c   :  { %v13811_v6 = vsel %vm6263_vm10, %v6826_v0, %v6822_v22  ;;  %v6113_v53 = vpop.permute.xlu1 %6112 }
 0x44d   :  { %v5978_v10 = vpop.permute.xlu0 %5977  ;;  %v7359_v12 = vrot.slane %v6113_v53, %v12809_v37 }
 0x44e   :  { %v7137_v56 = vrot.slane %v5978_v10, %v12784_v31  ;;  %v14950_v10 = vld [vmem:[#allocation115_spill] sm:$0xff] }
 0x44f   :  { %v7360_v42 = vsel %vm6235_vm6, %v7359_v12, %v7355_v30  ;;  %v6480_v12 = vrot.slane %v14950_v10, %v14929_v2 }
 0x450   :  { %v13817_v4 = vsel %vm6256_vm9, %v7137_v56, %v7133_v57  ;;  %v5738_v49 = vpop.permute.xlu1 %5737  ;;  %v14951_v56 = vld [vmem:[#allocation30_spill] sm:$0xff] }
 0x451   :  { %v6167_v32 = vpop.permute.xlu0 %6166  ;;  %v6742_v3 = vrot.slane %v5738_v49, %v12784_v31 }
 0x452   :  { %v7448_v9 = vrot.slane %v6167_v32, %v12852_v60 }
 0x453   :  { %v6743_v23 = vsel %vm6256_vm9, %v6742_v3, %v6738_v18  ;;  %v14948_v18 = vld [vmem:[#allocation97_spill] sm:$0xff] }
 0x454   :  { %v13823_v11 = vsel %vm14945_vm8, %v7448_v9, %v7444_v20  ;;  %v5927_v46 = vpop.permute.xlu1 %5926  ;;  %v6470_v20 = vrot.slane %v14948_v18, %v14922_v25 }
 0x455   :  { %v13825_v62 = vpop.permute.xlu0 %5791  ;;  %v7053_v47 = vrot.slane %v5927_v46, %v12852_v60 }
 0x457   :  { %v7054_v40 = vsel %vm14946_vm11, %v7053_v47, %v7049_v17  ;;  %v6466_v17 = vsel %vm6200_vm1, %v6465_v54, %v6461_v26  ;;  %v14953_v47 = vld [vmem:[#allocation48_spill] sm:$0xff]  ;;  %v14956_v26 = vld [vmem:[#allocation90_spill] sm:$0xff]  ;;  %v6391_v54 = vrot.slane %v14957_v48, %v14922_v25  ;;  %vm14958_vm11 = vmmov %vm14945_vm8 }
 0x458   :  { %v6116_v16 = vpop.permute.xlu1 %6115  ;;  %v6471_v53 = vsel %vm6207_vm2, %v6470_v20, %v6466_v17  ;;  %v6382_v18 = vrot.slane %v14956_v26, %v14914_v19 }
 0x459   :  { %v13829_v63 = vpop.permute.xlu0 %5980  ;;  %v7364_v38 = vrot.slane %v6116_v16, %v12829_v59 }
 0x45b   :  { %v7365_v27 = vsel %vm6242_vm7, %v7364_v38, %v7360_v42  ;;  %v6475_v42 = vrot.slane %v14951_v56, %v14923_v61 }
 0x45c   :  { %v5741_v13 = vpop.permute.xlu1 %5740 }
 0x45d   :  { %v13833_v14 = vpop.permute.xlu0 %6169  ;;  %v6747_v58 = vrot.slane %v5741_v13, %v12855_v15  ;;  %v6476_v3 = vsel %vm6214_vm3, %v6475_v42, %v6471_v53  ;;  %v14959_v53 = vld [vmem:[#allocation34_spill] sm:$0xff]  ;;  %v14961_v42 = vld [vmem:[#allocation51_spill] sm:$0xff] }
 0x45e   :  { %v6481_v9 = vsel %vm6221_vm4, %v6480_v12, %v6476_v3  ;;  %v6510_v10 = vrot.slane %v14959_v53, %v12855_v15  ;;  %v14960_v12 = vld [vmem:[#allocation89_spill] sm:$0xff]  ;;  %v6505_v3 = vrot.slane %v14961_v42, %v12784_v31 }
 0x45f   :  { %v13837_v5 = vsel %vm6263_vm10, %v6747_v58, %v6743_v23  ;;  %v14952_v23 = vld [vmem:[#allocation96_spill] sm:$0xff]  ;;  %v14954_v58 = vld [vmem:[#allocation114_spill] sm:$0xff]  ;;  %v6386_v56 = vrot.slane %v14960_v12, %v14913_v8 }
 0x460   :  { %v5930_v34 = vpop.permute.xlu1 %5929  ;;  %v6490_v46 = vrot.slane %v14952_v23, %v12809_v37 }
 0x461   :  { %v13839_v21 = vpop.permute.xlu0 %5794  ;;  %v7058_v55 = vrot.slane %v5930_v34, %v12784_v31  ;;  %v6500_v34 = vrot.slane %v14954_v58, %v12852_v60  ;;  %v6387_v19 = vsel %vm6200_vm1, %v6386_v56, %v6382_v18  ;;  %v14964_v58 = vld [vmem:[#allocation32_spill] sm:$0xff]  ;;  %v14965_v18 = vld [vmem:[#allocation109_spill] sm:$0xff]  ;;  %vm14966_vm1 = vcmask 786112   ;;  %v14968_v56 = vld [vmem:[#allocation50_spill] sm:$0xff] }
 0x462   :  { %v6392_v25 = vsel %vm6207_vm2, %v6391_v54, %v6387_v19  ;;  %v6836_v48 = vrot.slane %v13839_v21, %v12876_v36  ;;  %v6525_v42 = vrot.slane %v14968_v56, %v12806_v51  ;;  %vm14969_vm2 = vmmov %vm14966_vm1 }
 0x463   :  { %v13843_v29 = vsel %vm6256_vm9, %v7058_v55, %v7054_v40  ;;  %v6485_v40 = vrot.slane %v14953_v47, %v12803_v43  ;;  %v14955_v55 = vld [vmem:[#allocation33_spill] sm:$0xff] }
 0x464   :  { %v6119_v41 = vpop.permute.xlu1 %6118 }
 0x465   :  { %v13845_v22 = vpop.permute.xlu0 %5983  ;;  %v7369_v39 = vrot.slane %v6119_v41, %v12852_v60  ;;  %v6495_v41 = vrot.slane %v14955_v55, %v12829_v59  ;;  %v6831_v55 = vrot.slane %v13825_v62, %v12798_v50 }
 0x467   :  { %v13849_v52 = vsel %vm14945_vm8, %v7369_v39, %v7365_v27  ;;  %v6486_v27 = vsel %vm6228_vm5, %v6485_v40, %v6481_v9  ;;  %v14962_v40 = vld [vmem:[#allocation99_spill] sm:$0xff] }
 0x468   :  { %v13851_v44 = vpop.permute.xlu1 %5743  ;;  %v6491_v13 = vsel %vm6235_vm6, %v6490_v46, %v6486_v27  ;;  %v6520_v27 = vrot.slane %v14962_v40, %v12876_v36 }
 0x469   :  { %v13853_v33 = vpop.permute.xlu0 %6172  ;;  %v6496_v20 = vsel %vm6242_vm7, %v6495_v41, %v6491_v13  ;;  %v14963_v13 = vld [vmem:[#allocation45_spill] sm:$0xff] }
 0x46a   :  { %v6501_v17 = vsel %vm14958_vm11, %v6500_v34, %v6496_v20  ;;  %v6396_v8 = vrot.slane %v14963_v13, %v14923_v61  ;;  %v6515_v34 = vrot.slane %v14964_v58, %v12798_v50  ;;  %v6401_v20 = vrot.slane %v14965_v18, %v14929_v2  ;;  %v14971_v13 = vld [vmem:[#allocation106_spill] sm:$0xff]  ;;  %vm14987_vm11 = vmmov %vm14966_vm1 }
 0x46b   :  { %v6506_v46 = vsel %vm6256_vm9, %v6505_v3, %v6501_v17  ;;  %v7142_v61 = vrot.slane %v13829_v63, %v12855_v15  ;;  %v7147_v2 = vrot.slane %v13845_v22, %v12798_v50  ;;  %v6832_v3 = vsel %vm14969_vm2, %v6831_v55, %v13811_v6  ;;  %v14970_v22 = vld [vmem:[#allocation92_spill] sm:$0xff] }
 0x46c   :  { %v13855_v30 = vpop.permute.xlu1 %5932  ;;  %v6511_v47 = vsel %vm6263_vm10, %v6510_v10, %v6506_v46  ;;  %v6397_v54 = vsel %vm6214_vm3, %v6396_v8, %v6392_v25  ;;  %v14967_v10 = vld [vmem:[#allocation117_spill] sm:$0xff]  ;;  %v6406_v8 = vrot.slane %v14971_v13, %v12803_v43  ;;  %vm14972_vm3 = vmmov %vm14966_vm1  ;;  %v7453_v43 = vrot.slane %v13833_v14, %v12784_v31 }
 0x46d   :  { %v13857_v57 = vpop.permute.xlu0 %5797  ;;  %v6516_v17 = vsel %vm14966_vm1, %v6515_v34, %v6511_v47  ;;  %v6530_v12 = vrot.slane %v14967_v10, %v12948_v28  ;;  %v6402_v25 = vsel %vm6221_vm4, %v6401_v20, %v6397_v54  ;;  %v6411_v47 = vrot.slane %v14970_v22, %v12809_v37 }
 0x46e   :  { %v6841_v53 = vrot.slane %v13857_v57, %v12806_v51  ;;  %v6521_v62 = vsel %vm6277_vm12, %v6520_v27, %v6516_v17  ;;  %vm14976_vm4 = vcmask 1042434  }
 0x46f   :  { %v6526_v6 = vsel %vm6284_vm13, %v6525_v42, %v6521_v62  ;;  %v7458_v62 = vrot.slane %v13853_v33, %v12855_v15  ;;  %v14975_v42 = vld [vmem:[#allocation107_spill] sm:$0xff]  ;;  %vm14989_vm2 = vmmov %vm14976_vm4 }
 0x470   :  { %v13859_v7 = vpop.permute.xlu1 %6121  ;;  %v6531_v58 = vsel %vm6291_vm14, %v6530_v12, %v6526_v6  ;;  %v14974_v12 = vld [vmem:[#allocation110_spill] sm:$0xff] }
 0x471   :  { %v13861_v1 = vpop.permute.xlu0 %5986 }
 0x472   :  { %v7152_v63 = vrot.slane %v13861_v1, %v12876_v36  ;;  %v7143_v1 = vsel %vm6263_vm10, %v7142_v61, %v13817_v4 }
 0x473   :  { %v7148_v37 = vsel %vm14972_vm3, %v7147_v2, %v7143_v1  ;;  %v6421_v2 = vrot.slane %v14974_v12, %v12852_v60  ;;  %v7454_v60 = vsel %vm6256_vm9, %v7453_v43, %v13823_v11  ;;  %v14980_v1 = vld [vmem:[#allocation47_spill] sm:$0xff]  ;;  %v14985_v12 = vld [vmem:[#allocation94_spill] sm:$0xff]  ;;  %vm14990_vm3 = vmmov %vm14966_vm1 }
 0x474   :  { %v7153_v18 = vsel %vm6277_vm12, %v7152_v63, %v7148_v37 }
 0x475   :  { %v13869_v35 = vpop.permute.xlu1 %5746  ;;  %v13871_v0 = vpop.permute.xlu0 %6175 }
 0x479   :  { %v13879_v49 = vpop.permute.xlu1 %5935  ;;  %v5801_v32 = vpop.permute.xlu0 %5800 }
 0x47a   :  { %v6846_v21 = vrot.slane %v5801_v32, %v12948_v28  ;;  %v6837_v32 = vsel %vm6277_vm12, %v6836_v48, %v6832_v3  ;;  %v6416_v3 = vrot.slane %v14975_v42, %v12829_v59 }
 0x47d   :  { %v13887_v16 = vpop.permute.xlu1 %6124  ;;  %v13889_v38 = vpop.permute.xlu0 %5989 }
 0x47e   :  { %v7157_v40 = vrot.slane %v13889_v38, %v12806_v51  ;;  %v14973_v38 = vld [vmem:[#allocation35_spill] sm:$0xff] }
 0x47f   :  { %v6535_v55 = vrot.slane %v14973_v38, %v12821_v24  ;;  %v14981_v38 = vld [vmem:[#allocation113_spill] sm:$0xff] }
 0x480   :  { %v7158_v54 = vsel %vm6284_vm13, %v7157_v40, %v7153_v18 }
 0x481   :  { %v13897_v39 = vpop.permute.xlu1 %5749  ;;  %v13899_v45 = vpop.permute.xlu0 %6178 }
 0x482   :  { %v7468_v63 = vrot.slane %v13899_v45, %v12876_v36  ;;  %v14978_v45 = vld [vmem:[#allocation95_spill] sm:$0xff] }
 0x483   :  { %v6431_v40 = vrot.slane %v14978_v45, %v12855_v15 }
 0x485   :  { %v13913_v9 = vpop.permute.xlu1 %5938  ;;  %v5804_v23 = vpop.permute.xlu0 %5803 }
 0x486   :  { %v6851_v57 = vrot.slane %v5804_v23, %v12821_v24  ;;  %v6842_v23 = vsel %vm6284_vm13, %v6841_v53, %v6837_v32  ;;  %v6536_v53 = vsel %vm6298_vm15, %v6535_v55, %v6531_v58  ;;  %v6441_v55 = vrot.slane %v14981_v38, %v12876_v36 }
 0x487   :  { %v6847_v34 = vsel %vm6291_vm14, %v6846_v21, %v6842_v23  ;;  %v7463_v21 = vrot.slane %v13871_v0, %v12798_v50  ;;  %v6426_v23 = vrot.slane %v14980_v1, %v12784_v31 }
 0x488   :  { %v6852_v4 = vsel %vm6298_vm15, %v6851_v57, %v6847_v34 }
 0x489   :  { %v13927_v41 = vpop.permute.xlu1 %6127  ;;  %v5993_v26 = vpop.permute.xlu0 %5992  ;;  %v7497_v14 = vsel %vm7485_vm0, %v6852_v4, %v6536_v53  ;;  %v14982_v4 = vld [vmem:[#allocation108_spill] sm:$0xff]  ;;  %v7063_v53 = vrot.slane %v13855_v30, %v12855_v15 }
 0x48a   :  { %v7162_v27 = vrot.slane %v5993_v26, %v12948_v28  ;;  %v6407_v26 = vsel %vm6228_vm5, %v6406_v8, %v6402_v25  ;;  %vm14977_vm5 = vmmov %vm14945_vm8 }
 0x48b   :  { %v6412_v61 = vsel %vm6235_vm6, %v6411_v47, %v6407_v26  ;;  %v7459_v47 = vsel %vm6263_vm10, %v7458_v62, %v7454_v60  ;;  %vm14979_vm6 = vmmov %vm14966_vm1  ;;  %v6752_v26 = vrot.slane %v13851_v44, %v12798_v50  ;;  %v6762_v62 = vrot.slane %v13897_v39, %v12806_v51 }
 0x48c   :  { %v7163_v10 = vsel %vm6291_vm14, %v7162_v27, %v7158_v54  ;;  %v6417_v22 = vsel %vm6242_vm7, %v6416_v3, %v6412_v61  ;;  %v7464_v6 = vsel %vm14979_vm6, %v7463_v21, %v7459_v47  ;;  %vm14983_vm7 = vcmask 1043459   ;;  %vm14984_vm8 = vmmov %vm14966_vm1 }
 0x48d   :  { %v13952_v19 = vpop.permute.xlu1 %5752  ;;  %v6182_v46 = vpop.permute.xlu0 %6181  ;;  %v6422_v59 = vsel %vm14977_vm5, %v6421_v2, %v6417_v22  ;;  %v7469_v11 = vsel %vm6277_vm12, %v7468_v63, %v7464_v6  ;;  %v6451_v2 = vrot.slane %v14985_v12, %v12948_v28  ;;  %v7068_v44 = vrot.slane %v13879_v49, %v12798_v50  ;;  %v10086_v12 = vld [vmem:[#allocation3 + $0x90] sm:$0xff]  }
 0x48e   :  { %v7473_v0 = vrot.slane %v6182_v46, %v12806_v51  ;;  %v6427_v58 = vsel %vm6256_vm9, %v6426_v23, %v6422_v59  ;;  %v6767_v21 = vrot.slane %v13952_v19, %v12948_v28  ;;  %v6753_v30 = vsel %vm14987_vm11, %v6752_v26, %v13837_v5  ;;  %v10077_v26 = vld [vmem:[#allocation3] sm:$0xff]  }
 0x48f   :  { %v6432_v34 = vsel %vm6263_vm10, %v6431_v40, %v6427_v58  ;;  %v7073_v39 = vrot.slane %v13913_v9, %v12876_v36  ;;  %v7064_v19 = vsel %vm6263_vm10, %v7063_v53, %v13843_v29  ;;  %v7374_v29 = vrot.slane %v13859_v7, %v12784_v31  ;;  %v10083_v53 = vld [vmem:[#allocation3 + $0x50] sm:$0xff]  }
 0x490   :  { %v7474_v13 = vsel %vm6284_vm13, %v7473_v0, %v7469_v11  ;;  %v7069_v9 = vsel %vm14966_vm1, %v7068_v44, %v7064_v19  ;;  %v14988_v0 = vld [vmem:[#allocation111_spill] sm:$0xff]  ;;  %v7379_v6 = vrot.slane %v13887_v16, %v12855_v15  ;;  %v7384_v23 = vrot.slane %v13927_v41, %v12798_v50 }
 0x491   :  { %v13974_v20 = vpop.permute.xlu1 %5941  ;;  %v5996_v48 = vpop.permute.xlu0 %5995  ;;  %v6456_v22 = vrot.slane %v14988_v0, %v12821_v24  ;;  %v10088_v44 = vld [vmem:[#allocation3 + $0xd8] sm:$0xff]   ;;  %v10099_v19 = vld [vmem:[#allocation3 + $0x70] sm:$0xff]  }
 0x492   :  { %v7167_v17 = vrot.slane %v5996_v48, %v12821_v24  ;;  %v6436_v48 = vrot.slane %v14982_v4, %v12798_v50  ;;  %v7078_v49 = vrot.slane %v13974_v20, %v12806_v51  ;;  %v7074_v20 = vsel %vm6277_vm12, %v7073_v39, %v7069_v9  ;;  %v10075_v4 = vld [vmem:[#allocation3 + $0x40] sm:$0xff]   ;;  %v10103_v9 = vld [vmem:[#allocation3 + $0x78] sm:$0xff]  }
 0x493   :  { %9821 = vmatprep.subr.bf16.mxu0 %v10075_v4  ;;  %v10093_v39 = vld [vmem:[#allocation3 + $0x20] sm:$0xff]   ;;  %v10105_v0 = vld [vmem:[#allocation3 + $0x38] sm:$0xff]  }
 0x494   :  { %v7168_v56 = vsel %vm6298_vm15, %v7167_v17, %v7163_v10  ;;  %v6757_v17 = vrot.slane %v13869_v35, %v12876_v36  ;;  %v6437_v61 = vsel %vm14984_vm8, %v6436_v48, %v6432_v34  ;;  %v14986_v35 = vld [vmem:[#allocation46_spill] sm:$0xff]  ;;  %v7079_v59 = vsel %vm6284_vm13, %v7078_v49, %v7074_v20  ;;  %v10076_v48 = vld [vmem:[#allocation3 + $0xc0] sm:$0xff]  }
 0x495   :  { %v7498_v33 = vsel %vm14976_vm4, %v7168_v56, %v7497_v14  ;;  %v13997_v57 = vpop.permute.xlu1 %6130  ;;  %v6185_v25 = vpop.permute.xlu0 %6184  ;;  %v6442_v10 = vsel %vm6277_vm12, %v6441_v55, %v6437_v61  ;;  %v6446_v14 = vrot.slane %v14986_v35, %v12806_v51  ;;  %9843 = vmatprep.subr.bf16.mxu1 %v10076_v48  ;;  %v10081_v61 = vld [vmem:[#allocation3 + $0x8] sm:$0xff]   ;;  %v10090_v35 = vld [vmem:[#allocation3 + $0x98] sm:$0xff]  }
 0x496   :  { %v7478_v32 = vrot.slane %v6185_v25, %v12948_v28  ;;  %v6758_v3 = vsel %vm6277_vm12, %v6757_v17, %v6753_v30  ;;  %v7389_v31 = vrot.slane %v13997_v57, %v12876_v36  ;;  %v10080_v17 = vld [vmem:[#allocation3 + $0xc8] sm:$0xff]   ;;  %v10092_v30 = vld [vmem:[#allocation3 + $0xe0] sm:$0xff]  }
 0x497   :  { %v6447_v63 = vsel %vm6284_vm13, %v6446_v14, %v6442_v10  ;;  %v10085_v10 = vld [vmem:[#allocation3 + $0x10] sm:$0xff]   ;;  %v10091_v14 = vld [vmem:[#allocation3 + $0x60] sm:$0xff]   ;;  %v10097_v49 = vld [vmem:[#allocation3 + $0x28] sm:$0xff]  }
 0x498   :  { %v7479_v37 = vsel %vm6291_vm14, %v7478_v32, %v7474_v13  ;;  %v6452_v25 = vsel %vm6291_vm14, %v6451_v2, %v6447_v63  ;;  %v7375_v13 = vsel %vm6256_vm9, %v7374_v29, %v13849_v52  ;;  %vm14991_vm9 = vmmov %vm14983_vm7  ;;  %v10087_v2 = vld [vmem:[#allocation3 + $0x58] sm:$0xff]   ;;  %v10098_v63 = vld [vmem:[#allocation3 + $0xa8] sm:$0xff]  }
 0x499   :  { %v5756_v27 = vpop.permute.xlu1 %5755  ;;  %v6188_v46 = vpop.permute.xlu0 %6187  ;;  %v6457_v40 = vsel %vm6298_vm15, %v6456_v22, %v6452_v25  ;;  %v7380_v16 = vsel %vm6263_vm10, %v7379_v6, %v7375_v13  ;;  %v10102_v25 = vld [vmem:[#allocation3 + $0xb0] sm:$0xff]   ;;  %v10106_v22 = vld [vmem:[#allocation3 + $0xb8] sm:$0xff]   ;;  %vm8457_vm10 = vcmask 1043456  }
 0x49a   :  { %v7483_v8 = vrot.slane %v6188_v46, %v12821_v24  ;;  %v6772_v56 = vrot.slane %v5756_v27, %v12821_v24  ;;  %v7385_v50 = vsel %vm14990_vm3, %v7384_v23, %v7380_v16 }
 0x49b   :  { %v7390_v41 = vsel %vm6277_vm12, %v7389_v31, %v7385_v50 }
 0x49c   :  { %v7484_v18 = vsel %vm6298_vm15, %v7483_v8, %v7479_v37 }
 0x49d   :  { %v7499_v43 = vsel %vm14983_vm7, %v7484_v18, %v7498_v33  ;;  %v5945_v54 = vpop.permute.xlu1 %5944  ;;  %v6763_v33 = vsel %vm6284_vm13, %v6762_v62, %v6758_v3  ;;  %v10084_v62 = vld [vmem:[#allocation3 + $0xd0] sm:$0xff]   ;;  %v10096_v3 = vld [vmem:[#allocation3 + $0xe8] sm:$0xff]  }
 0x49e   :  { %v7083_v5 = vrot.slane %v5945_v54, %v12948_v28  ;;  %v6768_v60 = vsel %vm6291_vm14, %v6767_v21, %v6763_v33  ;;  %v10078_v54 = vld [vmem:[#allocation3 + $0x80] sm:$0xff]   ;;  %v10089_v21 = vld [vmem:[#allocation3 + $0x18] sm:$0xff]   ;;  %v10100_v33 = vld [vmem:[#allocation3 + $0xf0] sm:$0xff]  }
 0x49f   :  { %v6773_v47 = vsel %vm6298_vm15, %v6772_v56, %v6768_v60  ;;  %v10094_v56 = vld [vmem:[#allocation3 + $0xa0] sm:$0xff]   ;;  %v10104_v60 = vld [vmem:[#allocation3 + $0xf8] sm:$0xff]  }
 0x4a0   :  { %v7084_v1 = vsel %vm6291_vm14, %v7083_v5, %v7079_v59  ;;  %v7494_v11 = vsel %vm7485_vm0, %v6773_v47, %v6457_v40  ;;  %v10101_v5 = vld [vmem:[#allocation3 + $0x30] sm:$0xff]  }
 0x4a1   :  { %v6134_v42 = vpop.permute.xlu1 %6133 }
 0x4a2   :  { %v7394_v15 = vrot.slane %v6134_v42, %v12806_v51  ;;  %v10095_v42 = vld [vmem:[#allocation3 + $0x68] sm:$0xff]  }
 0x4a4   :  { %v7395_v37 = vsel %vm6284_vm13, %v7394_v15, %v7390_v41 }
 0x4a5   :  { %v5948_v32 = vpop.permute.xlu1 %5947 }
 0x4a6   :  { %v7088_v45 = vrot.slane %v5948_v32, %v12821_v24 }
 0x4a8   :  { %v7089_v27 = vsel %vm6298_vm15, %v7088_v45, %v7084_v1 }
 0x4a9   :  { %v7495_v7 = vsel %vm14989_vm2, %v7089_v27, %v7494_v11  ;;  %v6137_v46 = vpop.permute.xlu1 %6136 }
 0x4aa   :  { %v7399_v8 = vrot.slane %v6137_v46, %v12948_v28 }
 0x4ac   :  { %v7400_v57 = vsel %vm6291_vm14, %v7399_v8, %v7395_v37 }
 0x4ad   :  { %v6140_v58 = vpop.permute.xlu1 %6139 }
 0x4ae   :  { %v7404_v36 = vrot.slane %v6140_v58, %v12821_v24  ;;  %v10079_v24 = vld [vmem:[#allocation3 + $0x48] sm:$0xff]  }
 0x4b0   :  { %v7405_v34 = vsel %vm6298_vm15, %v7404_v36, %v7400_v57 }
 0x4b1   :  { %v7496_v52 = vsel %vm14991_vm9, %v7405_v34, %v7495_v7 }
 0x4b2   :  { %v7501_v51 = vcombine.low %v7496_v52, %v7499_v43  ;;  %v10082_v43 = vld [vmem:[#allocation3 + $0x88] sm:$0xff]  }
 0x4b4   :  { %v7514_v38 = vmul.f32 0.0625, %v7501_v51 }
 0x4b6   :  { %v7518_v55 = vcombine.high %v7514_v38, %v7514_v38  ;;  %v7523_v28 = vpack.c.bf16 %v7514_v38, %v7514_v38 }
 0x4b8   :  { %v7524_v18 = vpack.c.bf16 %v7518_v55, %v7518_v55 }
 0x4ba   :  { %8366 = vmatprep.mubr.bf16.mxu0 %v7524_v18  ;;  %8448 = vmatprep.mubr.bf16.mxu1 %v7524_v18 }
 0x4bb   :  { %8367 = vmatmul.mubr.bf16.vlgmr.msra.gmra.mrb[0].mxu0 %v7523_v28  ;;  %8449 = vmatmul.mubr.bf16.vlgmr.msra.gmra.mrb[0].mxu1 %v7523_v28 }
 0x4bc   :  { %9822 = vmatpush3.bf16.msra.mxu0 %v10077_v26  ;;  %9844 = vmatpush3.bf16.msra.mxu1 %v10078_v54 }
 0x4bd   :  { %9823 = vmatprep.subr.bf16.mxu0 %v10079_v24  ;;  %9845 = vmatprep.subr.bf16.mxu1 %v10080_v17 }
 0x4c0   :  { %9824 = vmatpush3.bf16.msra.mxu0 %v10081_v61  ;;  %9846 = vmatpush3.bf16.msra.mxu1 %v10082_v43 }
 0x4c1   :  { %9825 = vmatprep.subr.bf16.mxu0 %v10083_v53  ;;  %9847 = vmatprep.subr.bf16.mxu1 %v10084_v62 }
 0x4c4   :  { %9826 = vmatpush3.bf16.msra.mxu0 %v10085_v10  ;;  %9848 = vmatpush3.bf16.msra.mxu1 %v10086_v12 }
 0x4c5   :  { %9827 = vmatprep.subr.bf16.mxu0 %v10087_v2  ;;  %9849 = vmatprep.subr.bf16.mxu1 %v10088_v44 }
 0x4c8   :  { %9828 = vmatpush3.bf16.msra.mxu0 %v10089_v21  ;;  %9850 = vmatpush3.bf16.msra.mxu1 %v10090_v35 }
 0x4c9   :  { %9829 = vmatprep.subr.bf16.mxu0 %v10091_v14  ;;  %9851 = vmatprep.subr.bf16.mxu1 %v10092_v30 }
 0x4cc   :  { %9830 = vmatpush3.bf16.msra.mxu0 %v10093_v39  ;;  %9852 = vmatpush3.bf16.msra.mxu1 %v10094_v56 }
 0x4cd   :  { %9831 = vmatprep.subr.bf16.mxu0 %v10095_v42  ;;  %9853 = vmatprep.subr.bf16.mxu1 %v10096_v3 }
 0x4d0   :  { %9832 = vmatpush3.bf16.msra.mxu0 %v10097_v49  ;;  %9854 = vmatpush3.bf16.msra.mxu1 %v10098_v63 }
 0x4d1   :  { %9833 = vmatprep.subr.bf16.mxu0 %v10099_v19  ;;  %9855 = vmatprep.subr.bf16.mxu1 %v10100_v33 }
 0x4d4   :  { %9834 = vmatpush3.bf16.msra.mxu0 %v10101_v5  ;;  %9856 = vmatpush3.bf16.msra.mxu1 %v10102_v25 }
 0x4d5   :  { %9835 = vmatprep.subr.bf16.mxu0 %v10103_v9  ;;  %9857 = vmatprep.subr.bf16.mxu1 %v10104_v60 }
 0x4d8   :  { %9836 = vmatpush3.bf16.msra.mxu0 %v10105_v0  ;;  %9858 = vmatpush3.bf16.msra.mxu1 %v10106_v22 }
 0x58e   :  { %v14088_v20 = vpop.f32.mrb[0].mxu0  ;;  %v14090_v47 = vpop.f32.mrb[0].mxu1 }
 0x58f   :  { %v8458_v32 = vsel %vm8457_vm10, %v14088_v20, 0.0  ;;  %v8472_v29 = vsel %vm8457_vm10, %v14090_v47, 0.0  ;;  %v14096_v59 = vpop.f32.mrb[1].mxu0  ;;  %v14098_v45 = vpop.f32.mrb[1].mxu1 }
 0x590   :  { %v8459_v40 = vrot.slane %v8458_v32, 4  ;;  %v8473_v6 = vrot.slane %v8472_v29, 4  ;;  %v8465_v1 = vsel %vm8457_vm10, %v14096_v59, 0.0  ;;  %v8479_v23 = vsel %vm8457_vm10, %v14098_v45, 0.0  ;;  %v8372_v11 = vpop.f32.mrb[2].mxu0  ;;  %v8454_v27 = vpop.f32.mrb[2].mxu1 }
 0x591   :  { %v8466_v31 = vrot.slane %v8465_v1, 4  ;;  %v8480_v7 = vrot.slane %v8479_v23, 4  ;;  %v8373_v46 = vpop.f32.mrb[3].mxu0  ;;  %v8455_v13 = vpop.f32.mrb[3].mxu1 }
 0x592   :  { %v8460_v15 = vadd.f32 %v8459_v40, %v8458_v32  ;;  %v8474_v16 = vadd.f32 %v8473_v6, %v8472_v29 }
 0x593   :  { %v8467_v8 = vadd.f32 %v8466_v31, %v8465_v1  ;;  %v8481_v50 = vadd.f32 %v8480_v7, %v8479_v23 }
 0x594   :  { %v8461_v41 = vrot.slane %v8460_v15, 2  ;;  %v8475_v58 = vrot.slane %v8474_v16, 2 }
 0x595   :  { %v8468_v37 = vrot.slane %v8467_v8, 2  ;;  %v8482_v36 = vrot.slane %v8481_v50, 2 }
 0x596   :  { %v8462_v57 = vadd.f32 %v8461_v41, %v8460_v15  ;;  %v8476_v34 = vadd.f32 %v8475_v58, %v8474_v16 }
 0x597   :  { %v8469_v52 = vadd.f32 %v8468_v37, %v8467_v8  ;;  %v8483_v51 = vadd.f32 %v8482_v36, %v8481_v50 }
 0x598   :  { %v8463_v38 = vrot.slane %v8462_v57, 1  ;;  %v8477_v55 = vrot.slane %v8476_v34, 1 }
 0x599   :  { %v8470_v18 = vrot.slane %v8469_v52, 1  ;;  %v8484_v28 = vrot.slane %v8483_v51, 1 }
 0x59a   :  { %v8464_v4 = vadd.f32 %v8463_v38, %v8462_v57  ;;  %v8478_v48 = vadd.f32 %v8477_v55, %v8476_v34  ;;  %v10171_v57 = vmov 1966171168   ;;  %v14992_v55 = vld [vmem:[#allocation146_spill] sm:$0xff] }
 0x59b   :  { %v8471_v26 = vadd.f32 %v8470_v18, %v8469_v52  ;;  %v8485_v54 = vadd.f32 %v8484_v28, %v8483_v51  ;;  %v8547_v34 = vunpack.c.l.s4 %v10171_v57 }
 0x59c   :  { %v14104_v24 = vmul.f32 0.25, %v8464_v4  ;;  %v14106_v17 = vmul.f32 0.25, %v8478_v48 }
 0x59d   :  { %v14108_v61 = vmul.f32 0.25, %v8471_v26  ;;  %v14110_v43 = vmul.f32 0.25, %v8485_v54  ;;  %v8548_v52 = vunpack.c.0.s8 %v8547_v34 }
 0x59e   :  { %v8491_v53 = vsub.f32 %v14088_v20, %v14104_v24  ;;  %v8493_v62 = vsub.f32 %v14090_v47, %v14106_v17 }
 0x59f   :  { %v8492_v10 = vsub.f32 %v14096_v59, %v14108_v61  ;;  %v8494_v12 = vsub.f32 %v14098_v45, %v14110_v43  ;;  %v8551_v18 = vsub.s32 %v8548_v52, %v14992_v55 }
 0x5a0   :  { %v8495_v2 = vmul.f32 %v8491_v53, %v8491_v53  ;;  %v8497_v44 = vmul.f32 %v8493_v62, %v8493_v62 }
 0x5a1   :  { %v8496_v21 = vmul.f32 %v8492_v10, %v8492_v10  ;;  %v8498_v35 = vmul.f32 %v8494_v12, %v8494_v12  ;;  %v8531_v10 = vld [vmem:[%s14158_s2] sm:$0xf]  ;;  %v8582_v12 = vsub.s32 2, %v14992_v55 }
 0x5a2   :  { %v8499_v14 = vsel %vm8457_vm10, %v8495_v2, 0.0  ;;  %v8513_v30 = vsel %vm8457_vm10, %v8497_v44, 0.0  ;;  %v8586_v44 = vsub.s32 3, %v14992_v55 }
 0x5a3   :  { %v8500_v39 = vrot.slane %v8499_v14, 4  ;;  %v8514_v56 = vrot.slane %v8513_v30, 4  ;;  %v8506_v42 = vsel %vm8457_vm10, %v8496_v21, 0.0  ;;  %v8520_v3 = vsel %vm8457_vm10, %v8498_v35, 0.0 }
 0x5a4   :  { %v8507_v49 = vrot.slane %v8506_v42, 4  ;;  %v8521_v63 = vrot.slane %v8520_v3, 4  ;;  %v8574_v21 = vsub.s32 0, %v14992_v55  ;;  %v8578_v35 = vsub.s32 1, %v14992_v55 }
 0x5a5   :  { %v8501_v19 = vadd.f32 %v8500_v39, %v8499_v14  ;;  %v8515_v33 = vadd.f32 %v8514_v56, %v8513_v30 }
 0x5a6   :  { %v8508_v5 = vadd.f32 %v8507_v49, %v8506_v42  ;;  %v8522_v25 = vadd.f32 %v8521_v63, %v8520_v3 }
 0x5a7   :  { %v8502_v9 = vrot.slane %v8501_v19, 2  ;;  %v8516_v60 = vrot.slane %v8515_v33, 2 }
 0x5a8   :  { %v8509_v0 = vrot.slane %v8508_v5, 2  ;;  %v8523_v22 = vrot.slane %v8522_v25, 2 }
 0x5a9   :  { %v8503_v32 = vadd.f32 %v8502_v9, %v8501_v19  ;;  %v8517_v29 = vadd.f32 %v8516_v60, %v8515_v33 }
 0x5aa   :  { %v8510_v40 = vadd.f32 %v8509_v0, %v8508_v5  ;;  %v8524_v6 = vadd.f32 %v8523_v22, %v8522_v25 }
 0x5ab   :  { %v8504_v1 = vrot.slane %v8503_v32, 1  ;;  %v8518_v23 = vrot.slane %v8517_v29, 1 }
 0x5ac   :  { %v8511_v11 = vrot.slane %v8510_v40, 1  ;;  %v8525_v27 = vrot.slane %v8524_v6, 1 }
 0x5ad   :  { %v8505_v31 = vadd.f32 %v8504_v1, %v8503_v32  ;;  %v8519_v7 = vadd.f32 %v8518_v23, %v8517_v29 }
 0x5ae   :  { %v8512_v46 = vadd.f32 %v8511_v11, %v8510_v40  ;;  %v8526_v13 = vadd.f32 %v8525_v27, %v8524_v6 }
 0x5af   :  { %v8527_v15 = vmul.f32 0.25, %v8505_v31  ;;  %v8529_v16 = vmul.f32 0.25, %v8519_v7 }
 0x5b0   :  { %v8528_v8 = vmul.f32 0.25, %v8512_v46  ;;  %v8530_v50 = vmul.f32 0.25, %v8526_v13 }
 0x5b1   :  { %v8532_v41 = vadd.f32 1e-05, %v8527_v15  ;;  %v8534_v58 = vadd.f32 1e-05, %v8529_v16 }
 0x5b2   :  { %v8533_v37 = vadd.f32 1e-05, %v8528_v8  ;;  %v8535_v36 = vadd.f32 1e-05, %v8530_v50 }
 0x5b3   :  { %10107 = vrsqrt.f32 %v8532_v41 }
 0x5b4   :  { %10109 = vrsqrt.f32 %v8534_v58 }
 0x5b5   :  { %10111 = vrsqrt.f32 %v8533_v37 }
 0x5b6   :  { %10113 = vrsqrt.f32 %v8535_v36 }
 0x5bd   :  { %v10108_v51 = vpop.eup %10107 }
 0x5be   :  { %v10110_v38 = vpop.eup %10109 }
 0x5bf   :  { %v10112_v28 = vpop.eup %10111 }
 0x5c0   :  { %v10114_v4 = vpop.eup %10113  ;;  %v8544_v48 = vcombine.low %v10108_v51, %v10112_v28 }
 0x5c1   :  { %v8545_v26 = vcombine.low %v10110_v38, %v10114_v4 }
 0x5c2   :  { %v8552_v54 = vrot.slane %v8544_v48, %v8551_v18 }
 0x5c3   :  { %v8559_v53 = vrot.slane %v8545_v26, %v8551_v18 }
 0x5c5   :  { %v8560_v62 = vcombine.low %v8552_v54, %v8559_v53 }
 0x5c7   :  { %v8567_v2 = vrot.slane %v8560_v62, %v8551_v18 }
 0x5c9   :  { %v8569_v14 = vmul.f32 %v8567_v2, %v8531_v10 }
 0x5cb   :  { %v8583_v30 = vrot.slane %v8569_v14, %v8582_v12  ;;  %v8587_v39 = vrot.slane %v8569_v14, %v8586_v44  ;;  %v8575_v56 = vrot.slane %v8569_v14, %v8574_v21  ;;  %v8579_v42 = vrot.slane %v8569_v14, %v8578_v35 }
 0x5cd   :  { %v8594_v3 = vmul.f32 %v8583_v30, %v14106_v17  ;;  %v8595_v49 = vmul.f32 %v8587_v39, %v14110_v43  ;;  %v8629_v63 = vmul.f32 %v8587_v39, %v14098_v45  ;;  %v8592_v19 = vmul.f32 %v8575_v56, %v14104_v24  ;;  %v8570_v17 = vld [vmem:[%s14159_s3] sm:$0xf]  ;;  %s10172_s3 = smov [#allocation6]  }
 0x5ce   :  { %v8593_v33 = vmul.f32 %v8579_v42, %v14108_v61  ;;  %v8627_v5 = vmul.f32 %v8579_v42, %v14096_v59  ;;  %v8626_v25 = vmul.f32 %v8575_v56, %v14088_v20  ;;  %v8628_v9 = vmul.f32 %v8583_v30, %v14090_v47  ;;  %s9013_s16 = sshll.u32 %s10172_s3, 4  ;;  %s9014_s16 = int_to_ptr.vmem [resolvable:$true] %s9013_s16 }
 0x5cf   :  { %v8601_v60 = vcombine.low %v8594_v3, %v8595_v49  ;;  %s10139_s17 = scalar_lea.vmem %s9014_s16, 64  ;;  %p10144_p9 = scmp.lt.s32.totalorder %s9014_s16, %s9014_s16 }
 0x5d0   :  { %v8600_v0 = vcombine.low %v8592_v19, %v8593_v33  ;;  %p10140_p8 = scmp.ne.s32.totalorder %s9014_s16, %s10139_s17  ;;  %p10145_p10 = scmp.lt.s32.totalorder %s10139_s17, %s10139_s17 }
 0x5d1   :  { %v8615_v22 = vrot.slane %v8601_v60, %v8551_v18 }
 0x5d2   :  { %v8608_v32 = vrot.slane %v8600_v0, %v8551_v18  ;;  %p10146_p11 = por %p10145_p10, %p10144_p9 }
 0x5d4   :  { %v8616_v29 = vcombine.low %v8608_v32, %v8615_v22  ;;  %p10147_p12 = pnand %p10146_p11, %p10140_p8 }
 0x5d6   :  { %v8623_v45 = vrot.slane %v8616_v29, %v8551_v18 }
 0x5d8   :  { %v8625_v43 = vsub.f32 %v8570_v17, %v8623_v45 }
 0x5da   :  { %v8638_v24 = vrot.slane %v8625_v43, %v8578_v35  ;;  %v8646_v40 = vrot.slane %v8625_v43, %v8586_v44  ;;  %v8634_v61 = vrot.slane %v8625_v43, %v8574_v21  ;;  %v8642_v6 = vrot.slane %v8625_v43, %v8582_v12 }
 0x5dc   :  { %v8652_v59 = vadd.f32 %v8638_v24, %v8627_v5  ;;  %v8654_v1 = vadd.f32 %v8646_v40, %v8629_v63  ;;  %v8651_v20 = vadd.f32 %v8634_v61, %v8626_v25  ;;  %v8653_v23 = vadd.f32 %v8642_v6, %v8628_v9 }
 0x5de   :  { %v8656_v47 = vmax.f32 %v8652_v59, 0.0  ;;  %v8658_v11 = vmax.f32 %v8654_v1, 0.0  ;;  %v8655_v27 = vmax.f32 %v8651_v20, 0.0  ;;  %v8657_v31 = vmax.f32 %v8653_v23, 0.0 }
 0x5e0   :  { %v8660_v7 = vpack.c.bf16 %v8656_v47, %v8656_v47  ;;  %v8662_v46 = vpack.c.bf16 %v8658_v11, %v8658_v11  ;;  %v8659_v13 = vpack.c.bf16 %v8655_v27, %v8655_v27  ;;  %v8661_v15 = vpack.c.bf16 %v8657_v31, %v8657_v31 }
 0x5e2   :  { %8951 = vmatprep.mubr.bf16.mxu0 %v8660_v7  ;;  %8991 = vmatprep.mubr.bf16.mxu1 %v8662_v46 }
 0x5e3   :  { %8952 = vmatmul.mubr.bf16.vlgmr.msra.gmra.mrb[4].mxu0 %v8659_v13  ;;  %8992 = vmatmul.mubr.bf16.vlgmr.msra.gmra.mrb[4].mxu1 %v8661_v15 }
 0x6b6   :  { %v9837_v16 = vpop.f32.mrb[4].mxu0  ;;  %v9859_v8 = vpop.f32.mrb[4].mxu1 }
 0x6b7   :  { %v9838_v50 = vpop.f32.mrb[5].mxu0  ;;  %v9860_v41 = vpop.f32.mrb[5].mxu1 }
 0x6b8   :  { %v9839_v58 = vadd.f32 %v9838_v50, %v9837_v16  ;;  %v9861_v37 = vadd.f32 %v9860_v41, %v9859_v8  ;;  %v9840_v36 = vpop.f32.mrb[6].mxu0  ;;  %v9862_v57 = vpop.f32.mrb[6].mxu1 }
 0x6b9   :  { %v9841_v34 = vpop.f32.mrb[7].mxu0  ;;  %v9863_v52 = vpop.f32.mrb[7].mxu1 }
 0x6ba   :  { %v8994_v51 = vadd.f32 %v9861_v37, %v9839_v58 }
 0x6bc   :  { %v8999_v38 = vmul.f32 %v8994_v51, %v8994_v51 }
 0x6be   :  { %v9000_v55 = vsel %vm8457_vm10, %v8999_v38, 0.0 }
 0x6bf   :  { %9001 = vadd.xlane.f32.xlu1 %v9000_v55 }
 0x74c   :  { %v9002_v18 = vpop.xlane.xlu1 %9001 }
 0x74d   :  { %v9003_v28 = vmax.f32 %v9002_v18, 1e-24 }
 0x74f   :  { %10115 = vrsqrt.f32 %v9003_v28 }
 0x759   :  { %v10116_v4 = vpop.eup %10115 }
 0x75a   :  { %v9005_v48 = vmul.f32 %v10116_v4, %v8994_v51 }
 0x75c   :  { %9006 = vst [vmem:[#allocation6] sm:$0xf] %v9005_v48 }
 0x75d   :  { %10150 = shalt.err (!%p10147_p12)
}
 0x75e   :  { %s10151_s20 = scalar_lea.hbm %s14161_s5, 64 }
 0x75f   :  { %p10152_p13 = scmp.ne.s32.totalorder %s14161_s5, %s10151_s20  ;;  %p10155_p0 = scmp.lt.u32.totalorder %s10151_s20, %s14161_s5 }
 0x761   :  { %p10157_p1 = pnand %p10155_p0, %p10152_p13 }
 0x763   :  { %10160 = shalt.err (!%p10157_p1)
}
 0x764   :  { %9016 = dma.vmem_to_hbm [thread:$0]  %s9014_s16, 64, %s14161_s5, [#allocation5]  }
 0x765   :  { %10163 = dma.done.wait [#allocation5], 64  }
 0x766   :  { %10164 = vsyncadd [#allocation5], 4294967232 }
 0x767   :  { %9020 = vsyncpa [#allocation4], 1 }
 0x768   :  { %9021 = vsyncpa [#allocation5], 1 }

</bundles_post_ra>
